<compile_context>
chip_gen: v7x
topology: tpu7x:2x2x1
jax: 0.10.0
libtpu: 0.0.40
codegen_flags: <defaults>
</compile_context>

<pallas_src>
import jax
import jax.numpy as jnp
from jax import lax
from jax.experimental import pallas as pl
from jax.experimental.pallas import tpu as pltpu


def _pick_row_tile(m):
    for t in (512, 256, 128, 64, 32, 16, 8):
        if m % t == 0:
            return t
    return m


def _pick_batch_tile(b):
    for t in (8, 4, 2):
        if b % t == 0:
            return t
    return b


# ----------------------------------------------------------------------------
# Fused input_layer + GRU input-gate projections.
#   h = x @ W_in + b_in                         (stays in VMEM)
#   gx_fwd = h @ W_ih_f + b_ih_f
#   gx_bwd = h @ W_ih_b + b_ih_b
# Gridded over row tiles of the flattened (B*S, F) input, "parallel".
# ----------------------------------------------------------------------------
def _inproj_kernel(x_ref, w_in_ref, b_in_ref, wf_ref, bf_ref, wb_ref, bb_ref,
                   gxf_ref, gxb_ref):
    h = (jnp.dot(x_ref[...], w_in_ref[...], preferred_element_type=jnp.float32)
         + b_in_ref[...])
    gxf_ref[...] = (jnp.dot(h, wf_ref[...], preferred_element_type=jnp.float32)
                    + bf_ref[...])
    gxb_ref[...] = (jnp.dot(h, wb_ref[...], preferred_element_type=jnp.float32)
                    + bb_ref[...])


def input_and_gate_proj(x2d, params):
    M, F = x2d.shape
    D = params["w_in"].shape[1]          # 1280
    H3 = params["w_ih_f"].shape[1]       # 3 * hidden
    tm = _pick_row_tile(M)
    grid = (M // tm,)
    return pl.pallas_call(
        _inproj_kernel,
        out_shape=(jax.ShapeDtypeStruct((M, H3), jnp.float32),
                   jax.ShapeDtypeStruct((M, H3), jnp.float32)),
        grid=grid,
        in_specs=[
            pl.BlockSpec((tm, F), lambda i: (i, 0)),
            pl.BlockSpec((F, D), lambda i: (0, 0)),
            pl.BlockSpec((1, D), lambda i: (0, 0)),
            pl.BlockSpec((D, H3), lambda i: (0, 0)),
            pl.BlockSpec((1, H3), lambda i: (0, 0)),
            pl.BlockSpec((D, H3), lambda i: (0, 0)),
            pl.BlockSpec((1, H3), lambda i: (0, 0)),
        ],
        out_specs=(pl.BlockSpec((tm, H3), lambda i: (i, 0)),
                   pl.BlockSpec((tm, H3), lambda i: (i, 0))),
        compiler_params=pltpu.CompilerParams(
            dimension_semantics=("parallel",),
            vmem_limit_bytes=32 * 1024 * 1024),
    )(x2d, params["w_in"], params["b_in"],
      params["w_ih_f"], params["b_ih_f"],
      params["w_ih_b"], params["b_ih_b"])


# ----------------------------------------------------------------------------
# Bidirectional GRU recurrence.
#   * gx (x-gates, PyTorch order [r, z, n]) precomputed by the kernel above.
#   * one block-diagonal matmul per timestep drives BOTH directions:
#       [h_f | h_b] (TB, 2H) @ blockdiag(W_hh_f, W_hh_b) (2H, 6H)
#   * per-direction hidden states accumulated in VMEM scratch, concatenated
#     and stored to the output once after the loop (no per-step HBM-bound
#     narrow stores).
#   * timestep loop manually unrolled by 2 for scheduler visibility.
# Gridded over batch tiles, "parallel" (v7x megacore).
# TODO(synk): for H < 64 the per-gate slices are not 128-lane aligned; padding
#             H to a lane multiple would remove masked stores / relayouts.
# ----------------------------------------------------------------------------
def _bigru_kernel(gxf_ref, gxb_ref, whh_ref, bhh_ref, o_ref, accf, accb):
    TB, S, H3 = gxf_ref.shape
    H = H3 // 3
    whh = whh_ref[...]          # (2H, 6H), hoisted out of the loop
    bhh = bhh_ref[...]          # (1, 6H)

    def cell(gx, gh, h):
        r = jax.nn.sigmoid(gx[:, 0:H] + gh[:, 0:H])
        z = jax.nn.sigmoid(gx[:, H:2 * H] + gh[:, H:2 * H])
        n = jnp.tanh(gx[:, 2 * H:3 * H] + r * gh[:, 2 * H:3 * H])
        return (1.0 - z) * n + z * h

    def step(t, carry):
        hf, hb = carry
        hcat = jnp.concatenate([hf, hb], axis=-1)                      # (TB, 2H)
        gh = jnp.dot(hcat, whh, preferred_element_type=jnp.float32) + bhh
        ghf = gh[:, 0:H3]
        ghb = gh[:, H3:2 * H3]
        tb_idx = S - 1 - t
        gxf = gxf_ref[:, pl.ds(t, 1), :].reshape(TB, H3)
        gxb = gxb_ref[:, pl.ds(tb_idx, 1), :].reshape(TB, H3)
        hf_new = cell(gxf, ghf, hf)
        hb_new = cell(gxb, ghb, hb)
        accf[:, pl.ds(t, 1), :] = hf_new.reshape(TB, 1, H)
        accb[:, pl.ds(tb_idx, 1), :] = hb_new.reshape(TB, 1, H)
        return hf_new, hb_new

    def two_steps(i, carry):
        carry = step(2 * i, carry)
        carry = step(2 * i + 1, carry)
        return carry

    h0 = jnp.zeros((TB, H), jnp.float32)
    carry = lax.fori_loop(0, S // 2, two_steps, (h0, h0))
    if S % 2:                                   # static remainder
        carry = step(S - 1, carry)

    o_ref[...] = jnp.concatenate([accf[...], accb[...]], axis=-1)


def bigru(gxf, gxb, w_hh_cat, b_hh_cat):
    B, S, H3 = gxf.shape
    H = H3 // 3
    tb = _pick_batch_tile(B)
    grid = (B // tb,)
    return pl.pallas_call(
        _bigru_kernel,
        out_shape=jax.ShapeDtypeStruct((B, S, 2 * H), jnp.float32),
        grid=grid,
        in_specs=[
            pl.BlockSpec((tb, S, H3), lambda i: (i, 0, 0)),
            pl.BlockSpec((tb, S, H3), lambda i: (i, 0, 0)),
            pl.BlockSpec((2 * H, 2 * H3), lambda i: (0, 0)),
            pl.BlockSpec((1, 2 * H3), lambda i: (0, 0)),
        ],
        out_specs=pl.BlockSpec((tb, S, 2 * H), lambda i: (i, 0, 0)),
        scratch_shapes=[pltpu.VMEM((tb, S, H), jnp.float32),
                        pltpu.VMEM((tb, S, H), jnp.float32)],
        compiler_params=pltpu.CompilerParams(
            dimension_semantics=("parallel",),
            vmem_limit_bytes=32 * 1024 * 1024),
    )(gxf, gxb, w_hh_cat, b_hh_cat)


# ----------------------------------------------------------------------------
# Single-head self-attention (nn.MultiheadAttention, num_heads=1) fused with
# the sequence mean, the output projection (hoisted past the mean), dense1 and
# the final classifier.  One batch element per grid step ("parallel") so every
# matmul is 2-D and peak VMEM is per-batch (scores are only (S, S)).
# ----------------------------------------------------------------------------
def _attn_head_kernel(x_ref, wq_ref, bq_ref, wk_ref, bk_ref, wv_ref, bv_ref,
                      wo_ref, bo_ref, wd1_ref, bd1_ref, wout_ref, bout_ref,
                      o_ref):
    x = x_ref[...]                                              # (S, E)
    S, E = x.shape
    q = jnp.dot(x, wq_ref[...], preferred_element_type=jnp.float32) + bq_ref[...]
    k = jnp.dot(x, wk_ref[...], preferred_element_type=jnp.float32) + bk_ref[...]
    v = jnp.dot(x, wv_ref[...], preferred_element_type=jnp.float32) + bv_ref[...]
    scale = 1.0 / (float(E) ** 0.5)                             # head_dim == E
    scores = lax.dot_general(q, k, (((1,), (1,)), ((), ())),
                             preferred_element_type=jnp.float32) * scale
    m = jnp.max(scores, axis=-1, keepdims=True)
    p = jnp.exp(scores - m)
    denom = jnp.sum(p, axis=-1, keepdims=True)
    attn = p * pl.reciprocal(denom, approx=True)                # EUP, frees VPU
    ctx = jnp.dot(attn, v, preferred_element_type=jnp.float32)  # (S, E)
    pooled = jnp.mean(ctx, axis=0, keepdims=True)               # (1, E)
    # mean(ctx @ Wo + bo) == mean(ctx) @ Wo + bo  (mean is linear)
    feat = jnp.dot(pooled, wo_ref[...], preferred_element_type=jnp.float32) + bo_ref[...]
    d = jnp.dot(feat, wd1_ref[...], preferred_element_type=jnp.float32) + bd1_ref[...]
    o_ref[...] = (jnp.dot(d, wout_ref[...], preferred_element_type=jnp.float32)
                  + bout_ref[...])


def attn_pool_head(x, params):
    B, S, E = x.shape
    C = params["w_out"].shape[1]
    ws = (params["w_q"], params["b_q"], params["w_k"], params["b_k"],
          params["w_v"], params["b_v"], params["w_o"], params["b_o"],
          params["w_d1"], params["b_d1"], params["w_out"], params["b_out"])
    out = pl.pallas_call(
        _attn_head_kernel,
        out_shape=jax.ShapeDtypeStruct((B, 1, C), jnp.float32),
        grid=(B,),
        in_specs=[pl.BlockSpec((None, S, E), lambda b: (b, 0, 0))]
                 + [pl.BlockSpec(w.shape, lambda b: (0, 0)) for w in ws],
        out_specs=pl.BlockSpec((None, 1, C), lambda b: (b, 0, 0)),
        compiler_params=pltpu.CompilerParams(
            dimension_semantics=("parallel",)),
    )(x, *ws)
    return out.reshape(B, C)


# ----------------------------------------------------------------------------
# Parameters (deterministic synthetic init; same shapes as the PyTorch module,
# stored transposed as (in, out) and biases as (1, out)).
# ----------------------------------------------------------------------------
def init_params(key, input_size, hidden_size, num_classes):
    E = 2 * hidden_size

    def mk(k, shape, scale=0.05):
        return scale * jax.random.normal(k, shape, dtype=jnp.float32)

    ks = iter(jax.random.split(key, 24))
    p = {}
    # input_layer: nn.Linear(input_size, 1280)
    p["w_in"] = mk(next(ks), (input_size, 1280))
    p["b_in"] = mk(next(ks), (1, 1280))
    # bi_gru: nn.GRU(1280, hidden_size, bidirectional=True), gate order [r,z,n]
    for d in ("f", "b"):
        p[f"w_ih_{d}"] = mk(next(ks), (1280, 3 * hidden_size))
        p[f"b_ih_{d}"] = mk(next(ks), (1, 3 * hidden_size))
        p[f"w_hh_{d}"] = mk(next(ks), (hidden_size, 3 * hidden_size))
        p[f"b_hh_{d}"] = mk(next(ks), (1, 3 * hidden_size))
    # attention: nn.MultiheadAttention(E, 1)  (in_proj split into q/k/v + out_proj)
    for n in ("q", "k", "v", "o"):
        p[f"w_{n}"] = mk(next(ks), (E, E))
        p[f"b_{n}"] = mk(next(ks), (1, E))
    # dense1: nn.Linear(E, 64); linear: nn.Linear(64, num_classes)
    p["w_d1"] = mk(next(ks), (E, 64))
    p["b_d1"] = mk(next(ks), (1, 64))
    p["w_out"] = mk(next(ks), (64, num_classes))
    p["b_out"] = mk(next(ks), (1, num_classes))
    return p


def hdmlf_forward(params, x, hidden_size):
    B, S, F = x.shape
    H = hidden_size

    # Fused: input_layer + both GRU input-gate projections (one HBM pass).
    gxf, gxb = input_and_gate_proj(x.reshape(B * S, F), params)
    gxf = gxf.reshape(B, S, 3 * H)
    gxb = gxb.reshape(B, S, 3 * H)

    # Block-diagonal recurrence weight so one matmul drives both directions.
    zeros = jnp.zeros((H, 3 * H), jnp.float32)
    w_hh_cat = jnp.concatenate(
        [jnp.concatenate([params["w_hh_f"], zeros], axis=1),
         jnp.concatenate([zeros, params["w_hh_b"]], axis=1)], axis=0)   # (2H, 6H)
    b_hh_cat = jnp.concatenate([params["b_hh_f"], params["b_hh_b"]], axis=1)

    gru_out = bigru(gxf, gxb, w_hh_cat, b_hh_cat)            # (B, S, 2H)

    # attention + mean + out_proj + dense1 + classifier, fused & batch-parallel.
    return attn_pool_head(gru_out, params)                    # (B, num_classes)


if __name__ == "__main__":
    B, S = 2, 8
    input_size, hidden_size, num_classes = 32, 32, 10

    key = jax.random.PRNGKey(0)
    kx, kp = jax.random.split(key)
    x = jax.random.normal(kx, (B, S, input_size), dtype=jnp.float32)
    params = init_params(kp, input_size, hidden_size, num_classes)

    fwd = jax.jit(lambda p, xx: hdmlf_forward(p, xx, hidden_size))
    out = fwd(params, x)
    jax.block_until_ready(out)
    assert out.shape == (B, num_classes)
    assert bool(jnp.all(jnp.isfinite(out)))
    print("KERNEL_OK")
</pallas_src>

<mosaic_0001>
module attributes {stable_mosaic.version = 11 : i64} {
  func.func @_inproj_kernel(%arg0: i32, %arg1: memref<16x32xf32, #tpu.memory_space<vmem>>, %arg2: memref<32x1280xf32, #tpu.memory_space<vmem>>, %arg3: memref<1x1280xf32, #tpu.memory_space<vmem>>, %arg4: memref<1280x96xf32, #tpu.memory_space<vmem>>, %arg5: memref<1x96xf32, #tpu.memory_space<vmem>>, %arg6: memref<1280x96xf32, #tpu.memory_space<vmem>>, %arg7: memref<1x96xf32, #tpu.memory_space<vmem>>, %arg8: memref<16x96xf32, #tpu.memory_space<vmem>>, %arg9: memref<16x96xf32, #tpu.memory_space<vmem>>) attributes {dimension_semantics = [#tpu.dimension_semantics<parallel>], iteration_bounds = array<i64: 1>, scalar_prefetch = 0 : i64, scratch_operands = 0 : i64, tpu.core_type = #tpu.core_type<tc>, window_params = [{transform_indices = @transform_0, window_bounds = array<i64: 16, 32>}, {pipeline_mode = #tpu.pipeline_mode<synchronous>, transform_indices = @transform_1, window_bounds = array<i64: 32, 1280>}, {pipeline_mode = #tpu.pipeline_mode<synchronous>, transform_indices = @transform_2, window_bounds = array<i64: 1, 1280>}, {pipeline_mode = #tpu.pipeline_mode<synchronous>, transform_indices = @transform_3, window_bounds = array<i64: 1280, 96>}, {pipeline_mode = #tpu.pipeline_mode<synchronous>, transform_indices = @transform_4, window_bounds = array<i64: 1, 96>}, {pipeline_mode = #tpu.pipeline_mode<synchronous>, transform_indices = @transform_5, window_bounds = array<i64: 1280, 96>}, {pipeline_mode = #tpu.pipeline_mode<synchronous>, transform_indices = @transform_6, window_bounds = array<i64: 1, 96>}, {transform_indices = @transform_7, window_bounds = array<i64: 16, 96>}, {transform_indices = @transform_8, window_bounds = array<i64: 16, 96>}]} {
    %c0 = arith.constant 0 : index
    %c0_0 = arith.constant 0 : index
    %0 = vector.load %arg1[%c0, %c0_0] : memref<16x32xf32, #tpu.memory_space<vmem>>, vector<16x32xf32>
    %c0_1 = arith.constant 0 : index
    %c0_2 = arith.constant 0 : index
    %1 = vector.load %arg2[%c0_1, %c0_2] : memref<32x1280xf32, #tpu.memory_space<vmem>>, vector<32x1280xf32>
    %cst = arith.constant dense<0.000000e+00> : vector<16x1280xf32>
    %2 = tpu.matmul %0, %1, %cst {dimension_numbers = #tpu.dot_dimension_numbers<[1], [0], [0], [1], [0, 0, 1, 1], [], []>} : vector<16x32xf32>, vector<32x1280xf32>, vector<16x1280xf32> -> vector<16x1280xf32>
    %c0_3 = arith.constant 0 : index
    %c0_4 = arith.constant 0 : index
    %3 = vector.load %arg3[%c0_3, %c0_4] : memref<1x1280xf32, #tpu.memory_space<vmem>>, vector<1x1280xf32>
    %4 = vector.broadcast %3 : vector<1x1280xf32> to vector<16x1280xf32>
    %5 = arith.addf %2, %4 : vector<16x1280xf32>
    %c0_5 = arith.constant 0 : index
    %c0_6 = arith.constant 0 : index
    %6 = vector.load %arg4[%c0_5, %c0_6] : memref<1280x96xf32, #tpu.memory_space<vmem>>, vector<1280x96xf32>
    %cst_7 = arith.constant dense<0.000000e+00> : vector<16x96xf32>
    %7 = tpu.matmul %5, %6, %cst_7 {dimension_numbers = #tpu.dot_dimension_numbers<[1], [0], [0], [1], [0, 0, 1, 1], [], []>} : vector<16x1280xf32>, vector<1280x96xf32>, vector<16x96xf32> -> vector<16x96xf32>
    %c0_8 = arith.constant 0 : index
    %c0_9 = arith.constant 0 : index
    %8 = vector.load %arg5[%c0_8, %c0_9] : memref<1x96xf32, #tpu.memory_space<vmem>>, vector<1x96xf32>
    %9 = vector.broadcast %8 : vector<1x96xf32> to vector<16x96xf32>
    %10 = arith.addf %7, %9 : vector<16x96xf32>
    %c0_10 = arith.constant 0 : index
    %c0_11 = arith.constant 0 : index
    %11 = vector.load %arg8[%c0_10, %c0_11] : memref<16x96xf32, #tpu.memory_space<vmem>>, vector<16x96xf32>
    tpu.vector_store %arg8[%c0_10, %c0_11], %10 {strides = array<i32>} : memref<16x96xf32, #tpu.memory_space<vmem>>, vector<16x96xf32>,
    %c0_12 = arith.constant 0 : index
    %c0_13 = arith.constant 0 : index
    %12 = vector.load %arg6[%c0_12, %c0_13] : memref<1280x96xf32, #tpu.memory_space<vmem>>, vector<1280x96xf32>
    %cst_14 = arith.constant dense<0.000000e+00> : vector<16x96xf32>
    %13 = tpu.matmul %5, %12, %cst_14 {dimension_numbers = #tpu.dot_dimension_numbers<[1], [0], [0], [1], [0, 0, 1, 1], [], []>} : vector<16x1280xf32>, vector<1280x96xf32>, vector<16x96xf32> -> vector<16x96xf32>
    %c0_15 = arith.constant 0 : index
    %c0_16 = arith.constant 0 : index
    %14 = vector.load %arg7[%c0_15, %c0_16] : memref<1x96xf32, #tpu.memory_space<vmem>>, vector<1x96xf32>
    %15 = vector.broadcast %14 : vector<1x96xf32> to vector<16x96xf32>
    %16 = arith.addf %13, %15 : vector<16x96xf32>
    %c0_17 = arith.constant 0 : index
    %c0_18 = arith.constant 0 : index
    %17 = vector.load %arg9[%c0_17, %c0_18] : memref<16x96xf32, #tpu.memory_space<vmem>>, vector<16x96xf32>
    tpu.vector_store %arg9[%c0_17, %c0_18], %16 {strides = array<i32>} : memref<16x96xf32, #tpu.memory_space<vmem>>, vector<16x96xf32>,
    return
  }
  func.func @transform_0(%arg0: i32) -> (i32, i32) {
    %c0_i32 = arith.constant 0 : i32
    %c0_i32_0 = arith.constant 0 : i32
    return %arg0, %c0_i32 : i32, i32
  }
  func.func @transform_1(%arg0: i32) -> (i32, i32) {
    %c0_i32 = arith.constant 0 : i32
    %c0_i32_0 = arith.constant 0 : i32
    %c0_i32_1 = arith.constant 0 : i32
    return %c0_i32, %c0_i32_0 : i32, i32
  }
  func.func @transform_2(%arg0: i32) -> (i32, i32) {
    %c0_i32 = arith.constant 0 : i32
    %c0_i32_0 = arith.constant 0 : i32
    %c0_i32_1 = arith.constant 0 : i32
    return %c0_i32, %c0_i32_0 : i32, i32
  }
  func.func @transform_3(%arg0: i32) -> (i32, i32) {
    %c0_i32 = arith.constant 0 : i32
    %c0_i32_0 = arith.constant 0 : i32
    %c0_i32_1 = arith.constant 0 : i32
    return %c0_i32, %c0_i32_0 : i32, i32
  }
  func.func @transform_4(%arg0: i32) -> (i32, i32) {
    %c0_i32 = arith.constant 0 : i32
    %c0_i32_0 = arith.constant 0 : i32
    %c0_i32_1 = arith.constant 0 : i32
    return %c0_i32, %c0_i32_0 : i32, i32
  }
  func.func @transform_5(%arg0: i32) -> (i32, i32) {
    %c0_i32 = arith.constant 0 : i32
    %c0_i32_0 = arith.constant 0 : i32
    %c0_i32_1 = arith.constant 0 : i32
    return %c0_i32, %c0_i32_0 : i32, i32
  }
  func.func @transform_6(%arg0: i32) -> (i32, i32) {
    %c0_i32 = arith.constant 0 : i32
    %c0_i32_0 = arith.constant 0 : i32
    %c0_i32_1 = arith.constant 0 : i32
    return %c0_i32, %c0_i32_0 : i32, i32
  }
  func.func @transform_7(%arg0: i32) -> (i32, i32) {
    %c0_i32 = arith.constant 0 : i32
    %c0_i32_0 = arith.constant 0 : i32
    return %arg0, %c0_i32 : i32, i32
  }
  func.func @transform_8(%arg0: i32) -> (i32, i32) {
    %c0_i32 = arith.constant 0 : i32
    %c0_i32_0 = arith.constant 0 : i32
    return %arg0, %c0_i32 : i32, i32
  }
}

module attributes {stable_mosaic.version = 11 : i64} {
  func.func @_attn_head_kernel(%arg0: i32, %arg1: memref<1x8x64xf32, #tpu.memory_space<vmem>>, %arg2: memref<64x64xf32, #tpu.memory_space<vmem>>, %arg3: memref<1x64xf32, #tpu.memory_space<vmem>>, %arg4: memref<64x64xf32, #tpu.memory_space<vmem>>, %arg5: memref<1x64xf32, #tpu.memory_space<vmem>>, %arg6: memref<64x64xf32, #tpu.memory_space<vmem>>, %arg7: memref<1x64xf32, #tpu.memory_space<vmem>>, %arg8: memref<64x64xf32, #tpu.memory_space<vmem>>, %arg9: memref<1x64xf32, #tpu.memory_space<vmem>>, %arg10: memref<64x64xf32, #tpu.memory_space<vmem>>, %arg11: memref<1x64xf32, #tpu.memory_space<vmem>>, %arg12: memref<64x10xf32, #tpu.memory_space<vmem>>, %arg13: memref<1x10xf32, #tpu.memory_space<vmem>>, %arg14: memref<1x1x10xf32, #tpu.memory_space<vmem>>) attributes {dimension_semantics = [#tpu.dimension_semantics<parallel>], iteration_bounds = array<i64: 2>, scalar_prefetch = 0 : i64, scratch_operands = 0 : i64, tpu.core_type = #tpu.core_type<tc>, window_params = [{transform_indices = @transform_0, window_bounds = array<i64: 1, 8, 64>}, {pipeline_mode = #tpu.pipeline_mode<synchronous>, transform_indices = @transform_1, window_bounds = array<i64: 64, 64>}, {pipeline_mode = #tpu.pipeline_mode<synchronous>, transform_indices = @transform_2, window_bounds = array<i64: 1, 64>}, {pipeline_mode = #tpu.pipeline_mode<synchronous>, transform_indices = @transform_3, window_bounds = array<i64: 64, 64>}, {pipeline_mode = #tpu.pipeline_mode<synchronous>, transform_indices = @transform_4, window_bounds = array<i64: 1, 64>}, {pipeline_mode = #tpu.pipeline_mode<synchronous>, transform_indices = @transform_5, window_bounds = array<i64: 64, 64>}, {pipeline_mode = #tpu.pipeline_mode<synchronous>, transform_indices = @transform_6, window_bounds = array<i64: 1, 64>}, {pipeline_mode = #tpu.pipeline_mode<synchronous>, transform_indices = @transform_7, window_bounds = array<i64: 64, 64>}, {pipeline_mode = #tpu.pipeline_mode<synchronous>, transform_indices = @transform_8, window_bounds = array<i64: 1, 64>}, {pipeline_mode = #tpu.pipeline_mode<synchronous>, transform_indices = @transform_9, window_bounds = array<i64: 64, 64>}, {pipeline_mode = #tpu.pipeline_mode<synchronous>, transform_indices = @transform_10, window_bounds = array<i64: 1, 64>}, {pipeline_mode = #tpu.pipeline_mode<synchronous>, transform_indices = @transform_11, window_bounds = array<i64: 64, 10>}, {pipeline_mode = #tpu.pipeline_mode<synchronous>, transform_indices = @transform_12, window_bounds = array<i64: 1, 10>}, {transform_indices = @transform_13, window_bounds = array<i64: 1, 1, 10>}]} {
    %c0 = arith.constant 0 : index
    %c0_0 = arith.constant 0 : index
    %c0_1 = arith.constant 0 : index
    %0 = vector.load %arg1[%c0, %c0_0, %c0_1] : memref<1x8x64xf32, #tpu.memory_space<vmem>>, vector<1x8x64xf32>
    %1 = vector.shape_cast %0 : vector<1x8x64xf32> to vector<8x64xf32>
    %c0_2 = arith.constant 0 : index
    %c0_3 = arith.constant 0 : index
    %2 = vector.load %arg2[%c0_2, %c0_3] : memref<64x64xf32, #tpu.memory_space<vmem>>, vector<64x64xf32>
    %cst = arith.constant dense<0.000000e+00> : vector<8x64xf32>
    %3 = tpu.matmul %1, %2, %cst {dimension_numbers = #tpu.dot_dimension_numbers<[1], [0], [0], [1], [0, 0, 1, 1], [], []>} : vector<8x64xf32>, vector<64x64xf32>, vector<8x64xf32> -> vector<8x64xf32>
    %c0_4 = arith.constant 0 : index
    %c0_5 = arith.constant 0 : index
    %4 = vector.load %arg3[%c0_4, %c0_5] : memref<1x64xf32, #tpu.memory_space<vmem>>, vector<1x64xf32>
    %5 = vector.broadcast %4 : vector<1x64xf32> to vector<8x64xf32>
    %6 = arith.addf %3, %5 : vector<8x64xf32>
    %c0_6 = arith.constant 0 : index
    %c0_7 = arith.constant 0 : index
    %7 = vector.load %arg4[%c0_6, %c0_7] : memref<64x64xf32, #tpu.memory_space<vmem>>, vector<64x64xf32>
    %cst_8 = arith.constant dense<0.000000e+00> : vector<8x64xf32>
    %8 = tpu.matmul %1, %7, %cst_8 {dimension_numbers = #tpu.dot_dimension_numbers<[1], [0], [0], [1], [0, 0, 1, 1], [], []>} : vector<8x64xf32>, vector<64x64xf32>, vector<8x64xf32> -> vector<8x64xf32>
    %c0_9 = arith.constant 0 : index
    %c0_10 = arith.constant 0 : index
    %9 = vector.load %arg5[%c0_9, %c0_10] : memref<1x64xf32, #tpu.memory_space<vmem>>, vector<1x64xf32>
    %10 = vector.broadcast %9 : vector<1x64xf32> to vector<8x64xf32>
    %11 = arith.addf %8, %10 : vector<8x64xf32>
    %c0_11 = arith.constant 0 : index
    %c0_12 = arith.constant 0 : index
    %12 = vector.load %arg6[%c0_11, %c0_12] : memref<64x64xf32, #tpu.memory_space<vmem>>, vector<64x64xf32>
    %cst_13 = arith.constant dense<0.000000e+00> : vector<8x64xf32>
    %13 = tpu.matmul %1, %12, %cst_13 {dimension_numbers = #tpu.dot_dimension_numbers<[1], [0], [0], [1], [0, 0, 1, 1], [], []>} : vector<8x64xf32>, vector<64x64xf32>, vector<8x64xf32> -> vector<8x64xf32>
    %c0_14 = arith.constant 0 : index
    %c0_15 = arith.constant 0 : index
    %14 = vector.load %arg7[%c0_14, %c0_15] : memref<1x64xf32, #tpu.memory_space<vmem>>, vector<1x64xf32>
    %15 = vector.broadcast %14 : vector<1x64xf32> to vector<8x64xf32>
    %16 = arith.addf %13, %15 : vector<8x64xf32>
    %cst_16 = arith.constant dense<0.000000e+00> : vector<8x8xf32>
    %17 = tpu.matmul %6, %11, %cst_16 {dimension_numbers = #tpu.dot_dimension_numbers<[1], [1], [0], [0], [0, 0, 1, 0], [], []>} : vector<8x64xf32>, vector<8x64xf32>, vector<8x8xf32> -> vector<8x8xf32>
    %cst_17 = arith.constant 1.250000e-01 : f32
    %18 = vector.broadcast %cst_17 : f32 to vector<8x8xf32>
    %19 = arith.mulf %17, %18 : vector<8x8xf32>
    %cst_18 = arith.constant dense<0xFF800000> : vector<8xf32>
    %20 = vector.multi_reduction <maximumf>, %19, %cst_18 [1] : vector<8x8xf32> to vector<8xf32>
    %21 = vector.shape_cast %20 : vector<8xf32> to vector<8x1xf32>
    %22 = vector.broadcast %21 : vector<8x1xf32> to vector<8x8xf32>
    %23 = arith.subf %19, %22 : vector<8x8xf32>
    %24 = math.exp %23 : vector<8x8xf32>
    %cst_19 = arith.constant dense<0.000000e+00> : vector<8xf32>
    %25 = vector.multi_reduction <add>, %24, %cst_19 [1] : vector<8x8xf32> to vector<8xf32>
    %26 = vector.shape_cast %25 : vector<8xf32> to vector<8x1xf32>
    %27 = tpu.reciprocal %26 {approx = true} : vector<8x1xf32> -> vector<8x1xf32>
    %28 = vector.broadcast %27 : vector<8x1xf32> to vector<8x8xf32>
    %29 = arith.mulf %24, %28 : vector<8x8xf32>
    %cst_20 = arith.constant dense<0.000000e+00> : vector<8x64xf32>
    %30 = tpu.matmul %29, %16, %cst_20 {dimension_numbers = #tpu.dot_dimension_numbers<[1], [0], [0], [1], [0, 0, 1, 1], [], []>} : vector<8x8xf32>, vector<8x64xf32>, vector<8x64xf32> -> vector<8x64xf32>
    %cst_21 = arith.constant dense<0.000000e+00> : vector<64xf32>
    %31 = vector.multi_reduction <add>, %30, %cst_21 [0] : vector<8x64xf32> to vector<64xf32>
    %32 = vector.shape_cast %31 : vector<64xf32> to vector<1x64xf32>
    %cst_22 = arith.constant 8.000000e+00 : f32
    %33 = vector.broadcast %cst_22 : f32 to vector<1x64xf32>
    %34 = arith.divf %32, %33 : vector<1x64xf32>
    %c0_23 = arith.constant 0 : index
    %c0_24 = arith.constant 0 : index
    %35 = vector.load %arg8[%c0_23, %c0_24] : memref<64x64xf32, #tpu.memory_space<vmem>>, vector<64x64xf32>
    %cst_25 = arith.constant dense<0.000000e+00> : vector<1x64xf32>
    %36 = tpu.matmul %34, %35, %cst_25 {dimension_numbers = #tpu.dot_dimension_numbers<[1], [0], [0], [1], [0, 0, 1, 1], [], []>} : vector<1x64xf32>, vector<64x64xf32>, vector<1x64xf32> -> vector<1x64xf32>
    %c0_26 = arith.constant 0 : index
    %c0_27 = arith.constant 0 : index
    %37 = vector.load %arg9[%c0_26, %c0_27] : memref<1x64xf32, #tpu.memory_space<vmem>>, vector<1x64xf32>
    %38 = arith.addf %36, %37 : vector<1x64xf32>
    %c0_28 = arith.constant 0 : index
    %c0_29 = arith.constant 0 : index
    %39 = vector.load %arg10[%c0_28, %c0_29] : memref<64x64xf32, #tpu.memory_space<vmem>>, vector<64x64xf32>
    %cst_30 = arith.constant dense<0.000000e+00> : vector<1x64xf32>
    %40 = tpu.matmul %38, %39, %cst_30 {dimension_numbers = #tpu.dot_dimension_numbers<[1], [0], [0], [1], [0, 0, 1, 1], [], []>} : vector<1x64xf32>, vector<64x64xf32>, vector<1x64xf32> -> vector<1x64xf32>
    %c0_31 = arith.constant 0 : index
    %c0_32 = arith.constant 0 : index
    %41 = vector.load %arg11[%c0_31, %c0_32] : memref<1x64xf32, #tpu.memory_space<vmem>>, vector<1x64xf32>
    %42 = arith.addf %40, %41 : vector<1x64xf32>
    %c0_33 = arith.constant 0 : index
    %c0_34 = arith.constant 0 : index
    %43 = vector.load %arg12[%c0_33, %c0_34] : memref<64x10xf32, #tpu.memory_space<vmem>>, vector<64x10xf32>
    %cst_35 = arith.constant dense<0.000000e+00> : vector<1x10xf32>
    %44 = tpu.matmul %42, %43, %cst_35 {dimension_numbers = #tpu.dot_dimension_numbers<[1], [0], [0], [1], [0, 0, 1, 1], [], []>} : vector<1x64xf32>, vector<64x10xf32>, vector<1x10xf32> -> vector<1x10xf32>
    %c0_36 = arith.constant 0 : index
    %c0_37 = arith.constant 0 : index
    %45 = vector.load %arg13[%c0_36, %c0_37] : memref<1x10xf32, #tpu.memory_space<vmem>>, vector<1x10xf32>
    %46 = arith.addf %44, %45 : vector<1x10xf32>
    %c0_38 = arith.constant 0 : index
    %c0_39 = arith.constant 0 : index
    %c0_40 = arith.constant 0 : index
    %47 = vector.load %arg14[%c0_38, %c0_39, %c0_40] : memref<1x1x10xf32, #tpu.memory_space<vmem>>, vector<1x1x10xf32>
    %48 = vector.shape_cast %47 : vector<1x1x10xf32> to vector<1x10xf32>
    %49 = vector.shape_cast %46 : vector<1x10xf32> to vector<1x1x10xf32>
    tpu.vector_store %arg14[%c0_38, %c0_39, %c0_40], %49 {strides = array<i32>} : memref<1x1x10xf32, #tpu.memory_space<vmem>>, vector<1x1x10xf32>,
    return
  }
  func.func @transform_0(%arg0: i32) -> (i32, i32, i32) {
    %c0_i32 = arith.constant 0 : i32
    %c0_i32_0 = arith.constant 0 : i32
    %c0_i32_1 = arith.constant 0 : i32
    return %arg0, %c0_i32, %c0_i32_0 : i32, i32, i32
  }
  func.func @transform_1(%arg0: i32) -> (i32, i32) {
    %c0_i32 = arith.constant 0 : i32
    %c0_i32_0 = arith.constant 0 : i32
    %c0_i32_1 = arith.constant 0 : i32
    return %c0_i32, %c0_i32_0 : i32, i32
  }
  func.func @transform_2(%arg0: i32) -> (i32, i32) {
    %c0_i32 = arith.constant 0 : i32
    %c0_i32_0 = arith.constant 0 : i32
    %c0_i32_1 = arith.constant 0 : i32
    return %c0_i32, %c0_i32_0 : i32, i32
  }
  func.func @transform_3(%arg0: i32) -> (i32, i32) {
    %c0_i32 = arith.constant 0 : i32
    %c0_i32_0 = arith.constant 0 : i32
    %c0_i32_1 = arith.constant 0 : i32
    return %c0_i32, %c0_i32_0 : i32, i32
  }
  func.func @transform_4(%arg0: i32) -> (i32, i32) {
    %c0_i32 = arith.constant 0 : i32
    %c0_i32_0 = arith.constant 0 : i32
    %c0_i32_1 = arith.constant 0 : i32
    return %c0_i32, %c0_i32_0 : i32, i32
  }
  func.func @transform_5(%arg0: i32) -> (i32, i32) {
    %c0_i32 = arith.constant 0 : i32
    %c0_i32_0 = arith.constant 0 : i32
    %c0_i32_1 = arith.constant 0 : i32
    return %c0_i32, %c0_i32_0 : i32, i32
  }
  func.func @transform_6(%arg0: i32) -> (i32, i32) {
    %c0_i32 = arith.constant 0 : i32
    %c0_i32_0 = arith.constant 0 : i32
    %c0_i32_1 = arith.constant 0 : i32
    return %c0_i32, %c0_i32_0 : i32, i32
  }
  func.func @transform_7(%arg0: i32) -> (i32, i32) {
    %c0_i32 = arith.constant 0 : i32
    %c0_i32_0 = arith.constant 0 : i32
    %c0_i32_1 = arith.constant 0 : i32
    return %c0_i32, %c0_i32_0 : i32, i32
  }
  func.func @transform_8(%arg0: i32) -> (i32, i32) {
    %c0_i32 = arith.constant 0 : i32
    %c0_i32_0 = arith.constant 0 : i32
    %c0_i32_1 = arith.constant 0 : i32
    return %c0_i32, %c0_i32_0 : i32, i32
  }
  func.func @transform_9(%arg0: i32) -> (i32, i32) {
    %c0_i32 = arith.constant 0 : i32
    %c0_i32_0 = arith.constant 0 : i32
    %c0_i32_1 = arith.constant 0 : i32
    return %c0_i32, %c0_i32_0 : i32, i32
  }
  func.func @transform_10(%arg0: i32) -> (i32, i32) {
    %c0_i32 = arith.constant 0 : i32
    %c0_i32_0 = arith.constant 0 : i32
    %c0_i32_1 = arith.constant 0 : i32
    return %c0_i32, %c0_i32_0 : i32, i32
  }
  func.func @transform_11(%arg0: i32) -> (i32, i32) {
    %c0_i32 = arith.constant 0 : i32
    %c0_i32_0 = arith.constant 0 : i32
    %c0_i32_1 = arith.constant 0 : i32
    return %c0_i32, %c0_i32_0 : i32, i32
  }
  func.func @transform_12(%arg0: i32) -> (i32, i32) {
    %c0_i32 = arith.constant 0 : i32
    %c0_i32_0 = arith.constant 0 : i32
    %c0_i32_1 = arith.constant 0 : i32
    return %c0_i32, %c0_i32_0 : i32, i32
  }
  func.func @transform_13(%arg0: i32) -> (i32, i32, i32) {
    %c0_i32 = arith.constant 0 : i32
    %c0_i32_0 = arith.constant 0 : i32
    %c0_i32_1 = arith.constant 0 : i32
    return %arg0, %c0_i32, %c0_i32_0 : i32, i32, i32
  }
}

module attributes {stable_mosaic.version = 11 : i64} {
  func.func @_bigru_kernel(%arg0: i32, %arg1: memref<2x8x96xf32, #tpu.memory_space<vmem>>, %arg2: memref<2x8x96xf32, #tpu.memory_space<vmem>>, %arg3: memref<64x192xf32, #tpu.memory_space<vmem>>, %arg4: memref<1x192xf32, #tpu.memory_space<vmem>>, %arg5: memref<2x8x64xf32, #tpu.memory_space<vmem>>, %arg6: memref<2x8x32xf32, #tpu.memory_space<vmem>>, %arg7: memref<2x8x32xf32, #tpu.memory_space<vmem>>) attributes {dimension_semantics = [#tpu.dimension_semantics<parallel>], iteration_bounds = array<i64: 1>, scalar_prefetch = 0 : i64, scratch_operands = 2 : i64, tpu.core_type = #tpu.core_type<tc>, window_params = [{transform_indices = @transform_0, window_bounds = array<i64: 2, 8, 96>}, {transform_indices = @transform_1, window_bounds = array<i64: 2, 8, 96>}, {pipeline_mode = #tpu.pipeline_mode<synchronous>, transform_indices = @transform_2, window_bounds = array<i64: 64, 192>}, {pipeline_mode = #tpu.pipeline_mode<synchronous>, transform_indices = @transform_3, window_bounds = array<i64: 1, 192>}, {transform_indices = @transform_4, window_bounds = array<i64: 2, 8, 64>}]} {
    %c0 = arith.constant 0 : index
    %c0_0 = arith.constant 0 : index
    %0 = vector.load %arg3[%c0, %c0_0] : memref<64x192xf32, #tpu.memory_space<vmem>>, vector<64x192xf32>
    %c0_1 = arith.constant 0 : index
    %c0_2 = arith.constant 0 : index
    %1 = vector.load %arg4[%c0_1, %c0_2] : memref<1x192xf32, #tpu.memory_space<vmem>>, vector<1x192xf32>
    %cst = arith.constant 0.000000e+00 : f32
    %2 = vector.broadcast %cst : f32 to vector<2x32xf32>
    %c0_i32 = arith.constant 0 : i32
    %c4_i32 = arith.constant 4 : i32
    %3 = arith.addi %c0_i32, %c4_i32 : i32
    %c1_i32 = arith.constant 1 : i32
    %4:2 = scf.for %arg8 = %c0_i32 to %3 step %c1_i32 iter_args(%arg9 = %2, %arg10 = %2) -> (vector<2x32xf32>, vector<2x32xf32>)  : i32 {
      %c2_i32 = arith.constant 2 : i32
      %9 = arith.muli %c2_i32, %arg8 : i32
      %10 = tpu.concatenate %arg9, %arg10 in 1 : vector<2x32xf32>, vector<2x32xf32> -> vector<2x64xf32>
      %cst_13 = arith.constant dense<0.000000e+00> : vector<2x192xf32>
      %11 = tpu.matmul %10, %0, %cst_13 {dimension_numbers = #tpu.dot_dimension_numbers<[1], [0], [0], [1], [0, 0, 1, 1], [], []>} : vector<2x64xf32>, vector<64x192xf32>, vector<2x192xf32> -> vector<2x192xf32>
      %12 = vector.broadcast %1 : vector<1x192xf32> to vector<2x192xf32>
      %13 = arith.addf %11, %12 : vector<2x192xf32>
      %14 = vector.extract_strided_slice %13 {offsets = [0, 0], sizes = [2, 96], strides = [1, 1]} : vector<2x192xf32> to vector<2x96xf32>
      %15 = vector.extract_strided_slice %13 {offsets = [0, 96], sizes = [2, 96], strides = [1, 1]} : vector<2x192xf32> to vector<2x96xf32>
      %c7_i32 = arith.constant 7 : i32
      %16 = arith.subi %c7_i32, %9 : i32
      %c0_14 = arith.constant 0 : index
      %17 = arith.index_cast %9 : i32 to index
      %c0_15 = arith.constant 0 : index
      %18 = vector.load %arg1[%c0_14, %17, %c0_15] : memref<2x8x96xf32, #tpu.memory_space<vmem>>, vector<2x1x96xf32>
      %19 = vector.shape_cast %18 : vector<2x1x96xf32> to vector<2x96xf32>
      %c0_16 = arith.constant 0 : index
      %20 = arith.index_cast %16 : i32 to index
      %c0_17 = arith.constant 0 : index
      %21 = vector.load %arg2[%c0_16, %20, %c0_17] : memref<2x8x96xf32, #tpu.memory_space<vmem>>, vector<2x1x96xf32>
      %22 = vector.shape_cast %21 : vector<2x1x96xf32> to vector<2x96xf32>
      %23 = vector.extract_strided_slice %19 {offsets = [0, 0], sizes = [2, 32], strides = [1, 1]} : vector<2x96xf32> to vector<2x32xf32>
      %24 = vector.extract_strided_slice %14 {offsets = [0, 0], sizes = [2, 32], strides = [1, 1]} : vector<2x96xf32> to vector<2x32xf32>
      %25 = arith.addf %23, %24 : vector<2x32xf32>
      %26 = arith.negf %25 : vector<2x32xf32>
      %27 = math.exp %26 : vector<2x32xf32>
      %cst_18 = arith.constant 1.000000e+00 : f32
      %28 = vector.broadcast %cst_18 : f32 to vector<2x32xf32>
      %29 = arith.addf %28, %27 : vector<2x32xf32>
      %30 = arith.divf %28, %29 : vector<2x32xf32>
      %31 = vector.extract_strided_slice %19 {offsets = [0, 32], sizes = [2, 32], strides = [1, 1]} : vector<2x96xf32> to vector<2x32xf32>
      %32 = vector.extract_strided_slice %14 {offsets = [0, 32], sizes = [2, 32], strides = [1, 1]} : vector<2x96xf32> to vector<2x32xf32>
      %33 = arith.addf %31, %32 : vector<2x32xf32>
      %34 = arith.negf %33 : vector<2x32xf32>
      %35 = math.exp %34 : vector<2x32xf32>
      %cst_19 = arith.constant 1.000000e+00 : f32
      %36 = vector.broadcast %cst_19 : f32 to vector<2x32xf32>
      %37 = arith.addf %36, %35 : vector<2x32xf32>
      %38 = arith.divf %36, %37 : vector<2x32xf32>
      %39 = vector.extract_strided_slice %19 {offsets = [0, 64], sizes = [2, 32], strides = [1, 1]} : vector<2x96xf32> to vector<2x32xf32>
      %40 = vector.extract_strided_slice %14 {offsets = [0, 64], sizes = [2, 32], strides = [1, 1]} : vector<2x96xf32> to vector<2x32xf32>
      %41 = arith.mulf %30, %40 : vector<2x32xf32>
      %42 = arith.addf %39, %41 : vector<2x32xf32>
      %43 = math.tanh %42 : vector<2x32xf32>
      %cst_20 = arith.constant 1.000000e+00 : f32
      %44 = vector.broadcast %cst_20 : f32 to vector<2x32xf32>
      %45 = arith.subf %44, %38 : vector<2x32xf32>
      %46 = arith.mulf %45, %43 : vector<2x32xf32>
      %47 = arith.mulf %38, %arg9 : vector<2x32xf32>
      %48 = arith.addf %46, %47 : vector<2x32xf32>
      %49 = vector.extract_strided_slice %22 {offsets = [0, 0], sizes = [2, 32], strides = [1, 1]} : vector<2x96xf32> to vector<2x32xf32>
      %50 = vector.extract_strided_slice %15 {offsets = [0, 0], sizes = [2, 32], strides = [1, 1]} : vector<2x96xf32> to vector<2x32xf32>
      %51 = arith.addf %49, %50 : vector<2x32xf32>
      %52 = arith.negf %51 : vector<2x32xf32>
      %53 = math.exp %52 : vector<2x32xf32>
      %cst_21 = arith.constant 1.000000e+00 : f32
      %54 = vector.broadcast %cst_21 : f32 to vector<2x32xf32>
      %55 = arith.addf %54, %53 : vector<2x32xf32>
      %56 = arith.divf %54, %55 : vector<2x32xf32>
      %57 = vector.extract_strided_slice %22 {offsets = [0, 32], sizes = [2, 32], strides = [1, 1]} : vector<2x96xf32> to vector<2x32xf32>
      %58 = vector.extract_strided_slice %15 {offsets = [0, 32], sizes = [2, 32], strides = [1, 1]} : vector<2x96xf32> to vector<2x32xf32>
      %59 = arith.addf %57, %58 : vector<2x32xf32>
      %60 = arith.negf %59 : vector<2x32xf32>
      %61 = math.exp %60 : vector<2x32xf32>
      %cst_22 = arith.constant 1.000000e+00 : f32
      %62 = vector.broadcast %cst_22 : f32 to vector<2x32xf32>
      %63 = arith.addf %62, %61 : vector<2x32xf32>
      %64 = arith.divf %62, %63 : vector<2x32xf32>
      %65 = vector.extract_strided_slice %22 {offsets = [0, 64], sizes = [2, 32], strides = [1, 1]} : vector<2x96xf32> to vector<2x32xf32>
      %66 = vector.extract_strided_slice %15 {offsets = [0, 64], sizes = [2, 32], strides = [1, 1]} : vector<2x96xf32> to vector<2x32xf32>
      %67 = arith.mulf %56, %66 : vector<2x32xf32>
      %68 = arith.addf %65, %67 : vector<2x32xf32>
      %69 = math.tanh %68 : vector<2x32xf32>
      %cst_23 = arith.constant 1.000000e+00 : f32
      %70 = vector.broadcast %cst_23 : f32 to vector<2x32xf32>
      %71 = arith.subf %70, %64 : vector<2x32xf32>
      %72 = arith.mulf %71, %69 : vector<2x32xf32>
      %73 = arith.mulf %64, %arg10 : vector<2x32xf32>
      %74 = arith.addf %72, %73 : vector<2x32xf32>
      %75 = vector.shape_cast %48 : vector<2x32xf32> to vector<2x1x32xf32>
      %c0_24 = arith.constant 0 : index
      %76 = arith.index_cast %9 : i32 to index
      %c0_25 = arith.constant 0 : index
      %77 = vector.load %arg6[%c0_24, %76, %c0_25] : memref<2x8x32xf32, #tpu.memory_space<vmem>>, vector<2x1x32xf32>
      tpu.vector_store %arg6[%c0_24, %76, %c0_25], %75 {strides = array<i32>} : memref<2x8x32xf32, #tpu.memory_space<vmem>>, vector<2x1x32xf32>,
      %78 = vector.shape_cast %74 : vector<2x32xf32> to vector<2x1x32xf32>
      %c0_26 = arith.constant 0 : index
      %79 = arith.index_cast %16 : i32 to index
      %c0_27 = arith.constant 0 : index
      %80 = vector.load %arg7[%c0_26, %79, %c0_27] : memref<2x8x32xf32, #tpu.memory_space<vmem>>, vector<2x1x32xf32>
      tpu.vector_store %arg7[%c0_26, %79, %c0_27], %78 {strides = array<i32>} : memref<2x8x32xf32, #tpu.memory_space<vmem>>, vector<2x1x32xf32>,
      %c2_i32_28 = arith.constant 2 : i32
      %81 = arith.muli %c2_i32_28, %arg8 : i32
      %c1_i32_29 = arith.constant 1 : i32
      %82 = arith.addi %81, %c1_i32_29 : i32
      %83 = tpu.concatenate %48, %74 in 1 : vector<2x32xf32>, vector<2x32xf32> -> vector<2x64xf32>
      %cst_30 = arith.constant dense<0.000000e+00> : vector<2x192xf32>
      %84 = tpu.matmul %83, %0, %cst_30 {dimension_numbers = #tpu.dot_dimension_numbers<[1], [0], [0], [1], [0, 0, 1, 1], [], []>} : vector<2x64xf32>, vector<64x192xf32>, vector<2x192xf32> -> vector<2x192xf32>
      %85 = vector.broadcast %1 : vector<1x192xf32> to vector<2x192xf32>
      %86 = arith.addf %84, %85 : vector<2x192xf32>
      %87 = vector.extract_strided_slice %86 {offsets = [0, 0], sizes = [2, 96], strides = [1, 1]} : vector<2x192xf32> to vector<2x96xf32>
      %88 = vector.extract_strided_slice %86 {offsets = [0, 96], sizes = [2, 96], strides = [1, 1]} : vector<2x192xf32> to vector<2x96xf32>
      %c7_i32_31 = arith.constant 7 : i32
      %89 = arith.subi %c7_i32_31, %82 : i32
      %c0_32 = arith.constant 0 : index
      %90 = arith.index_cast %82 : i32 to index
      %c0_33 = arith.constant 0 : index
      %91 = vector.load %arg1[%c0_32, %90, %c0_33] : memref<2x8x96xf32, #tpu.memory_space<vmem>>, vector<2x1x96xf32>
      %92 = vector.shape_cast %91 : vector<2x1x96xf32> to vector<2x96xf32>
      %c0_34 = arith.constant 0 : index
      %93 = arith.index_cast %89 : i32 to index
      %c0_35 = arith.constant 0 : index
      %94 = vector.load %arg2[%c0_34, %93, %c0_35] : memref<2x8x96xf32, #tpu.memory_space<vmem>>, vector<2x1x96xf32>
      %95 = vector.shape_cast %94 : vector<2x1x96xf32> to vector<2x96xf32>
      %96 = vector.extract_strided_slice %92 {offsets = [0, 0], sizes = [2, 32], strides = [1, 1]} : vector<2x96xf32> to vector<2x32xf32>
      %97 = vector.extract_strided_slice %87 {offsets = [0, 0], sizes = [2, 32], strides = [1, 1]} : vector<2x96xf32> to vector<2x32xf32>
      %98 = arith.addf %96, %97 : vector<2x32xf32>
      %99 = arith.negf %98 : vector<2x32xf32>
      %100 = math.exp %99 : vector<2x32xf32>
      %cst_36 = arith.constant 1.000000e+00 : f32
      %101 = vector.broadcast %cst_36 : f32 to vector<2x32xf32>
      %102 = arith.addf %101, %100 : vector<2x32xf32>
      %103 = arith.divf %101, %102 : vector<2x32xf32>
      %104 = vector.extract_strided_slice %92 {offsets = [0, 32], sizes = [2, 32], strides = [1, 1]} : vector<2x96xf32> to vector<2x32xf32>
      %105 = vector.extract_strided_slice %87 {offsets = [0, 32], sizes = [2, 32], strides = [1, 1]} : vector<2x96xf32> to vector<2x32xf32>
      %106 = arith.addf %104, %105 : vector<2x32xf32>
      %107 = arith.negf %106 : vector<2x32xf32>
      %108 = math.exp %107 : vector<2x32xf32>
      %cst_37 = arith.constant 1.000000e+00 : f32
      %109 = vector.broadcast %cst_37 : f32 to vector<2x32xf32>
      %110 = arith.addf %109, %108 : vector<2x32xf32>
      %111 = arith.divf %109, %110 : vector<2x32xf32>
      %112 = vector.extract_strided_slice %92 {offsets = [0, 64], sizes = [2, 32], strides = [1, 1]} : vector<2x96xf32> to vector<2x32xf32>
      %113 = vector.extract_strided_slice %87 {offsets = [0, 64], sizes = [2, 32], strides = [1, 1]} : vector<2x96xf32> to vector<2x32xf32>
      %114 = arith.mulf %103, %113 : vector<2x32xf32>
      %115 = arith.addf %112, %114 : vector<2x32xf32>
      %116 = math.tanh %115 : vector<2x32xf32>
      %cst_38 = arith.constant 1.000000e+00 : f32
      %117 = vector.broadcast %cst_38 : f32 to vector<2x32xf32>
      %118 = arith.subf %117, %111 : vector<2x32xf32>
      %119 = arith.mulf %118, %116 : vector<2x32xf32>
      %120 = arith.mulf %111, %48 : vector<2x32xf32>
      %121 = arith.addf %119, %120 : vector<2x32xf32>
      %122 = vector.extract_strided_slice %95 {offsets = [0, 0], sizes = [2, 32], strides = [1, 1]} : vector<2x96xf32> to vector<2x32xf32>
      %123 = vector.extract_strided_slice %88 {offsets = [0, 0], sizes = [2, 32], strides = [1, 1]} : vector<2x96xf32> to vector<2x32xf32>
      %124 = arith.addf %122, %123 : vector<2x32xf32>
      %125 = arith.negf %124 : vector<2x32xf32>
      %126 = math.exp %125 : vector<2x32xf32>
      %cst_39 = arith.constant 1.000000e+00 : f32
      %127 = vector.broadcast %cst_39 : f32 to vector<2x32xf32>
      %128 = arith.addf %127, %126 : vector<2x32xf32>
      %129 = arith.divf %127, %128 : vector<2x32xf32>
      %130 = vector.extract_strided_slice %95 {offsets = [0, 32], sizes = [2, 32], strides = [1, 1]} : vector<2x96xf32> to vector<2x32xf32>
      %131 = vector.extract_strided_slice %88 {offsets = [0, 32], sizes = [2, 32], strides = [1, 1]} : vector<2x96xf32> to vector<2x32xf32>
      %132 = arith.addf %130, %131 : vector<2x32xf32>
      %133 = arith.negf %132 : vector<2x32xf32>
      %134 = math.exp %133 : vector<2x32xf32>
      %cst_40 = arith.constant 1.000000e+00 : f32
      %135 = vector.broadcast %cst_40 : f32 to vector<2x32xf32>
      %136 = arith.addf %135, %134 : vector<2x32xf32>
      %137 = arith.divf %135, %136 : vector<2x32xf32>
      %138 = vector.extract_strided_slice %95 {offsets = [0, 64], sizes = [2, 32], strides = [1, 1]} : vector<2x96xf32> to vector<2x32xf32>
      %139 = vector.extract_strided_slice %88 {offsets = [0, 64], sizes = [2, 32], strides = [1, 1]} : vector<2x96xf32> to vector<2x32xf32>
      %140 = arith.mulf %129, %139 : vector<2x32xf32>
      %141 = arith.addf %138, %140 : vector<2x32xf32>
      %142 = math.tanh %141 : vector<2x32xf32>
      %cst_41 = arith.constant 1.000000e+00 : f32
      %143 = vector.broadcast %cst_41 : f32 to vector<2x32xf32>
      %144 = arith.subf %143, %137 : vector<2x32xf32>
      %145 = arith.mulf %144, %142 : vector<2x32xf32>
      %146 = arith.mulf %137, %74 : vector<2x32xf32>
      %147 = arith.addf %145, %146 : vector<2x32xf32>
      %148 = vector.shape_cast %121 : vector<2x32xf32> to vector<2x1x32xf32>
      %c0_42 = arith.constant 0 : index
      %149 = arith.index_cast %82 : i32 to index
      %c0_43 = arith.constant 0 : index
      %150 = vector.load %arg6[%c0_42, %149, %c0_43] : memref<2x8x32xf32, #tpu.memory_space<vmem>>, vector<2x1x32xf32>
      tpu.vector_store %arg6[%c0_42, %149, %c0_43], %148 {strides = array<i32>} : memref<2x8x32xf32, #tpu.memory_space<vmem>>, vector<2x1x32xf32>,
      %151 = vector.shape_cast %147 : vector<2x32xf32> to vector<2x1x32xf32>
      %c0_44 = arith.constant 0 : index
      %152 = arith.index_cast %89 : i32 to index
      %c0_45 = arith.constant 0 : index
      %153 = vector.load %arg7[%c0_44, %152, %c0_45] : memref<2x8x32xf32, #tpu.memory_space<vmem>>, vector<2x1x32xf32>
      tpu.vector_store %arg7[%c0_44, %152, %c0_45], %151 {strides = array<i32>} : memref<2x8x32xf32, #tpu.memory_space<vmem>>, vector<2x1x32xf32>,
      scf.yield %121, %147 : vector<2x32xf32>, vector<2x32xf32>
    }
    %c4_i32_3 = arith.constant 4 : i32
    %c0_4 = arith.constant 0 : index
    %c0_5 = arith.constant 0 : index
    %c0_6 = arith.constant 0 : index
    %5 = vector.load %arg6[%c0_4, %c0_5, %c0_6] : memref<2x8x32xf32, #tpu.memory_space<vmem>>, vector<2x8x32xf32>
    %c0_7 = arith.constant 0 : index
    %c0_8 = arith.constant 0 : index
    %c0_9 = arith.constant 0 : index
    %6 = vector.load %arg7[%c0_7, %c0_8, %c0_9] : memref<2x8x32xf32, #tpu.memory_space<vmem>>, vector<2x8x32xf32>
    %7 = tpu.concatenate %5, %6 in 2 : vector<2x8x32xf32>, vector<2x8x32xf32> -> vector<2x8x64xf32>
    %c0_10 = arith.constant 0 : index
    %c0_11 = arith.constant 0 : index
    %c0_12 = arith.constant 0 : index
    %8 = vector.load %arg5[%c0_10, %c0_11, %c0_12] : memref<2x8x64xf32, #tpu.memory_space<vmem>>, vector<2x8x64xf32>
    tpu.vector_store %arg5[%c0_10, %c0_11, %c0_12], %7 {strides = array<i32>} : memref<2x8x64xf32, #tpu.memory_space<vmem>>, vector<2x8x64xf32>,
    return
  }
  func.func @transform_0(%arg0: i32) -> (i32, i32, i32) {
    %c0_i32 = arith.constant 0 : i32
    %c0_i32_0 = arith.constant 0 : i32
    %c0_i32_1 = arith.constant 0 : i32
    return %arg0, %c0_i32, %c0_i32_0 : i32, i32, i32
  }
  func.func @transform_1(%arg0: i32) -> (i32, i32, i32) {
    %c0_i32 = arith.constant 0 : i32
    %c0_i32_0 = arith.constant 0 : i32
    %c0_i32_1 = arith.constant 0 : i32
    return %arg0, %c0_i32, %c0_i32_0 : i32, i32, i32
  }
  func.func @transform_2(%arg0: i32) -> (i32, i32) {
    %c0_i32 = arith.constant 0 : i32
    %c0_i32_0 = arith.constant 0 : i32
    %c0_i32_1 = arith.constant 0 : i32
    return %c0_i32, %c0_i32_0 : i32, i32
  }
  func.func @transform_3(%arg0: i32) -> (i32, i32) {
    %c0_i32 = arith.constant 0 : i32
    %c0_i32_0 = arith.constant 0 : i32
    %c0_i32_1 = arith.constant 0 : i32
    return %c0_i32, %c0_i32_0 : i32, i32
  }
  func.func @transform_4(%arg0: i32) -> (i32, i32, i32) {
    %c0_i32 = arith.constant 0 : i32
    %c0_i32_0 = arith.constant 0 : i32
    %c0_i32_1 = arith.constant 0 : i32
    return %arg0, %c0_i32, %c0_i32_0 : i32, i32, i32
  }
}

</mosaic_0001>

<bundles_post_ra>
// kernel: _lambda_.3
= control target key start
LH: loop header
LB: loop body
LE: loop exit
PB: predicated region body
PF: predicated region fallthrough
CT: control target
= control target key end

     0   :  { %v2366_v3 = vmov 0.0   ;;  %vm124_vm0 = vcmask 261120   ;;  %vm1058_vm1 = vcmask 785408   ;;  %s3708_s1 = inlined_call_operand.vmem [shape: f32[32,1280], index: 1, kind: input, shape index: {}]   ;;  %s3709_s0 = inlined_call_operand.vmem [shape: f32[16,32], index: 0, kind: input, shape index: {}]   ;;  %s3710_s3 = inlined_call_operand.vmem [shape: f32[1280,96], index: 3, kind: input, shape index: {}]   ;;  %s3711_s2 = inlined_call_operand.vmem [shape: f32[1,1280], index: 2, kind: input, shape index: {}]   ;;  %s3712_s5 = inlined_call_operand.vmem [shape: f32[1280,96], index: 5, kind: input, shape index: {}]   ;;  %s3713_s4 = inlined_call_operand.vmem [shape: f32[1,96], index: 4, kind: input, shape index: {}]   ;;  %s3714_s7 = inlined_call_operand.vmem [shape: f32[16,96], index: 7, kind: output, shape index: {0}]   ;;  %s3715_s6 = inlined_call_operand.vmem [shape: f32[1,96], index: 6, kind: input, shape index: {}]   ;;  %s3716_s8 = inlined_call_operand.vmem [shape: f32[16,96], index: 8, kind: output, shape index: {1}]  }
   0x1   :  { %v31_v0 = vld [vmem:[%s3708_s1 + $0x8] sm:$0xff]  ;;  %v41_v1 = vld [vmem:[%s3708_s1 + $0x58] sm:$0xff]  ;;  %195 = vmatprep.mubr.f32.mxu0 %v2366_v3  ;;  %272 = vmatprep.mubr.f32.mxu1 %v2366_v3  ;;  %v30_v6 = vld [vmem:[%s3708_s1] sm:$0xff] }
   0x2   :  { %v33_v2 = vld [vmem:[%s3708_s1 + $0x18] sm:$0xff]  ;;  %v2005_v4 = vpack.c.bf16 %v41_v1, %v31_v0  ;;  %v43_v5 = vld [vmem:[%s3708_s1 + $0x68] sm:$0xff]  ;;  %v40_v7 = vld [vmem:[%s3708_s1 + $0x50] sm:$0xff] }
   0x3   :  { %v2013_v8 = vpack.c.bf16 %v43_v5, %v33_v2  ;;  %v2007_v9 = vpack.c.bf16 %v40_v7, %v30_v6  ;;  %v32_v10 = vld [vmem:[%s3708_s1 + $0x10] sm:$0xff]  ;;  %v42_v11 = vld [vmem:[%s3708_s1 + $0x60] sm:$0xff]  ;;  %v51_v12 = vld [vmem:[%s3708_s1 + $0xa8] sm:$0xff] }
   0x4   :  { %2006 = vmatprep.subr.bf16.mxu0 %v2005_v4  ;;  %v2015_v13 = vpack.c.bf16 %v42_v11, %v32_v10  ;;  %v61_v14 = vld [vmem:[%s3708_s1 + $0xf8] sm:$0xff]  ;;  %v63_v16 = vld [vmem:[%s3708_s1 + $0x108] sm:$0xff]  ;;  %v50_v19 = vld [vmem:[%s3708_s1 + $0xa0] sm:$0xff] }
   0x5   :  { %v53_v15 = vld [vmem:[%s3708_s1 + $0xb8] sm:$0xff]  ;;  %2014 = vmatprep.subr.bf16.mxu1 %v2013_v8  ;;  %2008 = vmatpush1.bf16.msra.mxu0 %v2007_v9  ;;  %v2009_v17 = vpack.c.bf16 %v61_v14, %v51_v12  ;;  %v60_v20 = vld [vmem:[%s3708_s1 + $0xf0] sm:$0xff]  ;;  %v62_v23 = vld [vmem:[%s3708_s1 + $0x100] sm:$0xff] }
   0x6   :  { %v2017_v18 = vpack.c.bf16 %v63_v16, %v53_v15  ;;  %v52_v21 = vld [vmem:[%s3708_s1 + $0xb0] sm:$0xff]  ;;  %2016 = vmatpush1.bf16.msra.mxu1 %v2015_v13  ;;  %v2011_v22 = vpack.c.bf16 %v60_v20, %v50_v19  ;;  %v35_v24 = vld [vmem:[%s3708_s1 + $0x28] sm:$0xff]  ;;  %v45_v26 = vld [vmem:[%s3708_s1 + $0x78] sm:$0xff] }
   0x7   :  { %2010 = vmatprep.subr.bf16.mxu0 %v2009_v17  ;;  %v2019_v25 = vpack.c.bf16 %v62_v23, %v52_v21  ;;  %v37_v27 = vld [vmem:[%s3708_s1 + $0x38] sm:$0xff]  ;;  %v47_v28 = vld [vmem:[%s3708_s1 + $0x88] sm:$0xff]  ;;  %v2021_v29 = vpack.c.bf16 %v45_v26, %v35_v24  ;;  %v34_v31 = vld [vmem:[%s3708_s1 + $0x20] sm:$0xff] }
   0x8   :  { %2018 = vmatprep.subr.bf16.mxu1 %v2017_v18  ;;  %v2029_v30 = vpack.c.bf16 %v47_v28, %v37_v27  ;;  %v44_v32 = vld [vmem:[%s3708_s1 + $0x70] sm:$0xff]  ;;  %v2486_v34 = vld [vmem:[%s3709_s0] sm:$0xff]  ;;  %v55_v36 = vld [vmem:[%s3708_s1 + $0xc8] sm:$0xff] }
   0x9   :  { %v36_v33 = vld [vmem:[%s3708_s1 + $0x30] sm:$0xff]  ;;  %2012 = vmatpush1.bf16.msra.mxu0 %v2011_v22  ;;  %v46_v35 = vld [vmem:[%s3708_s1 + $0x80] sm:$0xff]  ;;  %v2023_v37 = vpack.c.bf16 %v44_v32, %v34_v31  ;;  %v65_v39 = vld [vmem:[%s3708_s1 + $0x118] sm:$0xff] }
   0xa   :  { %2020 = vmatpush1.bf16.msra.mxu1 %v2019_v25  ;;  %2022 = vmatprep.subr.bf16.mxu0 %v2021_v29  ;;  %v2031_v38 = vpack.c.bf16 %v46_v35, %v36_v33  ;;  %v57_v40 = vld [vmem:[%s3708_s1 + $0xd8] sm:$0xff]  ;;  %v67_v41 = vld [vmem:[%s3708_s1 + $0x128] sm:$0xff]  ;;  %v2025_v42 = vpack.c.bf16 %v65_v39, %v55_v36  ;;  %v54_v43 = vld [vmem:[%s3708_s1 + $0xc0] sm:$0xff] }
   0xb   :  { %2030 = vmatprep.subr.bf16.mxu1 %v2029_v30  ;;  %v64_v44 = vld [vmem:[%s3708_s1 + $0x110] sm:$0xff]  ;;  %v2033_v46 = vpack.c.bf16 %v67_v41, %v57_v40  ;;  %v66_v47 = vld [vmem:[%s3708_s1 + $0x120] sm:$0xff]  ;;  %v39_v48 = vld [vmem:[%s3708_s1 + $0x48] sm:$0xff] }
   0xc   :  { %v56_v45 = vld [vmem:[%s3708_s1 + $0xd0] sm:$0xff]  ;;  %1613 = vmatmul.mubr.msk.f32.vlgmr.msra.gmra.mrb[0].mxu0 %vm124_vm0, %v2486_v34  ;;  %v49_v49 = vld [vmem:[%s3708_s1 + $0x98] sm:$0xff]  ;;  %v2529_v50 = vld [vmem:[%s3709_s0 + $0x8] sm:$0xff]  ;;  %v2027_v51 = vpack.c.bf16 %v64_v44, %v54_v43 }
   0xd   :  { %1615 = vmatmul.mubr.msk.f32.vlgmr.msra.gmra.mrb[0].mxu1 %vm124_vm0, %v2486_v34  ;;  %201 = vmatprep.mubr.f32.mxu0 %v2366_v3  ;;  %v2035_v52 = vpack.c.bf16 %v66_v47, %v56_v45  ;;  %v2037_v53 = vpack.c.bf16 %v49_v49, %v39_v48  ;;  %v38_v54 = vld [vmem:[%s3708_s1 + $0x40] sm:$0xff]  ;;  %v533_v56 = vld [vmem:[%s3710_s3 + $0x88] sm:$0xff]  ;;  %v48_v57 = vld [vmem:[%s3708_s1 + $0x90] sm:$0xff] }
   0xe   :  { %2024 = vmatpush1.bf16.msra.mxu0 %v2023_v37  ;;  %2032 = vmatpush1.bf16.msra.mxu1 %v2031_v38  ;;  %v532_v55 = vld [vmem:[%s3710_s3 + $0x80] sm:$0xff]  ;;  %v517_v60 = vld [vmem:[%s3710_s3 + $0x8] sm:$0xff]  ;;  %v69_v62 = vld [vmem:[%s3708_s1 + $0x138] sm:$0xff]  ;;  %v2039_v1 = vpack.c.bf16 %v48_v57, %v38_v54 }
   0xf   :  { %278 = vmatprep.mubr.f32.mxu1 %v2366_v3  ;;  %2026 = vmatprep.subr.bf16.mxu0 %v2025_v42  ;;  %v2045_v58 = vpack.c.bf16 %v533_v56, %v532_v55  ;;  %v516_v59 = vld [vmem:[%s3710_s3] sm:$0xff]  ;;  %v59_v61 = vld [vmem:[%s3708_s1 + $0xe8] sm:$0xff]  ;;  %v534_v63 = vld [vmem:[%s3710_s3 + $0x90] sm:$0xff] }
  0x10   :  { %1614 = vmatmul.mubr.msk.f32.gmra.mrb[2].mxu0 %vm124_vm0, %v2529_v50  ;;  %2034 = vmatprep.subr.bf16.mxu1 %v2033_v46  ;;  %v535_v0 = vld [vmem:[%s3710_s3 + $0x98] sm:$0xff]  ;;  %v58_v2 = vld [vmem:[%s3708_s1 + $0xe0] sm:$0xff]  ;;  %v68_v4 = vld [vmem:[%s3708_s1 + $0x130] sm:$0xff]  ;;  %v2047_v5 = vpack.c.bf16 %v517_v60, %v516_v59  ;;  %v2041_v6 = vpack.c.bf16 %v69_v62, %v59_v61 }
  0x11   :  { %1616 = vmatmul.mubr.msk.f32.gmra.mrb[2].mxu1 %vm124_vm0, %v2529_v50  ;;  %349 = vmatprep.mubr.f32.mxu0 %v2366_v3  ;;  %v564_v7 = vld [vmem:[%s3710_s3 + $0x180] sm:$0xff]  ;;  %v2049_v8 = vpack.c.bf16 %v535_v0, %v534_v63  ;;  %v518_v9 = vld [vmem:[%s3710_s3 + $0x10] sm:$0xff]  ;;  %v519_v10 = vld [vmem:[%s3710_s3 + $0x18] sm:$0xff]  ;;  %v2043_v14 = vpack.c.bf16 %v68_v4, %v58_v2 }
  0x12   :  { %2028 = vmatpush1.bf16.msra.mxu0 %v2027_v51  ;;  %2036 = vmatpush1.bf16.msra.mxu1 %v2035_v52  ;;  %v565_v11 = vld [vmem:[%s3710_s3 + $0x188] sm:$0xff]  ;;  %v536_v12 = vld [vmem:[%s3710_s3 + $0xa0] sm:$0xff]  ;;  %v2051_v15 = vpack.c.bf16 %v519_v10, %v518_v9  ;;  %v566_v19 = vld [vmem:[%s3710_s3 + $0x190] sm:$0xff] }
  0x13   :  { %426 = vmatprep.mubr.f32.mxu1 %v2366_v3  ;;  %2038 = vmatprep.subr.bf16.mxu0 %v2037_v53  ;;  %v537_v13 = vld [vmem:[%s3710_s3 + $0xa8] sm:$0xff]  ;;  %v2077_v16 = vpack.c.bf16 %v565_v11, %v564_v7  ;;  %v548_v17 = vld [vmem:[%s3710_s3 + $0x100] sm:$0xff]  ;;  %v567_v21 = vld [vmem:[%s3710_s3 + $0x198] sm:$0xff] }
  0x14   :  { %2046 = vmatprep.subr.bf16.mxu1 %v2045_v58  ;;  %v549_v18 = vld [vmem:[%s3710_s3 + $0x108] sm:$0xff]  ;;  %v2053_v20 = vpack.c.bf16 %v537_v13, %v536_v12  ;;  %v520_v22 = vld [vmem:[%s3710_s3 + $0x20] sm:$0xff]  ;;  %v538_v24 = vld [vmem:[%s3710_s3 + $0xb0] sm:$0xff]  ;;  %v2081_v27 = vpack.c.bf16 %v567_v21, %v566_v19 }
  0x15   :  { %1617 = vmatmul.mubr.msk.f32.vlgmr.msra.gmra.mrb[4].mxu0 %vm124_vm0, %v2486_v34  ;;  %1619 = vmatmul.mubr.msk.f32.vlgmr.msra.gmra.mrb[4].mxu1 %vm124_vm0, %v2486_v34  ;;  %v521_v23 = vld [vmem:[%s3710_s3 + $0x28] sm:$0xff]  ;;  %v539_v25 = vld [vmem:[%s3710_s3 + $0xb8] sm:$0xff]  ;;  %v2079_v26 = vpack.c.bf16 %v549_v18, %v548_v17  ;;  %v550_v28 = vld [vmem:[%s3710_s3 + $0x110] sm:$0xff] }
  0x16   :  { %355 = vmatprep.mubr.f32.mxu0 %v2366_v3  ;;  %432 = vmatprep.mubr.f32.mxu1 %v2366_v3  ;;  %v551_v29 = vld [vmem:[%s3710_s3 + $0x118] sm:$0xff]  ;;  %v568_v30 = vld [vmem:[%s3710_s3 + $0x1a0] sm:$0xff]  ;;  %v2055_v31 = vpack.c.bf16 %v521_v23, %v520_v22  ;;  %v569_v32 = vld [vmem:[%s3710_s3 + $0x1a8] sm:$0xff]  ;;  %v2057_v33 = vpack.c.bf16 %v539_v25, %v538_v24 }
  0x17   :  { %2040 = vmatpush1.bf16.msra.mxu0 %v2039_v1  ;;  %2048 = vmatpush3.bf16.msra.mxu1 %v2047_v5  ;;  %v522_v35 = vld [vmem:[%s3710_s3 + $0x30] sm:$0xff]  ;;  %v523_v36 = vld [vmem:[%s3710_s3 + $0x38] sm:$0xff]  ;;  %v540_v37 = vld [vmem:[%s3710_s3 + $0xc0] sm:$0xff]  ;;  %v2083_v39 = vpack.c.bf16 %v551_v29, %v550_v28  ;;  %v2085_v40 = vpack.c.bf16 %v569_v32, %v568_v30 }
  0x18   :  { %2042 = vmatprep.subr.bf16.mxu0 %v2041_v6  ;;  %2050 = vmatprep.subr.bf16.mxu1 %v2049_v8  ;;  %v541_v38 = vld [vmem:[%s3710_s3 + $0xc8] sm:$0xff]  ;;  %v552_v41 = vld [vmem:[%s3710_s3 + $0x120] sm:$0xff]  ;;  %v570_v42 = vld [vmem:[%s3710_s3 + $0x1b0] sm:$0xff]  ;;  %v2059_v43 = vpack.c.bf16 %v523_v36, %v522_v35 }
  0x19   :  { %1618 = vmatmul.mubr.msk.f32.gmra.mrb[6].mxu0 %vm124_vm0, %v2529_v50  ;;  %1620 = vmatmul.mubr.msk.f32.gmra.mrb[6].mxu1 %vm124_vm0, %v2529_v50  ;;  %v2061_v44 = vpack.c.bf16 %v541_v38, %v540_v37  ;;  %v524_v45 = vld [vmem:[%s3710_s3 + $0x40] sm:$0xff]  ;;  %v525_v46 = vld [vmem:[%s3710_s3 + $0x48] sm:$0xff]  ;;  %v542_v47 = vld [vmem:[%s3710_s3 + $0xd0] sm:$0xff] }
  0x1a   :  { %503 = vmatprep.mubr.f32.mxu0 %v2366_v3  ;;  %v543_v48 = vld [vmem:[%s3710_s3 + $0xd8] sm:$0xff]  ;;  %v554_v52 = vld [vmem:[%s3710_s3 + $0x130] sm:$0xff]  ;;  %v572_v53 = vld [vmem:[%s3710_s3 + $0x1c0] sm:$0xff]  ;;  %v2063_v54 = vpack.c.bf16 %v525_v46, %v524_v45 }
  0x1b   :  { %2044 = vmatpush1.bf16.msra.mxu0 %v2043_v14  ;;  %2052 = vmatpush3.bf16.msra.mxu1 %v2051_v15  ;;  %v573_v55 = vld [vmem:[%s3710_s3 + $0x1c8] sm:$0xff]  ;;  %v2065_v56 = vpack.c.bf16 %v543_v48, %v542_v47  ;;  %v526_v57 = vld [vmem:[%s3710_s3 + $0x50] sm:$0xff]  ;;  %v527_v58 = vld [vmem:[%s3710_s3 + $0x58] sm:$0xff] }
  0x1c   :  { %2078 = vmatprep.subr.bf16.mxu0 %v2077_v16  ;;  %2054 = vmatprep.subr.bf16.mxu1 %v2053_v20  ;;  %v544_v59 = vld [vmem:[%s3710_s3 + $0xe0] sm:$0xff]  ;;  %v545_v60 = vld [vmem:[%s3710_s3 + $0xe8] sm:$0xff]  ;;  %v2093_v62 = vpack.c.bf16 %v573_v55, %v572_v53  ;;  %v574_v1 = vld [vmem:[%s3710_s3 + $0x1d0] sm:$0xff]  ;;  %v2067_v2 = vpack.c.bf16 %v527_v58, %v526_v57 }
  0x1d   :  { %v556_v63 = vld [vmem:[%s3710_s3 + $0x140] sm:$0xff]  ;;  %v557_v0 = vld [vmem:[%s3710_s3 + $0x148] sm:$0xff]  ;;  %v575_v4 = vld [vmem:[%s3710_s3 + $0x1d8] sm:$0xff]  ;;  %v2069_v5 = vpack.c.bf16 %v545_v60, %v544_v59 }
  0x1e   :  { %1621 = vmatmul.mubr.msk.f32.vlgmr.msra.gmra.mrb[8].mxu0 %vm124_vm0, %v2486_v34  ;;  %v553_v34 = vld [vmem:[%s3710_s3 + $0x128] sm:$0xff]  ;;  %v528_v6 = vld [vmem:[%s3710_s3 + $0x60] sm:$0xff]  ;;  %v2095_v8 = vpack.c.bf16 %v557_v0, %v556_v63  ;;  %v2097_v9 = vpack.c.bf16 %v575_v4, %v574_v1  ;;  %v558_v10 = vld [vmem:[%s3710_s3 + $0x150] sm:$0xff] }
  0x1f   :  { %509 = vmatprep.mubr.f32.mxu0 %v2366_v3  ;;  %2080 = vmatpush3.bf16.msra.mxu0 %v2079_v26  ;;  %v571_v3 = vld [vmem:[%s3710_s3 + $0x1b8] sm:$0xff]  ;;  %v2087_v49 = vpack.c.bf16 %v553_v34, %v552_v41  ;;  %v529_v7 = vld [vmem:[%s3710_s3 + $0x68] sm:$0xff]  ;;  %v576_v13 = vld [vmem:[%s3710_s3 + $0x1e0] sm:$0xff] }
  0x20   :  { %2082 = vmatprep.subr.bf16.mxu0 %v2081_v27  ;;  %2056 = vmatpush3.bf16.msra.mxu1 %v2055_v31  ;;  %v2089_v51 = vpack.c.bf16 %v571_v3, %v570_v42  ;;  %v559_v11 = vld [vmem:[%s3710_s3 + $0x158] sm:$0xff]  ;;  %v2071_v12 = vpack.c.bf16 %v529_v7, %v528_v6  ;;  %v577_v14 = vld [vmem:[%s3710_s3 + $0x1e8] sm:$0xff]  ;;  %v560_v17 = vld [vmem:[%s3710_s3 + $0x160] sm:$0xff] }
  0x21   :  { %2058 = vmatprep.subr.bf16.mxu1 %v2057_v33  ;;  %v2099_v15 = vpack.c.bf16 %v559_v11, %v558_v10  ;;  %v2101_v16 = vpack.c.bf16 %v577_v14, %v576_v13  ;;  %v561_v18 = vld [vmem:[%s3710_s3 + $0x168] sm:$0xff]  ;;  %v546_v20 = vld [vmem:[%s3710_s3 + $0xf0] sm:$0xff]  ;;  %v547_v21 = vld [vmem:[%s3710_s3 + $0xf8] sm:$0xff] }
  0x22   :  { %1622 = vmatmul.mubr.msk.f32.gmra.mrb[10].mxu0 %vm124_vm0, %v2529_v50  ;;  %v555_v50 = vld [vmem:[%s3710_s3 + $0x138] sm:$0xff]  ;;  %v2103_v19 = vpack.c.bf16 %v561_v18, %v560_v17  ;;  %v578_v22 = vld [vmem:[%s3710_s3 + $0x1f0] sm:$0xff]  ;;  %v2073_v23 = vpack.c.bf16 %v547_v21, %v546_v20  ;;  %v596_v32 = vld [vmem:[%s3710_s3 + $0x280] sm:$0xff] }
  0x23   :  { %2084 = vmatpush3.bf16.msra.mxu0 %v2083_v39  ;;  %v2091_v61 = vpack.c.bf16 %v555_v50, %v554_v52  ;;  %v579_v24 = vld [vmem:[%s3710_s3 + $0x1f8] sm:$0xff]  ;;  %v530_v25 = vld [vmem:[%s3710_s3 + $0x70] sm:$0xff]  ;;  %v597_v33 = vld [vmem:[%s3710_s3 + $0x288] sm:$0xff]  ;;  %v74_v39 = vlaneseq }
  0x24   :  { %2086 = vmatprep.subr.bf16.mxu0 %v2085_v40  ;;  %2060 = vmatpush3.bf16.msra.mxu1 %v2059_v43  ;;  %v531_v26 = vld [vmem:[%s3710_s3 + $0x78] sm:$0xff]  ;;  %v2105_v27 = vpack.c.bf16 %v579_v24, %v578_v22  ;;  %v562_v29 = vld [vmem:[%s3710_s3 + $0x170] sm:$0xff]  ;;  %v628_v35 = vld [vmem:[%s3710_s3 + $0x380] sm:$0xff]  ;;  %v2109_v36 = vpack.c.bf16 %v597_v33, %v596_v32 }
  0x25   :  { %2062 = vmatprep.subr.bf16.mxu1 %v2061_v44  ;;  %v2075_v28 = vpack.c.bf16 %v531_v26, %v530_v25  ;;  %v563_v30 = vld [vmem:[%s3710_s3 + $0x178] sm:$0xff]  ;;  %v629_v37 = vld [vmem:[%s3710_s3 + $0x388] sm:$0xff]  ;;  %v2776_v40 = vshrl.u32 %v74_v39, 7  ;;  %v2783_v42 = vld [vmem:[%s3711_s2] sm:$0xff] }
  0x26   :  { %v2107_v31 = vpack.c.bf16 %v563_v30, %v562_v29  ;;  %v2141_v38 = vpack.c.bf16 %v629_v37, %v628_v35  ;;  %v580_v46 = vld [vmem:[%s3710_s3 + $0x200] sm:$0xff]  ;;  %v581_v47 = vld [vmem:[%s3710_s3 + $0x208] sm:$0xff]  ;;  %v598_v50 = vld [vmem:[%s3710_s3 + $0x290] sm:$0xff] }
  0x27   :  { %2088 = vmatpush3.bf16.msra.mxu0 %v2087_v49  ;;  %v84_v41 = vsub.s32 2, %v2776_v40  ;;  %v80_v34 = vsub.s32 1, %v2776_v40  ;;  %v76_v43 = vsub.s32 0, %v2776_v40  ;;  %v88_v3 = vsub.s32 3, %v2776_v40  ;;  %v612_v48 = vld [vmem:[%s3710_s3 + $0x300] sm:$0xff]  ;;  %v613_v52 = vld [vmem:[%s3710_s3 + $0x308] sm:$0xff] }
  0x28   :  { %2090 = vmatprep.subr.bf16.mxu0 %v2089_v51  ;;  %2064 = vmatpush3.bf16.msra.mxu1 %v2063_v54  ;;  %v599_v53 = vld [vmem:[%s3710_s3 + $0x298] sm:$0xff]  ;;  %v2111_v57 = vpack.c.bf16 %v581_v47, %v580_v46  ;;  %v630_v58 = vld [vmem:[%s3710_s3 + $0x390] sm:$0xff]  ;;  %v2143_v0 = vpack.c.bf16 %v613_v52, %v612_v48  ;;  %v96_v10 = vsub.s32 5, %v2776_v40  ;;  %v104_v11 = vsub.s32 7, %v2776_v40  ;;  %v633_v17 = vld [vmem:[%s3710_s3 + $0x3a8] sm:$0xff] }
  0x29   :  { %2066 = vmatprep.subr.bf16.mxu1 %v2065_v56  ;;  %v85_v44 = vrot.slane %v2783_v42, %v84_v41  ;;  %v81_v45 = vrot.slane %v2783_v42, %v80_v34  ;;  %v77_v49 = vrot.slane %v2783_v42, %v76_v43  ;;  %v89_v51 = vrot.slane %v2783_v42, %v88_v3  ;;  %v631_v59 = vld [vmem:[%s3710_s3 + $0x398] sm:$0xff]  ;;  %v582_v60 = vld [vmem:[%s3710_s3 + $0x210] sm:$0xff]  ;;  %v584_v22 = vld [vmem:[%s3710_s3 + $0x220] sm:$0xff] }
  0x2a   :  { %v2113_v1 = vpack.c.bf16 %v599_v53, %v598_v50  ;;  %v614_v4 = vld [vmem:[%s3710_s3 + $0x310] sm:$0xff]  ;;  %v585_v26 = vld [vmem:[%s3710_s3 + $0x228] sm:$0xff]  ;;  %v2878_v30 = vrot.slane %v2783_v42, %v96_v10  ;;  %v603_v35 = vld [vmem:[%s3710_s3 + $0x2b8] sm:$0xff] }
  0x2b   :  { %2092 = vmatpush3.bf16.msra.mxu0 %v2091_v61  ;;  %v602_v33 = vld [vmem:[%s3710_s3 + $0x2b0] sm:$0xff]  ;;  %v635_v37 = vld [vmem:[%s3710_s3 + $0x3b8] sm:$0xff]  ;;  %v2119_v41 = vpack.c.bf16 %v585_v26, %v584_v22 }
  0x2c   :  { %2094 = vmatprep.subr.bf16.mxu0 %v2093_v62  ;;  %2068 = vmatpush3.bf16.msra.mxu1 %v2067_v2  ;;  %v583_v2 = vld [vmem:[%s3710_s3 + $0x218] sm:$0xff]  ;;  %v2121_v47 = vpack.c.bf16 %v603_v35, %v602_v33  ;;  %v608_v33 = vld [vmem:[%s3710_s3 + $0x2e0] sm:$0xff]  ;;  %v609_v35 = vld [vmem:[%s3710_s3 + $0x2e8] sm:$0xff] }
  0x2d   :  { %2070 = vmatprep.subr.bf16.mxu1 %v2069_v5  ;;  %v615_v5 = vld [vmem:[%s3710_s3 + $0x318] sm:$0xff]  ;;  %v2115_v14 = vpack.c.bf16 %v583_v2, %v582_v60 }
  0x2e   :  { %v587_v48 = vld [vmem:[%s3710_s3 + $0x238] sm:$0xff] }
  0x2f   :  { %2096 = vmatpush3.bf16.msra.mxu0 %v2095_v8  ;;  %v600_v8 = vld [vmem:[%s3710_s3 + $0x2a0] sm:$0xff]  ;;  %v591_v22 = vld [vmem:[%s3710_s3 + $0x258] sm:$0xff] }
  0x30   :  { %2098 = vmatprep.subr.bf16.mxu0 %v2097_v9  ;;  %2072 = vmatpush3.bf16.msra.mxu1 %v2071_v12  ;;  %v601_v9 = vld [vmem:[%s3710_s3 + $0x2a8] sm:$0xff]  ;;  %v2145_v12 = vpack.c.bf16 %v631_v59, %v630_v58 }
  0x31   :  { %2074 = vmatprep.subr.bf16.mxu1 %v2073_v23  ;;  %v2117_v21 = vpack.c.bf16 %v601_v9, %v600_v8  ;;  %v637_v58 = vld [vmem:[%s3710_s3 + $0x3c8] sm:$0xff]  ;;  %v620_v9 = vld [vmem:[%s3710_s3 + $0x340] sm:$0xff] }
  0x32   :  { %v589_v8 = vld [vmem:[%s3710_s3 + $0x248] sm:$0xff] }
  0x33   :  { %2100 = vmatpush3.bf16.msra.mxu0 %v2099_v15  ;;  %v2147_v15 = vpack.c.bf16 %v615_v5, %v614_v4  ;;  %v588_v5 = vld [vmem:[%s3710_s3 + $0x240] sm:$0xff] }
  0x34   :  { %2102 = vmatprep.subr.bf16.mxu0 %v2101_v16  ;;  %2076 = vmatpush3.bf16.msra.mxu1 %v2075_v28  ;;  %v632_v16 = vld [vmem:[%s3710_s3 + $0x3a0] sm:$0xff]  ;;  %v617_v28 = vld [vmem:[%s3710_s3 + $0x328] sm:$0xff] }
  0x35   :  { %2110 = vmatprep.subr.bf16.mxu1 %v2109_v36  ;;  %v2149_v32 = vpack.c.bf16 %v633_v17, %v632_v16  ;;  %v634_v36 = vld [vmem:[%s3710_s3 + $0x3b0] sm:$0xff]  ;;  %v2127_v16 = vpack.c.bf16 %v589_v8, %v588_v5  ;;  %v100_v5 = vsub.s32 6, %v2776_v40 }
  0x36   :  { %v2153_v53 = vpack.c.bf16 %v635_v37, %v634_v36  ;;  %v640_v36 = vld [vmem:[%s3710_s3 + $0x3e0] sm:$0xff]  ;;  %v641_v37 = vld [vmem:[%s3710_s3 + $0x3e8] sm:$0xff] }
  0x37   :  { %2104 = vmatpush3.bf16.msra.mxu0 %v2103_v19 }
  0x38   :  { %2106 = vmatprep.subr.bf16.mxu0 %v2105_v27  ;;  %v616_v27 = vld [vmem:[%s3710_s3 + $0x320] sm:$0xff] }
  0x39   :  { %v2151_v3 = vpack.c.bf16 %v617_v28, %v616_v27 }
  0x3b   :  { %2108 = vmatpush3.bf16.msra.mxu0 %v2107_v31  ;;  %v2881_v31 = vrot.slane %v2783_v42, %v104_v11 }
  0x3c   :  { %2142 = vmatprep.subr.bf16.mxu0 %v2141_v38 }
  0xdf   :  { %v197_v54 = vpop.f32.mrb[0].mxu0 }
  0xe0   :  { %v274_v55 = vpop.f32.mrb[0].mxu1  ;;  %v199_v56 = vpop.f32.mrb[1].mxu0  ;;  %v2835_v6 = vadd.f32 %v197_v54, %v77_v49  ;;  %v604_v54 = vld [vmem:[%s3710_s3 + $0x2c0] sm:$0xff] }
  0xe1   :  { %v2822_v61 = vadd.f32 %v274_v55, %v85_v44  ;;  %v2824_v62 = vadd.f32 %v199_v56, %v81_v45  ;;  %v276_v63 = vpop.f32.mrb[1].mxu1  ;;  %v605_v55 = vld [vmem:[%s3710_s3 + $0x2c8] sm:$0xff] }
  0xe2   :  { %v2837_v7 = vadd.f32 %v276_v63, %v89_v51  ;;  %v2930_v56 = vld [vmem:[%s3711_s2 + $0x8] sm:$0x3]  ;;  %v2125_v4 = vpack.c.bf16 %v605_v55, %v604_v54  ;;  %v610_v55 = vld [vmem:[%s3710_s3 + $0x2f0] sm:$0xff] }
  0xe3   :  { %747 = vmatprep.mubr.f32.mxu1 %v2824_v62  ;;  %v203_v13 = vpop.f32.mrb[2].mxu0  ;;  %v109_v10 = vrot.slane %v2930_v56, %v76_v43  ;;  %v639_v43 = vld [vmem:[%s3710_s3 + $0x3d8] sm:$0xff]  ;;  %v625_v54 = vld [vmem:[%s3710_s3 + $0x368] sm:$0xff] }
  0xe4   :  { %822 = vmatprep.mubr.f32.mxu0 %v2837_v7  ;;  %748 = vmatmul.mubr.f32.vlgmr.msra.gmra.mrb[8].mxu1 %v2835_v6  ;;  %v2856_v18 = vadd.f32 %v203_v13, %v77_v49  ;;  %v205_v19 = vpop.f32.mrb[3].mxu0  ;;  %v280_v20 = vpop.f32.mrb[2].mxu1  ;;  %v618_v49 = vld [vmem:[%s3710_s3 + $0x330] sm:$0xff] }
  0xe5   :  { %823 = vmatmul.mubr.f32.vlgmr.msra.gmra.mrb[12].mxu0 %v2822_v61  ;;  %2112 = vmatpush3.bf16.msra.mxu1 %v2111_v57  ;;  %v2862_v23 = vadd.f32 %v205_v19, %v81_v45  ;;  %v2864_v24 = vadd.f32 %v280_v20, %v85_v44  ;;  %v282_v25 = vpop.f32.mrb[3].mxu1  ;;  %v586_v44 = vld [vmem:[%s3710_s3 + $0x230] sm:$0xff]  ;;  %v636_v57 = vld [vmem:[%s3710_s3 + $0x3c0] sm:$0xff] }
  0xe6   :  { %2144 = vmatpush3.bf16.msra.mxu0 %v2143_v0  ;;  %2114 = vmatprep.subr.bf16.mxu1 %v2113_v1  ;;  %v2875_v29 = vadd.f32 %v282_v25, %v89_v51  ;;  %v619_v51 = vld [vmem:[%s3710_s3 + $0x338] sm:$0xff]  ;;  %v2123_v63 = vpack.c.bf16 %v587_v48, %v586_v44  ;;  %v2157_v11 = vpack.c.bf16 %v637_v58, %v636_v57  ;;  %v606_v13 = vld [vmem:[%s3710_s3 + $0x2d0] sm:$0xff]  ;;  %v624_v48 = vld [vmem:[%s3710_s3 + $0x360] sm:$0xff]  ;;  %v92_v58 = vsub.s32 4, %v2776_v40 }
  0xe7   :  { %2146 = vmatprep.subr.bf16.mxu0 %v2145_v12  ;;  %752 = vmatprep.mubr.f32.mxu1 %v2862_v23  ;;  %v2155_v2 = vpack.c.bf16 %v619_v51, %v618_v49  ;;  %v621_v12 = vld [vmem:[%s3710_s3 + $0x348] sm:$0xff]  ;;  %v622_v25 = vld [vmem:[%s3710_s3 + $0x350] sm:$0xff]  ;;  %v611_v57 = vld [vmem:[%s3710_s3 + $0x2f8] sm:$0xff]  ;;  %v2167_v8 = vpack.c.bf16 %v625_v54, %v624_v48 }
  0xe8   :  { %753 = vmatmul.mubr.f32.gmra.mrb[10].mxu1 %v2856_v18  ;;  %v2897_v38 = vpop.f32.mrb[4].mxu0  ;;  %v2899_v39 = vpop.f32.mrb[4].mxu1  ;;  %827 = vmatprep.mubr.f32.mxu0 %v2875_v29  ;;  %v2159_v19 = vpack.c.bf16 %v621_v12, %v620_v9  ;;  %v2137_v9 = vpack.c.bf16 %v611_v57, %v610_v55  ;;  %v626_v12 = vld [vmem:[%s3710_s3 + $0x370] sm:$0xff]  ;;  %v647_v48 = vld [vmem:[%s3710_s3 + $0x418] sm:$0xff]  ;;  %v664_v55 = vld [vmem:[%s3710_s3 + $0x4a0] sm:$0xff] }
  0xe9   :  { %2116 = vmatpush3.bf16.msra.mxu1 %v2115_v14  ;;  %v353_v45 = vpop.f32.mrb[5].mxu0  ;;  %v430_v46 = vpop.f32.mrb[5].mxu1  ;;  %828 = vmatmul.mubr.f32.gmra.mrb[14].mxu0 %v2864_v24  ;;  %v607_v14 = vld [vmem:[%s3710_s3 + $0x2d8] sm:$0xff]  ;;  %v649_v40 = vld [vmem:[%s3710_s3 + $0x428] sm:$0xff] }
  0xea   :  { %2148 = vmatpush3.bf16.msra.mxu0 %v2147_v15  ;;  %2118 = vmatprep.subr.bf16.mxu1 %v2117_v21  ;;  %v2916_v52 = vadd.f32 %v353_v45, %v2878_v30  ;;  %v2919_v50 = vadd.f32 %v430_v46, %v2881_v31  ;;  %v638_v15 = vld [vmem:[%s3710_s3 + $0x3d0] sm:$0xff]  ;;  %v2129_v20 = vpack.c.bf16 %v607_v14, %v606_v13  ;;  %v592_v46 = vld [vmem:[%s3710_s3 + $0x260] sm:$0xff]  ;;  %v627_v14 = vld [vmem:[%s3710_s3 + $0x378] sm:$0xff] }
  0xeb   :  { %2150 = vmatprep.subr.bf16.mxu0 %v2149_v32  ;;  %v590_v21 = vld [vmem:[%s3710_s3 + $0x250] sm:$0xff]  ;;  %v2161_v28 = vpack.c.bf16 %v639_v43, %v638_v15  ;;  %v623_v32 = vld [vmem:[%s3710_s3 + $0x358] sm:$0xff]  ;;  %v2133_v45 = vpack.c.bf16 %v609_v35, %v608_v33  ;;  %v660_v15 = vld [vmem:[%s3710_s3 + $0x480] sm:$0xff] }
  0xec   :  { %v2938_v59 = vpop.f32.mrb[6].mxu0  ;;  %v2940_v60 = vpop.f32.mrb[6].mxu1  ;;  %897 = vmatprep.mubr.f32.mxu1 %v2916_v52  ;;  %972 = vmatprep.mubr.f32.mxu0 %v2919_v50  ;;  %v2163_v44 = vpack.c.bf16 %v623_v32, %v622_v25  ;;  %v661_v43 = vld [vmem:[%s3710_s3 + $0x488] sm:$0xff]  ;;  %v1061_v35 = vld [vmem:[%s3712_s5] sm:$0xff] }
  0xed   :  { %2120 = vmatpush3.bf16.msra.mxu1 %v2119_v41  ;;  %v2944_v0 = vpop.f32.mrb[7].mxu0  ;;  %v2946_v1 = vpop.f32.mrb[7].mxu1  ;;  %v2131_v41 = vpack.c.bf16 %v591_v22, %v590_v21  ;;  %v2171_v22 = vpack.c.bf16 %v627_v14, %v626_v12  ;;  %v2173_v25 = vpack.c.bf16 %v661_v43, %v660_v15  ;;  %v645_v32 = vld [vmem:[%s3710_s3 + $0x408] sm:$0xff]  ;;  %v1083_v12 = vld [vmem:[%s3712_s5 + $0xb0] sm:$0xff] }
  0xee   :  { %2152 = vmatpush3.bf16.msra.mxu0 %v2151_v3  ;;  %2122 = vmatprep.subr.bf16.mxu1 %v2121_v47  ;;  %v593_v47 = vld [vmem:[%s3710_s3 + $0x268] sm:$0xff] }
  0xef   :  { %2154 = vmatprep.subr.bf16.mxu0 %v2153_v53  ;;  %v2165_v53 = vpack.c.bf16 %v641_v37, %v640_v36  ;;  %v662_v37 = vld [vmem:[%s3710_s3 + $0x490] sm:$0xff] }
  0xf1   :  { %2124 = vmatpush3.bf16.msra.mxu1 %v2123_v63  ;;  %v505_v17 = vpop.f32.mrb[8].mxu0  ;;  %v642_v63 = vld [vmem:[%s3710_s3 + $0x3f0] sm:$0xff] }
  0xf2   :  { %2156 = vmatpush3.bf16.msra.mxu0 %v2155_v2  ;;  %2126 = vmatprep.subr.bf16.mxu1 %v2125_v4  ;;  %v2984_v26 = vadd.f32 %v505_v17, %v109_v10  ;;  %v2986_v27 = vpop.f32.mrb[9].mxu0  ;;  %v643_v2 = vld [vmem:[%s3710_s3 + $0x3f8] sm:$0xff]  ;;  %v2135_v4 = vpack.c.bf16 %v593_v47, %v592_v46  ;;  %v1077_v17 = vld [vmem:[%s3712_s5 + $0x80] sm:$0xff]  ;;  %v3091_v46 = vadd.f32 %v2944_v0, %v2878_v30  ;;  %v1063_v30 = vld [vmem:[%s3712_s5 + $0x10] sm:$0xff] }
  0xf3   :  { %2158 = vmatprep.subr.bf16.mxu0 %v2157_v11  ;;  %v595_v11 = vld [vmem:[%s3710_s3 + $0x278] sm:$0xff]  ;;  %v2169_v13 = vpack.c.bf16 %v643_v2, %v642_v63  ;;  %v1082_v63 = vld [vmem:[%s3712_s5 + $0xa8] sm:$0xff] }
  0xf4   :  { %v1064_v0 = vld [vmem:[%s3712_s5 + $0x18] sm:$0xff] }
  0xf5   :  { %2128 = vmatpush3.bf16.msra.mxu1 %v2127_v16  ;;  %v511_v3 = vpop.f32.mrb[10].mxu0  ;;  %v93_v16 = vrot.slane %v2783_v42, %v92_v58  ;;  %v1081_v58 = vld [vmem:[%s3712_s5 + $0xa0] sm:$0xff] }
  0xf6   :  { %2160 = vmatpush3.bf16.msra.mxu0 %v2159_v19  ;;  %2130 = vmatprep.subr.bf16.mxu1 %v2129_v20  ;;  %v3012_v49 = vadd.f32 %v511_v3, %v109_v10  ;;  %v3014_v51 = vpop.f32.mrb[11].mxu0  ;;  %v594_v10 = vld [vmem:[%s3710_s3 + $0x270] sm:$0xff]  ;;  %v1078_v19 = vld [vmem:[%s3712_s5 + $0x88] sm:$0xff]  ;;  %v101_v20 = vrot.slane %v2783_v42, %v100_v5  ;;  %v2211_v5 = vpack.c.bf16 %v1064_v0, %v1063_v30 }
  0xf7   :  { %2162 = vmatprep.subr.bf16.mxu0 %v2161_v28  ;;  %v2139_v21 = vpack.c.bf16 %v595_v11, %v594_v10  ;;  %v644_v28 = vld [vmem:[%s3710_s3 + $0x400] sm:$0xff]  ;;  %v2205_v33 = vpack.c.bf16 %v1078_v19, %v1077_v17  ;;  %v1062_v42 = vld [vmem:[%s3712_s5 + $0x8] sm:$0xff]  ;;  %v3072_v36 = vadd.f32 %v2897_v38, %v93_v16  ;;  %v1080_v38 = vld [vmem:[%s3712_s5 + $0x98] sm:$0xff]  ;;  %v3113_v57 = vadd.f32 %v2938_v59, %v93_v16 }
  0xf8   :  { %v3081_v3 = vadd.f32 %v2899_v39, %v101_v20  ;;  %v2207_v47 = vpack.c.bf16 %v1062_v42, %v1061_v35  ;;  %v646_v39 = vld [vmem:[%s3710_s3 + $0x410] sm:$0xff]  ;;  %v3128_v59 = vrot.slane %v2930_v56, %v80_v34  ;;  %v3131_v2 = vadd.f32 %v2940_v60, %v101_v20  ;;  %v1065_v34 = vld [vmem:[%s3712_s5 + $0x20] sm:$0xff]  ;;  %v667_v11 = vld [vmem:[%s3710_s3 + $0x4b8] sm:$0xff] }
  0xf9   :  { %2132 = vmatpush3.bf16.msra.mxu1 %v2131_v41  ;;  %v663_v41 = vld [vmem:[%s3710_s3 + $0x498] sm:$0xff]  ;;  %v2213_v60 = vpack.c.bf16 %v1082_v63, %v1081_v58  ;;  %v666_v10 = vld [vmem:[%s3710_s3 + $0x4b0] sm:$0xff]  ;;  %v652_v42 = vld [vmem:[%s3710_s3 + $0x440] sm:$0xff] }
  0xfa   :  { %2164 = vmatpush3.bf16.msra.mxu0 %v2163_v44  ;;  %2134 = vmatprep.subr.bf16.mxu1 %v2133_v45  ;;  %v2175_v44 = vpack.c.bf16 %v645_v32, %v644_v28  ;;  %v1079_v45 = vld [vmem:[%s3712_s5 + $0x90] sm:$0xff]  ;;  %v2177_v54 = vpack.c.bf16 %v663_v41, %v662_v37  ;;  %v3163_v14 = vadd.f32 %v2986_v27, %v3128_v59  ;;  %v651_v19 = vld [vmem:[%s3710_s3 + $0x438] sm:$0xff]  ;;  %v1086_v28 = vld [vmem:[%s3712_s5 + $0xc8] sm:$0xff] }
  0xfb   :  { %2166 = vmatprep.subr.bf16.mxu0 %v2165_v53  ;;  %v3101_v53 = vadd.f32 %v2946_v1, %v2881_v31  ;;  %v2209_v31 = vpack.c.bf16 %v1080_v38, %v1079_v45  ;;  %v665_v1 = vld [vmem:[%s3710_s3 + $0x4a8] sm:$0xff]  ;;  %v2185_v16 = vpack.c.bf16 %v667_v11, %v666_v10  ;;  %v650_v17 = vld [vmem:[%s3710_s3 + $0x430] sm:$0xff]  ;;  %v1069_v41 = vld [vmem:[%s3712_s5 + $0x40] sm:$0xff] }
  0xfc   :  { %v2181_v56 = vpack.c.bf16 %v665_v1, %v664_v55  ;;  %v1067_v27 = vld [vmem:[%s3712_s5 + $0x30] sm:$0xff]  ;;  %v2187_v32 = vpack.c.bf16 %v651_v19, %v650_v17  ;;  %v653_v37 = vld [vmem:[%s3710_s3 + $0x448] sm:$0xff]  ;;  %v1072_v63 = vld [vmem:[%s3712_s5 + $0x58] sm:$0xff] }
  0xfd   :  { %2136 = vmatpush3.bf16.msra.mxu1 %v2135_v4  ;;  %v2179_v4 = vpack.c.bf16 %v647_v48, %v646_v39  ;;  %v1070_v45 = vld [vmem:[%s3712_s5 + $0x48] sm:$0xff]  ;;  %v670_v38 = vld [vmem:[%s3710_s3 + $0x4d0] sm:$0xff]  ;;  %v1088_v48 = vld [vmem:[%s3712_s5 + $0xd8] sm:$0xff] }
  0xfe   :  { %2168 = vmatpush3.bf16.msra.mxu0 %v2167_v8  ;;  %2138 = vmatprep.subr.bf16.mxu1 %v2137_v9  ;;  %v648_v8 = vld [vmem:[%s3710_s3 + $0x420] sm:$0xff]  ;;  %v1066_v9 = vld [vmem:[%s3712_s5 + $0x28] sm:$0xff]  ;;  %v1087_v39 = vld [vmem:[%s3712_s5 + $0xd0] sm:$0xff]  ;;  %v2223_v30 = vpack.c.bf16 %v1070_v45, %v1069_v41 }
  0xff   :  { %2170 = vmatprep.subr.bf16.mxu0 %v2169_v13  ;;  %v1084_v13 = vld [vmem:[%s3712_s5 + $0xb8] sm:$0xff]  ;;  %v2183_v15 = vpack.c.bf16 %v649_v40, %v648_v8  ;;  %v2215_v43 = vpack.c.bf16 %v1066_v9, %v1065_v34  ;;  %v654_v55 = vld [vmem:[%s3710_s3 + $0x450] sm:$0xff]  ;;  %v2225_v58 = vpack.c.bf16 %v1088_v48, %v1087_v39  ;;  %v1089_v8 = vld [vmem:[%s3712_s5 + $0xe0] sm:$0xff] }
 0x100   :  { %v2217_v20 = vpack.c.bf16 %v1084_v13, %v1083_v12  ;;  %v1071_v1 = vld [vmem:[%s3712_s5 + $0x50] sm:$0xff]  ;;  %v1090_v40 = vld [vmem:[%s3712_s5 + $0xe8] sm:$0xff]  ;;  %v656_v9 = vld [vmem:[%s3710_s3 + $0x460] sm:$0xff] }
 0x101   :  { %2140 = vmatpush3.bf16.msra.mxu1 %v2139_v21  ;;  %v668_v21 = vld [vmem:[%s3710_s3 + $0x4c0] sm:$0xff]  ;;  %v657_v10 = vld [vmem:[%s3710_s3 + $0x468] sm:$0xff]  ;;  %v2229_v12 = vpack.c.bf16 %v1090_v40, %v1089_v8  ;;  %v1092_v17 = vld [vmem:[%s3712_s5 + $0xf8] sm:$0xff] }
 0x102   :  { %2172 = vmatpush3.bf16.msra.mxu0 %v2171_v22  ;;  %2174 = vmatprep.subr.bf16.mxu1 %v2173_v25  ;;  %v669_v22 = vld [vmem:[%s3710_s3 + $0x4c8] sm:$0xff]  ;;  %v1085_v25 = vld [vmem:[%s3712_s5 + $0xc0] sm:$0xff]  ;;  %v2199_v19 = vpack.c.bf16 %v657_v10, %v656_v9  ;;  %v1127_v8 = vld [vmem:[%s3712_s5 + $0x210] sm:$0xff] }
 0x103   :  { %2206 = vmatprep.subr.bf16.mxu0 %v2205_v33  ;;  %v2189_v35 = vpack.c.bf16 %v669_v22, %v668_v21  ;;  %v1073_v11 = vld [vmem:[%s3712_s5 + $0x60] sm:$0xff]  ;;  %v1074_v13 = vld [vmem:[%s3712_s5 + $0x68] sm:$0xff]  ;;  %v659_v21 = vld [vmem:[%s3710_s3 + $0x478] sm:$0xff] }
 0x104   :  { %898 = vmatmul.mubr.f32.vlgmr.msra.gmra.mrb[12].mxu1 %v3072_v36  ;;  %v1075_v22 = vld [vmem:[%s3712_s5 + $0x70] sm:$0xff]  ;;  %v1093_v45 = vld [vmem:[%s3712_s5 + $0x100] sm:$0xff]  ;;  %v1126_v48 = vld [vmem:[%s3712_s5 + $0x208] sm:$0xff] }
 0x105   :  { %973 = vmatmul.mubr.f32.vlgmr.msra.gmra.mrb[16].mxu0 %v3081_v3  ;;  %2176 = vmatpush3.bf16.msra.mxu1 %v2175_v44  ;;  %v2221_v44 = vpack.c.bf16 %v1086_v28, %v1085_v25  ;;  %v1076_v28 = vld [vmem:[%s3712_s5 + $0x78] sm:$0xff]  ;;  %v1125_v39 = vld [vmem:[%s3712_s5 + $0x200] sm:$0xff]  ;;  %v1146_v9 = vld [vmem:[%s3712_s5 + $0x2a8] sm:$0xff] }
 0x106   :  { %2208 = vmatpush3.bf16.msra.mxu0 %v2207_v47  ;;  %902 = vmatprep.mubr.f32.mxu1 %v3091_v46  ;;  %v671_v47 = vld [vmem:[%s3710_s3 + $0x4d8] sm:$0xff]  ;;  %v2235_v41 = vpack.c.bf16 %v1076_v28, %v1075_v22  ;;  %v1117_v28 = vld [vmem:[%s3712_s5 + $0x1c0] sm:$0xff] }
 0x107   :  { %977 = vmatprep.mubr.f32.mxu0 %v3101_v53  ;;  %2178 = vmatprep.subr.bf16.mxu1 %v2177_v54  ;;  %v2191_v54 = vpack.c.bf16 %v653_v37, %v652_v42  ;;  %v2193_v0 = vpack.c.bf16 %v671_v47, %v670_v38  ;;  %v1142_v42 = vld [vmem:[%s3712_s5 + $0x288] sm:$0xff]  ;;  %v1128_v40 = vld [vmem:[%s3712_s5 + $0x218] sm:$0xff] }
 0x108   :  { %903 = vmatmul.mubr.f32.gmra.mrb[14].mxu1 %v3113_v57  ;;  %2210 = vmatprep.subr.bf16.mxu0 %v2209_v31  ;;  %v655_v31 = vld [vmem:[%s3710_s3 + $0x458] sm:$0xff]  ;;  %v1094_v38 = vld [vmem:[%s3712_s5 + $0x108] sm:$0xff]  ;;  %v2275_v10 = vpack.c.bf16 %v1128_v40, %v1127_v8  ;;  %v1121_v40 = vld [vmem:[%s3712_s5 + $0x1e0] sm:$0xff] }
 0x109   :  { %978 = vmatmul.mubr.f32.gmra.mrb[18].mxu0 %v3131_v2  ;;  %2180 = vmatpush3.bf16.msra.mxu1 %v2179_v4  ;;  %v672_v4 = vld [vmem:[%s3710_s3 + $0x4e0] sm:$0xff]  ;;  %v2195_v34 = vpack.c.bf16 %v655_v31, %v654_v55  ;;  %v1143_v55 = vld [vmem:[%s3712_s5 + $0x290] sm:$0xff]  ;;  %v1144_v31 = vld [vmem:[%s3712_s5 + $0x298] sm:$0xff] }
 0x10a   :  { %2212 = vmatpush3.bf16.msra.mxu0 %v2211_v5  ;;  %1292 = vmatprep.mubr.f32.mxu0 %v2824_v62  ;;  %v1068_v62 = vld [vmem:[%s3712_s5 + $0x38] sm:$0xff]  ;;  %v673_v5 = vld [vmem:[%s3710_s3 + $0x4e8] sm:$0xff] }
 0x10b   :  { %2182 = vmatprep.subr.bf16.mxu1 %v2181_v56  ;;  %2214 = vmatprep.subr.bf16.mxu0 %v2213_v60  ;;  %v2219_v33 = vpack.c.bf16 %v1068_v62, %v1067_v27  ;;  %v2227_v56 = vpack.c.bf16 %v1072_v63, %v1071_v1  ;;  %v2197_v60 = vpack.c.bf16 %v673_v5, %v672_v4  ;;  %v658_v62 = vld [vmem:[%s3710_s3 + $0x470] sm:$0xff]  ;;  %v1096_v63 = vld [vmem:[%s3712_s5 + $0x118] sm:$0xff] }
 0x10c   :  { %1047 = vmatprep.mubr.f32.mxu1 %v3163_v14  ;;  %v2231_v27 = vpack.c.bf16 %v1074_v13, %v1073_v11  ;;  %v2203_v37 = vpack.c.bf16 %v659_v21, %v658_v62  ;;  %v2271_v1 = vpack.c.bf16 %v1126_v48, %v1125_v39  ;;  %v3320_v4 = vadd.f32 %v3014_v51, %v3128_v59  ;;  %v1114_v51 = vld [vmem:[%s3712_s5 + $0x1a8] sm:$0xff]  ;;  %v1097_v11 = vld [vmem:[%s3712_s5 + $0x120] sm:$0xff]  ;;  %v1099_v21 = vld [vmem:[%s3712_s5 + $0x130] sm:$0xff] }
 0x10d   :  { %2184 = vmatpush3.bf16.msra.mxu1 %v2183_v15  ;;  %v674_v15 = vld [vmem:[%s3710_s3 + $0x4f0] sm:$0xff]  ;;  %v1100_v22 = vld [vmem:[%s3712_s5 + $0x138] sm:$0xff] }
 0x10e   :  { %2216 = vmatpush3.bf16.msra.mxu0 %v2215_v43  ;;  %2186 = vmatprep.subr.bf16.mxu1 %v2185_v16  ;;  %v675_v43 = vld [vmem:[%s3710_s3 + $0x4f8] sm:$0xff]  ;;  %v1091_v16 = vld [vmem:[%s3712_s5 + $0xf0] sm:$0xff] }
 0x10f   :  { %2218 = vmatprep.subr.bf16.mxu0 %v2217_v20  ;;  %v2201_v20 = vpack.c.bf16 %v675_v43, %v674_v15  ;;  %v2233_v25 = vpack.c.bf16 %v1092_v17, %v1091_v16  ;;  %v1115_v15 = vld [vmem:[%s3712_s5 + $0x1b0] sm:$0xff]  ;;  %v1116_v43 = vld [vmem:[%s3712_s5 + $0x1b8] sm:$0xff] }
 0x110   :  { %v1147_v17 = vld [vmem:[%s3712_s5 + $0x2b0] sm:$0xff]  ;;  %v2249_v62 = vpack.c.bf16 %v1116_v43, %v1115_v15  ;;  %v1120_v48 = vld [vmem:[%s3712_s5 + $0x1d8] sm:$0xff] }
 0x111   :  { %2188 = vmatpush3.bf16.msra.mxu1 %v2187_v32  ;;  %v1109_v32 = vld [vmem:[%s3712_s5 + $0x180] sm:$0xff]  ;;  %v1119_v39 = vld [vmem:[%s3712_s5 + $0x1d0] sm:$0xff]  ;;  %v1136_v8 = vld [vmem:[%s3712_s5 + $0x258] sm:$0xff] }
 0x112   :  { %2220 = vmatpush3.bf16.msra.mxu0 %v2219_v33  ;;  %2190 = vmatprep.subr.bf16.mxu1 %v2189_v35  ;;  %v1110_v33 = vld [vmem:[%s3712_s5 + $0x188] sm:$0xff]  ;;  %v1141_v35 = vld [vmem:[%s3712_s5 + $0x280] sm:$0xff]  ;;  %v1124_v15 = vld [vmem:[%s3712_s5 + $0x1f8] sm:$0xff] }
 0x113   :  { %2222 = vmatprep.subr.bf16.mxu0 %v2221_v44  ;;  %v2237_v44 = vpack.c.bf16 %v1110_v33, %v1109_v32  ;;  %v2269_v47 = vpack.c.bf16 %v1142_v42, %v1141_v35  ;;  %v1118_v32 = vld [vmem:[%s3712_s5 + $0x1c8] sm:$0xff]  ;;  %v1149_v33 = vld [vmem:[%s3712_s5 + $0x2c0] sm:$0xff]  ;;  %v2251_v35 = vpack.c.bf16 %v1100_v22, %v1099_v21  ;;  %v1155_v43 = vld [vmem:[%s3712_s5 + $0x2f0] sm:$0xff] }
 0x114   :  { %v1139_v21 = vld [vmem:[%s3712_s5 + $0x270] sm:$0xff] }
 0x115   :  { %2192 = vmatpush3.bf16.msra.mxu1 %v2191_v54  ;;  %v1111_v54 = vld [vmem:[%s3712_s5 + $0x190] sm:$0xff] }
 0x116   :  { %2224 = vmatpush3.bf16.msra.mxu0 %v2223_v30  ;;  %2194 = vmatprep.subr.bf16.mxu1 %v2193_v0  ;;  %v1112_v30 = vld [vmem:[%s3712_s5 + $0x198] sm:$0xff]  ;;  %v2239_v0 = vpack.c.bf16 %v1094_v38, %v1093_v45  ;;  %v1133_v45 = vld [vmem:[%s3712_s5 + $0x240] sm:$0xff] }
 0x117   :  { %2226 = vmatprep.subr.bf16.mxu0 %v2225_v58  ;;  %v1095_v58 = vld [vmem:[%s3712_s5 + $0x110] sm:$0xff]  ;;  %v2241_v5 = vpack.c.bf16 %v1112_v30, %v1111_v54  ;;  %v1152_v30 = vld [vmem:[%s3712_s5 + $0x2d8] sm:$0xff] }
 0x118   :  { %v2243_v59 = vpack.c.bf16 %v1096_v63, %v1095_v58  ;;  %v1151_v54 = vld [vmem:[%s3712_s5 + $0x2d0] sm:$0xff]  ;;  %v1104_v58 = vld [vmem:[%s3712_s5 + $0x158] sm:$0xff] }
 0x119   :  { %2196 = vmatpush3.bf16.msra.mxu1 %v2195_v34  ;;  %v2273_v34 = vpack.c.bf16 %v1144_v31, %v1143_v55  ;;  %v2257_v31 = vpack.c.bf16 %v1120_v48, %v1119_v39  ;;  %v1135_v63 = vld [vmem:[%s3712_s5 + $0x250] sm:$0xff]  ;;  %v1208_v48 = vld [vmem:[%s3712_s5 + $0x498] sm:$0xff] }
 0x11a   :  { %2228 = vmatpush3.bf16.msra.mxu0 %v2227_v56  ;;  %2198 = vmatprep.subr.bf16.mxu1 %v2197_v60  ;;  %v1113_v56 = vld [vmem:[%s3712_s5 + $0x1a0] sm:$0xff]  ;;  %v1207_v39 = vld [vmem:[%s3712_s5 + $0x490] sm:$0xff] }
 0x11b   :  { %2230 = vmatprep.subr.bf16.mxu0 %v2229_v12  ;;  %v1145_v60 = vld [vmem:[%s3712_s5 + $0x2a0] sm:$0xff]  ;;  %v2245_v13 = vpack.c.bf16 %v1114_v51, %v1113_v56  ;;  %v1154_v51 = vld [vmem:[%s3712_s5 + $0x2e8] sm:$0xff] }
 0x11c   :  { %v1129_v12 = vld [vmem:[%s3712_s5 + $0x220] sm:$0xff]  ;;  %v2277_v16 = vpack.c.bf16 %v1146_v9, %v1145_v60  ;;  %v2291_v60 = vpack.c.bf16 %v1136_v8, %v1135_v63  ;;  %v1192_v63 = vld [vmem:[%s3712_s5 + $0x418] sm:$0xff]  ;;  %v1178_v8 = vld [vmem:[%s3712_s5 + $0x3a8] sm:$0xff] }
 0x11d   :  { %2200 = vmatpush3.bf16.msra.mxu1 %v2199_v19  ;;  %v1148_v19 = vld [vmem:[%s3712_s5 + $0x2b8] sm:$0xff]  ;;  %v1153_v56 = vld [vmem:[%s3712_s5 + $0x2e0] sm:$0xff] }
 0x11e   :  { %2232 = vmatpush3.bf16.msra.mxu0 %v2231_v27  ;;  %2202 = vmatprep.subr.bf16.mxu1 %v2201_v20 }
 0x11f   :  { %2234 = vmatprep.subr.bf16.mxu0 %v2233_v25  ;;  %v1131_v25 = vld [vmem:[%s3712_s5 + $0x230] sm:$0xff] }
 0x121   :  { %2204 = vmatpush3.bf16.msra.mxu1 %v2203_v37  ;;  %v2253_v37 = vpack.c.bf16 %v1118_v32, %v1117_v28  ;;  %v1205_v28 = vld [vmem:[%s3712_s5 + $0x480] sm:$0xff]  ;;  %v1206_v32 = vld [vmem:[%s3712_s5 + $0x488] sm:$0xff] }
 0x122   :  { %2236 = vmatpush3.bf16.msra.mxu0 %v2235_v41  ;;  %2238 = vmatprep.subr.bf16.mxu1 %v2237_v44  ;;  %v1101_v41 = vld [vmem:[%s3712_s5 + $0x140] sm:$0xff]  ;;  %v1102_v44 = vld [vmem:[%s3712_s5 + $0x148] sm:$0xff] }
 0x123   :  { %2270 = vmatprep.subr.bf16.mxu0 %v2269_v47  ;;  %v1134_v47 = vld [vmem:[%s3712_s5 + $0x248] sm:$0xff] }
 0x124   :  { %1048 = vmatmul.mubr.f32.vlgmr.msra.gmra.mrb[16].mxu1 %v2984_v26  ;;  %v2287_v55 = vpack.c.bf16 %v1134_v47, %v1133_v45  ;;  %v1190_v45 = vld [vmem:[%s3712_s5 + $0x408] sm:$0xff]  ;;  %v1176_v47 = vld [vmem:[%s3712_s5 + $0x398] sm:$0xff] }
 0x125   :  { %1293 = vmatmul.mubr.f32.vlgmr.msra.gmra.mrb[20].mxu0 %v2835_v6  ;;  %2240 = vmatpush3.bf16.msra.mxu1 %v2239_v0  ;;  %v1098_v6 = vld [vmem:[%s3712_s5 + $0x128] sm:$0xff]  ;;  %v2255_v0 = vpack.c.bf16 %v1102_v44, %v1101_v41  ;;  %v1189_v44 = vld [vmem:[%s3712_s5 + $0x400] sm:$0xff] }
 0x126   :  { %1297 = vmatprep.mubr.f32.mxu0 %v2862_v23  ;;  %2272 = vmatpush3.bf16.msra.mxu0 %v2271_v1  ;;  %v1130_v23 = vld [vmem:[%s3712_s5 + $0x228] sm:$0xff]  ;;  %v2247_v27 = vpack.c.bf16 %v1098_v6, %v1097_v11  ;;  %v1103_v1 = vld [vmem:[%s3712_s5 + $0x150] sm:$0xff]  ;;  %v1137_v6 = vld [vmem:[%s3712_s5 + $0x260] sm:$0xff] }
 0x127   :  { %1052 = vmatprep.mubr.f32.mxu1 %v3320_v4  ;;  %2242 = vmatprep.subr.bf16.mxu1 %v2241_v5  ;;  %v2279_v20 = vpack.c.bf16 %v1130_v23, %v1129_v12  ;;  %v2289_v5 = vpack.c.bf16 %v1152_v30, %v1151_v54  ;;  %v1106_v11 = vld [vmem:[%s3712_s5 + $0x168] sm:$0xff]  ;;  %v2293_v12 = vpack.c.bf16 %v1154_v51, %v1153_v56  ;;  %v1123_v23 = vld [vmem:[%s3712_s5 + $0x1f0] sm:$0xff] }
 0x128   :  { %1053 = vmatmul.mubr.f32.gmra.mrb[18].mxu1 %v3012_v49  ;;  %2274 = vmatprep.subr.bf16.mxu0 %v2273_v34  ;;  %v1122_v34 = vld [vmem:[%s3712_s5 + $0x1e8] sm:$0xff]  ;;  %v2335_v30 = vpack.c.bf16 %v1190_v45, %v1189_v44  ;;  %v1168_v44 = vld [vmem:[%s3712_s5 + $0x358] sm:$0xff]  ;;  %v1199_v45 = vld [vmem:[%s3712_s5 + $0x450] sm:$0xff] }
 0x129   :  { %1298 = vmatmul.mubr.f32.gmra.mrb[22].mxu0 %v2856_v18  ;;  %2244 = vmatpush3.bf16.msra.mxu1 %v2243_v59  ;;  %v2281_v18 = vpack.c.bf16 %v1148_v19, %v1147_v17  ;;  %v2259_v59 = vpack.c.bf16 %v1104_v58, %v1103_v1  ;;  %v2261_v9 = vpack.c.bf16 %v1122_v34, %v1121_v40  ;;  %v1158_v41 = vld [vmem:[%s3712_s5 + $0x308] sm:$0xff]  ;;  %v1191_v1 = vld [vmem:[%s3712_s5 + $0x410] sm:$0xff] }
 0x12a   :  { %1367 = vmatprep.mubr.f32.mxu1 %v2837_v7  ;;  %2276 = vmatpush3.bf16.msra.mxu0 %v2275_v10  ;;  %v1132_v7 = vld [vmem:[%s3712_s5 + $0x238] sm:$0xff]  ;;  %v1105_v10 = vld [vmem:[%s3712_s5 + $0x160] sm:$0xff]  ;;  %v2337_v58 = vpack.c.bf16 %v1208_v48, %v1207_v39  ;;  %v1210_v40 = vld [vmem:[%s3712_s5 + $0x4a8] sm:$0xff]  ;;  %v2339_v56 = vpack.c.bf16 %v1192_v63, %v1191_v1 }
 0x12b   :  { %1442 = vmatprep.mubr.f32.mxu0 %v2916_v52  ;;  %2246 = vmatprep.subr.bf16.mxu1 %v2245_v13  ;;  %v1150_v52 = vld [vmem:[%s3712_s5 + $0x2c8] sm:$0xff]  ;;  %v2283_v42 = vpack.c.bf16 %v1132_v7, %v1131_v25  ;;  %v2263_v17 = vpack.c.bf16 %v1106_v11, %v1105_v10  ;;  %v1140_v25 = vld [vmem:[%s3712_s5 + $0x278] sm:$0xff]  ;;  %v1185_v39 = vld [vmem:[%s3712_s5 + $0x3e0] sm:$0xff] }
 0x12c   :  { %2278 = vmatprep.subr.bf16.mxu0 %v2277_v16  ;;  %v2285_v38 = vpack.c.bf16 %v1150_v52, %v1149_v33  ;;  %v1138_v13 = vld [vmem:[%s3712_s5 + $0x268] sm:$0xff]  ;;  %v1156_v16 = vld [vmem:[%s3712_s5 + $0x2f8] sm:$0xff]  ;;  %v2299_v52 = vpack.c.bf16 %v1140_v25, %v1139_v21  ;;  %v1165_v21 = vld [vmem:[%s3712_s5 + $0x340] sm:$0xff] }
 0x12d   :  { %2248 = vmatpush3.bf16.msra.mxu1 %v2247_v27  ;;  %v2295_v19 = vpack.c.bf16 %v1138_v13, %v1137_v6  ;;  %v2265_v27 = vpack.c.bf16 %v1124_v15, %v1123_v23  ;;  %v2297_v22 = vpack.c.bf16 %v1156_v16, %v1155_v43  ;;  %v1174_v7 = vld [vmem:[%s3712_s5 + $0x388] sm:$0xff]  ;;  %v1180_v10 = vld [vmem:[%s3712_s5 + $0x3b8] sm:$0xff]  ;;  %v1195_v23 = vld [vmem:[%s3712_s5 + $0x430] sm:$0xff] }
 0x12e   :  { %2280 = vmatpush3.bf16.msra.mxu0 %v2279_v20  ;;  %2250 = vmatprep.subr.bf16.mxu1 %v2249_v62  ;;  %v1107_v20 = vld [vmem:[%s3712_s5 + $0x170] sm:$0xff]  ;;  %v1108_v62 = vld [vmem:[%s3712_s5 + $0x178] sm:$0xff]  ;;  %v1181_v43 = vld [vmem:[%s3712_s5 + $0x3c0] sm:$0xff] }
 0x12f   :  { %2282 = vmatprep.subr.bf16.mxu0 %v2281_v18  ;;  %v1173_v18 = vld [vmem:[%s3712_s5 + $0x380] sm:$0xff]  ;;  %v2267_v33 = vpack.c.bf16 %v1108_v62, %v1107_v20  ;;  %v1212_v11 = vld [vmem:[%s3712_s5 + $0x4b8] sm:$0xff]  ;;  %v1182_v16 = vld [vmem:[%s3712_s5 + $0x3c8] sm:$0xff] }
 0x130   :  { %v2317_v62 = vpack.c.bf16 %v1182_v16, %v1181_v43  ;;  %v1197_v25 = vld [vmem:[%s3712_s5 + $0x440] sm:$0xff]  ;;  %v1186_v48 = vld [vmem:[%s3712_s5 + $0x3e8] sm:$0xff] }
 0x131   :  { %2252 = vmatpush3.bf16.msra.mxu1 %v2251_v35  ;;  %v2301_v35 = vpack.c.bf16 %v1174_v7, %v1173_v18  ;;  %v1198_v7 = vld [vmem:[%s3712_s5 + $0x448] sm:$0xff]  ;;  %v1169_v1 = vld [vmem:[%s3712_s5 + $0x360] sm:$0xff] }
 0x132   :  { %2284 = vmatpush3.bf16.msra.mxu0 %v2283_v42  ;;  %2254 = vmatprep.subr.bf16.mxu1 %v2253_v37  ;;  %v2333_v42 = vpack.c.bf16 %v1206_v32, %v1205_v28  ;;  %v1157_v37 = vld [vmem:[%s3712_s5 + $0x300] sm:$0xff]  ;;  %v1183_v28 = vld [vmem:[%s3712_s5 + $0x3d0] sm:$0xff]  ;;  %v1184_v32 = vld [vmem:[%s3712_s5 + $0x3d8] sm:$0xff] }
 0x133   :  { %2286 = vmatprep.subr.bf16.mxu0 %v2285_v38  ;;  %v1175_v38 = vld [vmem:[%s3712_s5 + $0x390] sm:$0xff]  ;;  %v2303_v54 = vpack.c.bf16 %v1158_v41, %v1157_v37  ;;  %v2321_v37 = vpack.c.bf16 %v1184_v32, %v1183_v28  ;;  %v1201_v63 = vld [vmem:[%s3712_s5 + $0x460] sm:$0xff] }
 0x134   :  { %v1167_v41 = vld [vmem:[%s3712_s5 + $0x350] sm:$0xff] }
 0x135   :  { %2256 = vmatpush3.bf16.msra.mxu1 %v2255_v0  ;;  %v2305_v0 = vpack.c.bf16 %v1176_v47, %v1175_v38  ;;  %v1200_v47 = vld [vmem:[%s3712_s5 + $0x458] sm:$0xff] }
 0x136   :  { %2288 = vmatpush3.bf16.msra.mxu0 %v2287_v55  ;;  %2258 = vmatprep.subr.bf16.mxu1 %v2257_v31  ;;  %v1159_v55 = vld [vmem:[%s3712_s5 + $0x310] sm:$0xff]  ;;  %v1160_v31 = vld [vmem:[%s3712_s5 + $0x318] sm:$0xff] }
 0x137   :  { %2290 = vmatprep.subr.bf16.mxu0 %v2289_v5  ;;  %v1177_v5 = vld [vmem:[%s3712_s5 + $0x3a0] sm:$0xff]  ;;  %v2307_v34 = vpack.c.bf16 %v1160_v31, %v1159_v55  ;;  %v2355_v55 = vpack.c.bf16 %v1200_v47, %v1199_v45  ;;  %v2325_v31 = vpack.c.bf16 %v1186_v48, %v1185_v39 }
 0x138   :  { %v2309_v51 = vpack.c.bf16 %v1178_v8, %v1177_v5  ;;  %v1202_v8 = vld [vmem:[%s3712_s5 + $0x468] sm:$0xff] }
 0x139   :  { %2260 = vmatpush3.bf16.msra.mxu1 %v2259_v59  ;;  %v1193_v59 = vld [vmem:[%s3712_s5 + $0x420] sm:$0xff] }
 0x13a   :  { %2292 = vmatpush3.bf16.msra.mxu0 %v2291_v60  ;;  %2262 = vmatprep.subr.bf16.mxu1 %v2261_v9  ;;  %v1194_v60 = vld [vmem:[%s3712_s5 + $0x428] sm:$0xff]  ;;  %v1179_v9 = vld [vmem:[%s3712_s5 + $0x3b0] sm:$0xff] }
 0x13b   :  { %2294 = vmatprep.subr.bf16.mxu0 %v2293_v12  ;;  %v2343_v12 = vpack.c.bf16 %v1194_v60, %v1193_v59  ;;  %v2313_v13 = vpack.c.bf16 %v1180_v10, %v1179_v9  ;;  %v1171_v59 = vld [vmem:[%s3712_s5 + $0x370] sm:$0xff]  ;;  %v1204_v10 = vld [vmem:[%s3712_s5 + $0x478] sm:$0xff] }
 0x13c   :  { %v1203_v9 = vld [vmem:[%s3712_s5 + $0x470] sm:$0xff] }
 0x13d   :  { %2264 = vmatpush3.bf16.msra.mxu1 %v2263_v17  ;;  %v1213_v17 = vld [vmem:[%s3712_s5 + $0x4c0] sm:$0xff] }
 0x13e   :  { %2296 = vmatpush3.bf16.msra.mxu0 %v2295_v19  ;;  %2266 = vmatprep.subr.bf16.mxu1 %v2265_v27  ;;  %v1214_v19 = vld [vmem:[%s3712_s5 + $0x4c8] sm:$0xff] }
 0x13f   :  { %2298 = vmatprep.subr.bf16.mxu0 %v2297_v22  ;;  %v1166_v22 = vld [vmem:[%s3712_s5 + $0x348] sm:$0xff]  ;;  %v2349_v18 = vpack.c.bf16 %v1214_v19, %v1213_v17 }
 0x141   :  { %2268 = vmatpush3.bf16.msra.mxu1 %v2267_v33  ;;  %v1215_v33 = vld [vmem:[%s3712_s5 + $0x4d0] sm:$0xff] }
 0x142   :  { %2300 = vmatpush3.bf16.msra.mxu0 %v2299_v52  ;;  %2302 = vmatprep.subr.bf16.mxu1 %v2301_v35  ;;  %v1216_v52 = vld [vmem:[%s3712_s5 + $0x4d8] sm:$0xff]  ;;  %v2319_v35 = vpack.c.bf16 %v1166_v22, %v1165_v21 }
 0x143   :  { %2334 = vmatprep.subr.bf16.mxu0 %v2333_v42  ;;  %v2351_v42 = vpack.c.bf16 %v1198_v7, %v1197_v25  ;;  %v2353_v38 = vpack.c.bf16 %v1216_v52, %v1215_v33 }
 0x144   :  { %1368 = vmatmul.mubr.f32.vlgmr.msra.gmra.mrb[20].mxu1 %v2822_v61  ;;  %v1209_v61 = vld [vmem:[%s3712_s5 + $0x4a0] sm:$0xff] }
 0x145   :  { %1443 = vmatmul.mubr.f32.vlgmr.msra.gmra.mrb[24].mxu0 %v3072_v36  ;;  %1372 = vmatprep.mubr.f32.mxu1 %v2875_v29  ;;  %v1161_v29 = vld [vmem:[%s3712_s5 + $0x320] sm:$0xff]  ;;  %v1162_v36 = vld [vmem:[%s3712_s5 + $0x328] sm:$0xff] }
 0x146   :  { %1447 = vmatprep.mubr.f32.mxu0 %v3091_v46  ;;  %2304 = vmatpush3.bf16.msra.mxu1 %v2303_v54  ;;  %v2341_v46 = vpack.c.bf16 %v1210_v40, %v1209_v61  ;;  %v2311_v6 = vpack.c.bf16 %v1162_v36, %v1161_v29  ;;  %v1217_v54 = vld [vmem:[%s3712_s5 + $0x4e0] sm:$0xff]  ;;  %v1187_v61 = vld [vmem:[%s3712_s5 + $0x3f0] sm:$0xff]  ;;  %v1188_v40 = vld [vmem:[%s3712_s5 + $0x3f8] sm:$0xff]  ;;  %v2359_v29 = vpack.c.bf16 %v1202_v8, %v1201_v63 }
 0x147   :  { %2336 = vmatpush3.bf16.msra.mxu0 %v2335_v30  ;;  %2306 = vmatprep.subr.bf16.mxu1 %v2305_v0  ;;  %v1218_v30 = vld [vmem:[%s3712_s5 + $0x4e8] sm:$0xff]  ;;  %v2323_v0 = vpack.c.bf16 %v1168_v44, %v1167_v41  ;;  %v2329_v36 = vpack.c.bf16 %v1188_v40, %v1187_v61  ;;  %v1624_v63 = vld [vmem:[%s3715_s6] ss:$0 sm:$0xff] }
 0x148   :  { %1373 = vmatmul.mubr.f32.gmra.mrb[22].mxu1 %v2864_v24  ;;  %2338 = vmatprep.subr.bf16.mxu0 %v2337_v58  ;;  %v1211_v24 = vld [vmem:[%s3712_s5 + $0x4b0] sm:$0xff]  ;;  %v1170_v58 = vld [vmem:[%s3712_s5 + $0x368] sm:$0xff]  ;;  %v2357_v5 = vpack.c.bf16 %v1218_v30, %v1217_v54 }
 0x149   :  { %1448 = vmatmul.mubr.f32.gmra.mrb[26].mxu0 %v3113_v57  ;;  %1517 = vmatprep.mubr.f32.mxu1 %v2919_v50  ;;  %v1163_v50 = vld [vmem:[%s3712_s5 + $0x330] sm:$0xff]  ;;  %v1164_v57 = vld [vmem:[%s3712_s5 + $0x338] sm:$0xff]  ;;  %v2345_v15 = vpack.c.bf16 %v1212_v11, %v1211_v24  ;;  %v2363_v11 = vpack.c.bf16 %v1204_v10, %v1203_v9 }
 0x14a   :  { %2308 = vmatpush3.bf16.msra.mxu1 %v2307_v34  ;;  %1592 = vmatprep.mubr.f32.mxu0 %v3163_v14  ;;  %v1196_v14 = vld [vmem:[%s3712_s5 + $0x438] sm:$0xff]  ;;  %v2315_v27 = vpack.c.bf16 %v1164_v57, %v1163_v50  ;;  %v1219_v34 = vld [vmem:[%s3712_s5 + $0x4f0] sm:$0xff] }
 0x14b   :  { %2340 = vmatpush3.bf16.msra.mxu0 %v2339_v56  ;;  %2310 = vmatprep.subr.bf16.mxu1 %v2309_v51  ;;  %v2347_v20 = vpack.c.bf16 %v1196_v14, %v1195_v23  ;;  %v1220_v56 = vld [vmem:[%s3712_s5 + $0x4f8] sm:$0xff]  ;;  %v2327_v51 = vpack.c.bf16 %v1170_v58, %v1169_v1 }
 0x14c   :  { %2342 = vmatprep.subr.bf16.mxu0 %v2341_v46  ;;  %v1172_v46 = vld [vmem:[%s3712_s5 + $0x378] sm:$0xff]  ;;  %v2361_v60 = vpack.c.bf16 %v1220_v56, %v1219_v34 }
 0x14d   :  { %v2331_v24 = vpack.c.bf16 %v1172_v46, %v1171_v59 }
 0x14e   :  { %2312 = vmatpush3.bf16.msra.mxu1 %v2311_v6 }
 0x14f   :  { %2344 = vmatpush3.bf16.msra.mxu0 %v2343_v12  ;;  %2314 = vmatprep.subr.bf16.mxu1 %v2313_v13  ;;  %v1623_v13 = vld [vmem:[%s3713_s4] ss:$0 sm:$0xff] }
 0x150   :  { %2346 = vmatprep.subr.bf16.mxu0 %v2345_v15 }
 0x152   :  { %2316 = vmatpush3.bf16.msra.mxu1 %v2315_v27 }
 0x153   :  { %2348 = vmatpush3.bf16.msra.mxu0 %v2347_v20  ;;  %2318 = vmatprep.subr.bf16.mxu1 %v2317_v62 }
 0x154   :  { %2350 = vmatprep.subr.bf16.mxu0 %v2349_v18 }
 0x156   :  { %2320 = vmatpush3.bf16.msra.mxu1 %v2319_v35 }
 0x157   :  { %2352 = vmatpush3.bf16.msra.mxu0 %v2351_v42  ;;  %2322 = vmatprep.subr.bf16.mxu1 %v2321_v37 }
 0x158   :  { %2354 = vmatprep.subr.bf16.mxu0 %v2353_v38 }
 0x15a   :  { %2324 = vmatpush3.bf16.msra.mxu1 %v2323_v0 }
 0x15b   :  { %2356 = vmatpush3.bf16.msra.mxu0 %v2355_v55  ;;  %2326 = vmatprep.subr.bf16.mxu1 %v2325_v31 }
 0x15c   :  { %2358 = vmatprep.subr.bf16.mxu0 %v2357_v5 }
 0x15e   :  { %2328 = vmatpush3.bf16.msra.mxu1 %v2327_v51 }
 0x15f   :  { %2360 = vmatpush3.bf16.msra.mxu0 %v2359_v29  ;;  %2330 = vmatprep.subr.bf16.mxu1 %v2329_v36 }
 0x160   :  { %2362 = vmatprep.subr.bf16.mxu0 %v2361_v60 }
 0x162   :  { %2332 = vmatpush3.bf16.msra.mxu1 %v2331_v24 }
 0x163   :  { %2364 = vmatpush3.bf16.msra.mxu0 %v2363_v11 }
 0x165   :  { %1518 = vmatmul.mubr.f32.vlgmr.msra.gmra.mrb[24].mxu1 %v3081_v3 }
 0x166   :  { %1593 = vmatmul.mubr.f32.vlgmr.msra.gmra.mrb[28].mxu0 %v2984_v26  ;;  %1522 = vmatprep.mubr.f32.mxu1 %v3101_v53 }
 0x167   :  { %1597 = vmatprep.mubr.f32.mxu0 %v3320_v4 }
 0x169   :  { %1523 = vmatmul.mubr.f32.gmra.mrb[26].mxu1 %v3131_v2 }
 0x16a   :  { %1598 = vmatmul.mubr.f32.gmra.mrb[30].mxu0 %v3012_v49 }
 0x1b7   :  { %v1657_v6 = vpop.f32.mrb[8].mxu1 }
 0x1b8   :  { %v1695_v12 = vpop.f32.mrb[12].mxu0  ;;  %v1658_v50 = vpop.f32.mrb[9].mxu1 }
 0x1b9   :  { %v1659_v57 = vadd.f32 %v1658_v50, %v1657_v6  ;;  %v1696_v23 = vpop.f32.mrb[13].mxu0 }
 0x1ba   :  { %v1697_v3 = vadd.f32 %v1696_v23, %v1695_v12 }
 0x1bb   :  { %v750_v15 = vadd.f32 %v1659_v57, %v1623_v13  ;;  %v1660_v26 = vpop.f32.mrb[10].mxu1 }
 0x1bc   :  { %v1661_v14 = vpop.f32.mrb[11].mxu1  ;;  %v1698_v53 = vpop.f32.mrb[14].mxu0 }
 0x1bd   :  { %v825_v43 = vadd.f32 %v1697_v3, %v750_v15  ;;  %v1662_v4 = vadd.f32 %v1661_v14, %v1660_v26  ;;  %v1699_v16 = vpop.f32.mrb[15].mxu0 }
 0x1be   :  { %v1700_v2 = vadd.f32 %v1699_v16, %v1698_v53 }
 0x1bf   :  { %v755_v17 = vadd.f32 %v1662_v4, %v1623_v13 }
 0x1c1   :  { %v830_v49 = vadd.f32 %v1700_v2, %v755_v17 }
 0x1d7   :  { %v1733_v19 = vpop.f32.mrb[12].mxu1 }
 0x1d8   :  { %v1771_v27 = vpop.f32.mrb[16].mxu0  ;;  %v1734_v20 = vpop.f32.mrb[13].mxu1 }
 0x1d9   :  { %v1735_v62 = vadd.f32 %v1734_v20, %v1733_v19  ;;  %v1772_v21 = vpop.f32.mrb[17].mxu0 }
 0x1da   :  { %v1773_v22 = vadd.f32 %v1772_v21, %v1771_v27 }
 0x1db   :  { %v900_v25 = vadd.f32 %v1735_v62, %v825_v43  ;;  %v1736_v18 = vpop.f32.mrb[14].mxu1 }
 0x1dc   :  { %v1737_v7 = vpop.f32.mrb[15].mxu1  ;;  %v1774_v28 = vpop.f32.mrb[18].mxu0 }
 0x1dd   :  { %v975_v32 = vadd.f32 %v1773_v22, %v900_v25  ;;  %v1738_v33 = vadd.f32 %v1737_v7, %v1736_v18  ;;  %v1775_v52 = vpop.f32.mrb[19].mxu0 }
 0x1de   :  { %v1776_v35 = vadd.f32 %v1775_v52, %v1774_v28 }
 0x1df   :  { %v905_v42 = vadd.f32 %v1738_v33, %v830_v49 }
 0x1e1   :  { %v980_v37 = vadd.f32 %v1776_v35, %v905_v42 }
 0x1f7   :  { %v1809_v41 = vpop.f32.mrb[16].mxu1 }
 0x1f8   :  { %v1847_v44 = vpop.f32.mrb[20].mxu0  ;;  %v1810_v45 = vpop.f32.mrb[17].mxu1 }
 0x1f9   :  { %v1811_v38 = vadd.f32 %v1810_v45, %v1809_v41  ;;  %v1848_v47 = vpop.f32.mrb[21].mxu0 }
 0x1fa   :  { %v1849_v39 = vadd.f32 %v1848_v47, %v1847_v44 }
 0x1fb   :  { %v1050_v48 = vadd.f32 %v1811_v38, %v975_v32  ;;  %v1812_v54 = vpop.f32.mrb[18].mxu1 }
 0x1fc   :  { %v1850_v30 = vpop.f32.mrb[22].mxu0  ;;  %v1813_v0 = vpop.f32.mrb[19].mxu1  ;;  %v1295_v40 = vadd.f32 %v1849_v39, %v1624_v63 }
 0x1fd   :  { %1059 = vst.msk [vmem:[%s3714_s7] sm:$0xff] %vm1058_vm1, %v1050_v48  ;;  %v1814_v55 = vadd.f32 %v1813_v0, %v1812_v54  ;;  %v1851_v31 = vpop.f32.mrb[23].mxu0 }
 0x1fe   :  { %v1852_v1 = vadd.f32 %v1851_v31, %v1850_v30 }
 0x1ff   :  { %v1055_v58 = vadd.f32 %v1814_v55, %v980_v37 }
 0x200   :  { %v1300_v60 = vadd.f32 %v1852_v1, %v1624_v63 }
 0x201   :  { %1060 = vst.msk [vmem:[%s3714_s7 + $0x8] sm:$0xff] %vm1058_vm1, %v1055_v58 }
 0x217   :  { %v1885_v5 = vpop.f32.mrb[20].mxu1 }
 0x218   :  { %v1923_v8 = vpop.f32.mrb[24].mxu0  ;;  %v1886_v61 = vpop.f32.mrb[21].mxu1 }
 0x219   :  { %v1887_v34 = vadd.f32 %v1886_v61, %v1885_v5  ;;  %v1924_v56 = vpop.f32.mrb[25].mxu0 }
 0x21a   :  { %v1925_v51 = vadd.f32 %v1924_v56, %v1923_v8 }
 0x21b   :  { %v1370_v29 = vadd.f32 %v1887_v34, %v1295_v40  ;;  %v1888_v36 = vpop.f32.mrb[22].mxu1 }
 0x21c   :  { %v1926_v59 = vpop.f32.mrb[26].mxu0  ;;  %v1889_v46 = vpop.f32.mrb[23].mxu1 }
 0x21d   :  { %v1445_v9 = vadd.f32 %v1925_v51, %v1370_v29  ;;  %v1890_v10 = vadd.f32 %v1889_v46, %v1888_v36  ;;  %v1927_v24 = vpop.f32.mrb[27].mxu0 }
 0x21e   :  { %v1928_v11 = vadd.f32 %v1927_v24, %v1926_v59 }
 0x21f   :  { %v1375_v6 = vadd.f32 %v1890_v10, %v1300_v60 }
 0x221   :  { %v1450_v12 = vadd.f32 %v1928_v11, %v1375_v6 }
 0x238   :  { %v1961_v13 = vpop.f32.mrb[24].mxu1 }
 0x239   :  { %v1999_v50 = vpop.f32.mrb[28].mxu0  ;;  %v1962_v57 = vpop.f32.mrb[25].mxu1 }
 0x23a   :  { %v1963_v23 = vadd.f32 %v1962_v57, %v1961_v13  ;;  %v2000_v3 = vpop.f32.mrb[29].mxu0 }
 0x23b   :  { %v2001_v15 = vadd.f32 %v2000_v3, %v1999_v50 }
 0x23c   :  { %v1520_v26 = vadd.f32 %v1963_v23, %v1445_v9  ;;  %v1964_v14 = vpop.f32.mrb[26].mxu1 }
 0x23d   :  { %v2002_v53 = vpop.f32.mrb[30].mxu0  ;;  %v1965_v43 = vpop.f32.mrb[27].mxu1 }
 0x23e   :  { %v1595_v4 = vadd.f32 %v2001_v15, %v1520_v26  ;;  %v1966_v16 = vadd.f32 %v1965_v43, %v1964_v14  ;;  %v2003_v2 = vpop.f32.mrb[31].mxu0 }
 0x23f   :  { %v2004_v17 = vadd.f32 %v2003_v2, %v2002_v53 }
 0x240   :  { %1603 = vst.msk [vmem:[%s3716_s8] sm:$0xff] %vm1058_vm1, %v1595_v4  ;;  %v1525_v49 = vadd.f32 %v1966_v16, %v1450_v12 }
 0x242   :  { %v1600_v19 = vadd.f32 %v2004_v17, %v1525_v49 }
 0x244   :  { %1604 = vst.msk [vmem:[%s3716_s8 + $0x8] sm:$0xff] %vm1058_vm1, %v1600_v19 }

// kernel: _lambda_.5
= control target key start
LH: loop header
LB: loop body
LE: loop exit
PB: predicated region body
PF: predicated region fallthrough
CT: control target
= control target key end

     0   :  { %s1958_s0 = inlined_call_operand.vmem [shape: f32[2,8,64], index: 0, kind: input, shape index: {}]   ;;  %s1959_s1 = inlined_call_operand.vmem [shape: f32[64,64], index: 1, kind: input, shape index: {}]   ;;  %s1960_s2 = inlined_call_operand.vmem [shape: f32[1,64], index: 2, kind: input, shape index: {}]   ;;  %s1961_s3 = inlined_call_operand.vmem [shape: f32[64,64], index: 3, kind: input, shape index: {}]   ;;  %s1962_s4 = inlined_call_operand.vmem [shape: f32[1,64], index: 4, kind: input, shape index: {}]   ;;  %s1963_s5 = inlined_call_operand.vmem [shape: f32[64,64], index: 5, kind: input, shape index: {}]   ;;  %s1964_s6 = inlined_call_operand.vmem [shape: f32[1,64], index: 6, kind: input, shape index: {}]   ;;  %s1965_s7 = inlined_call_operand.vmem [shape: f32[64,64], index: 7, kind: input, shape index: {}]   ;;  %s1966_s8 = inlined_call_operand.vmem [shape: f32[1,64], index: 8, kind: input, shape index: {}]   ;;  %s1967_s9 = inlined_call_operand.vmem [shape: f32[64,64], index: 9, kind: input, shape index: {}]   ;;  %s1968_s10 = inlined_call_operand.vmem [shape: f32[1,64], index: 10, kind: input, shape index: {}]   ;;  %s1969_s11 = inlined_call_operand.vmem [shape: f32[64,10], index: 11, kind: input, shape index: {}]   ;;  %s1970_s12 = inlined_call_operand.vmem [shape: f32[1,10], index: 12, kind: input, shape index: {}]   ;;  %s1971_s13 = inlined_call_operand.hbm [shape: f32[2,1,10], index: 13, kind: output, shape index: {}]  }
   0x1   :  { %1973 = sst [smem:[#allocation7_spill]] %s1958_s0 }
   0x2   :  { %18 = vsyncpa [#allocation3], 0 }
   0x3   :  { %20 = vsyncpa [#allocation3 + $0x1], 0  ;;  %s1640_s25 = smov 0   ;;  %s1642_s26 = smov 0  }
   0x4   :  { %s1644_s27 = smov 0   ;;  %s1646_s28 = smov 0  }
   0x5 LB: > { %1974 = sst [smem:[#allocation5_spill]] %s1560_s27  ;;  %s1661_s29 = sadd.s32 4294967295, %s1564_s28   ;;  %s1564_s28 = sphi %s1646_s28, %s1983_s28   ;;  %s1560_s27 = sphi %s1644_s27, %s1980_s27   ;;  %s1556_s26 = sphi %s1642_s26, %s1982_s26   ;;  %s1552_s25 = sphi %s1640_s25, %s1981_s25  }
   0x6   : > { %s1182_s30 = sadd.s32 4294967294, %s1564_s28   ;;  %s1665_s14 = sadd.s32 1, %s1564_s28  }
   0x7   : > { %s311_s15 = sadd.s32 1, %s1560_s27  ;;  %s308_s16 = ssub.s32 %s1564_s28, %s1665_s14 }
   0x8   : > { %p321_p0 = scmp.ne.s32.totalorder %s1560_s27, %s1556_s26  ;;  %p309_p1 = scmp.eq.s32.totalorder %s308_s16, 0 }
   0x9   : > { %p322_p2 = scmp.eq.s32.totalorder %s1661_s29, 1  ;;  %p327_p3 = scmp.ne.s32.totalorder %s1556_s26, %s1552_s25 }
   0xa   : > { %p328_p4 = scmp.eq.s32.totalorder %s1182_s30, 1  ;;  %p1185_p7 = scmp.ge.s32.totalorder %s1564_s28, 1 }
   0xb   : > { %s1676_s17 = scalar_select %p309_p1, %s1560_s27, %s311_s15  }
   0xc   : > { %p1678_p5 = por %p322_p2, %p321_p0  ;;  %p1682_p6 = por %p328_p4, %p327_p3 }
   0xd   : > { %1975 = sst [smem:[#allocation6_spill]] %s1676_s17  ;;  %p389_p8 = scmp.lt.s32.totalorder %s1564_s28, 3 }
   0xf   : > { %p390_p9 = pnand %p1185_p7, %p389_p8 }
  0x10   : > { %v525_v0 = vld [vmem:[%s1961_s3] sm:$0xff] (!%p390_p9)  ;;  %v526_v1 = vld [vmem:[%s1961_s3 + $0x8] sm:$0xff] (!%p390_p9)  ;;  %v1566_v3 = vmov (!%p390_p9), 0.0|0.0   ;;  %v527_v6 = vld [vmem:[%s1961_s3 + $0x10] sm:$0xff] (!%p390_p9)  ;;  %p431_p10 = scmp.lt.s32.totalorder (!%p390_p9), %s1661_s29, 1  ;;  %vm1567_vm0 = vmmov (!%p390_p9), 0  }
  0x11   : > { %393 = sbr.rel (%p390_p9) target bundleno = 1662 (0x67e), region = 72  ;;  %v436_v2 = vld [vmem:[%s1959_s1] sm:$0xff] (!%p390_p9)  ;;  %1396 = vmatprep.subr.bf16.mxu1 (!%p390_p9), %v1566_v3  ;;  %v1397_v4 = vpack.c.bf16 (!%p390_p9), %v526_v1, %v525_v0  ;;  %1384 = vmatprep.subr.bf16.mxu0 (!%p390_p9), %v1566_v3  ;;  %v437_v5 = vld [vmem:[%s1959_s1 + $0x8] sm:$0xff] (!%p390_p9)  ;;  %v528_v7 = vld [vmem:[%s1961_s3 + $0x18] sm:$0xff] (!%p390_p9)  ;;  %v1568_v11 = vmov (!%p390_p9), 0.0   ;;  %s1978_s0 = sld [smem:[#allocation7_spill]] (!%p390_p9) }
  0x12   : > { %v1385_v8 = vpack.c.bf16 (!%p390_p9), %v437_v5, %v436_v2  ;;  %v438_v9 = vld [vmem:[%s1959_s1 + $0x10] sm:$0xff] (!%p390_p9)  ;;  %v439_v10 = vld [vmem:[%s1959_s1 + $0x18] sm:$0xff] (!%p390_p9)  ;;  %1295 = vmatprep.mubr.msk.f32.mxu1 (!%p390_p9), %vm1567_vm0, %v1568_v11  ;;  %1276 = vmatprep.mubr.msk.f32.mxu0 (!%p390_p9), %vm1567_vm0, %v1568_v11  ;;  %v1400_v12 = vpack.c.bf16 (!%p390_p9), %v528_v7, %v527_v6  ;;  %v529_v14 = vld [vmem:[%s1961_s3 + $0x20] sm:$0xff] (!%p390_p9)  ;;  %vm451_vm1 = vcmask (!%p390_p9), 523264   ;;  %vm772_vm2 = vcmask (!%p390_p9), 64512   ;;  %s1199_s30 = sshll.u32 (!%p390_p9), %s1661_s29, 4 }
  0x13   : > { %1398 = vmatpush3.bf16.msra.mxu1 (!%p390_p9), %v1397_v4  ;;  %v1388_v13 = vpack.c.bf16 (!%p390_p9), %v439_v10, %v438_v9  ;;  %v530_v15 = vld [vmem:[%s1961_s3 + $0x28] sm:$0xff] (!%p390_p9)  ;;  %v440_v16 = vld [vmem:[%s1959_s1 + $0x20] sm:$0xff] (!%p390_p9)  ;;  %v531_v20 = vld [vmem:[%s1961_s3 + $0x30] sm:$0xff] (!%p390_p9)  ;;  %vm1112_vm3 = vcmask (!%p390_p9), 73728   ;;  %s1916_s20 = scalar_lea.hbm (!%p390_p9), %s1971_s13, %s1199_s30 }
  0x14   : > { %1386 = vmatpush3.bf16.msra.mxu0 (!%p390_p9), %v1385_v8  ;;  %1399 = vmatprep.subr.bf16.mxu1 (!%p390_p9), %v1566_v3  ;;  %v441_v17 = vld [vmem:[%s1959_s1 + $0x28] sm:$0xff] (!%p390_p9)  ;;  %v1403_v18 = vpack.c.bf16 (!%p390_p9), %v530_v15, %v529_v14  ;;  %v532_v21 = vld [vmem:[%s1961_s3 + $0x38] sm:$0xff] (!%p390_p9)  ;;  %v442_v22 = vld [vmem:[%s1959_s1 + $0x30] sm:$0xff] (!%p390_p9) }
  0x15   : > { %1387 = vmatprep.subr.bf16.mxu0 (!%p390_p9), %v1566_v3  ;;  %v1391_v19 = vpack.c.bf16 (!%p390_p9), %v441_v17, %v440_v16  ;;  %v443_v23 = vld [vmem:[%s1959_s1 + $0x38] sm:$0xff] (!%p390_p9)  ;;  %v1406_v24 = vpack.c.bf16 (!%p390_p9), %v532_v21, %v531_v20  ;;  %v610_v26 = vld [vmem:[%s1963_s5] sm:$0xff] (!%p390_p9)  ;;  %v611_v27 = vld [vmem:[%s1963_s5 + $0x8] sm:$0xff] (!%p390_p9) }
  0x16   : > { %v1394_v25 = vpack.c.bf16 (!%p390_p9), %v443_v23, %v442_v22  ;;  %v1409_v29 = vpack.c.bf16 (!%p390_p9), %v611_v27, %v610_v26  ;;  %v612_v30 = vld [vmem:[%s1963_s5 + $0x10] sm:$0xff] (!%p390_p9)  ;;  %v613_v31 = vld [vmem:[%s1963_s5 + $0x18] sm:$0xff] (!%p390_p9)  ;;  %v614_v33 = vld [vmem:[%s1963_s5 + $0x20] sm:$0xff] (!%p390_p9) }
  0x17   : > { %1401 = vmatpush3.bf16.msra.mxu1 (!%p390_p9), %v1400_v12  ;;  %v1412_v32 = vpack.c.bf16 (!%p390_p9), %v613_v31, %v612_v30  ;;  %v615_v34 = vld [vmem:[%s1963_s5 + $0x28] sm:$0xff] (!%p390_p9)  ;;  %v616_v36 = vld [vmem:[%s1963_s5 + $0x30] sm:$0xff] (!%p390_p9)  ;;  %v617_v37 = vld [vmem:[%s1963_s5 + $0x38] sm:$0xff] (!%p390_p9) }
  0x18   : > { %s432_s24 = scalar_select %p431_p10, %s1661_s29, 1  ;;  %1389 = vmatpush3.bf16.msra.mxu0 %v1388_v13  ;;  %1402 = vmatprep.subr.bf16.mxu1 %v1566_v3  ;;  %v1415_v35 = vpack.c.bf16 %v615_v34, %v614_v33  ;;  %v1418_v38 = vpack.c.bf16 %v617_v37, %v616_v36  ;;  %v1189_v39 = vld [vmem:[%s1962_s4] ss:$0 sm:$0xff]  ;;  %v867_v0 = vld [vmem:[%s1965_s7 + $0x8] sm:$0xff]  ;;  %v868_v2 = vld [vmem:[%s1965_s7 + $0x10] sm:$0xff] }
  0x19   : > { %1390 = vmatprep.subr.bf16.mxu0 %v1566_v3  ;;  %v1187_v40 = vld [vmem:[%s1960_s2] ss:$0 sm:$0xff]  ;;  %v869_v4 = vld [vmem:[%s1965_s7 + $0x18] sm:$0xff]  ;;  %v871_v7 = vld [vmem:[%s1965_s7 + $0x28] sm:$0xff]  ;;  %s1569_s29 = smov [#allocation2]  }
  0x1a   : > { %s1186_s23 = sshll.u32 %s432_s24, 3  ;;  %v1191_v47 = vld [vmem:[%s1964_s6] ss:$0 sm:$0xff]  ;;  %v1424_v5 = vpack.c.bf16 %v869_v4, %v868_v2  ;;  %v872_v9 = vld [vmem:[%s1965_s7 + $0x30] sm:$0xff]  ;;  %v873_v10 = vld [vmem:[%s1965_s7 + $0x38] sm:$0xff]  ;;  %s429_s24 = sand.u32 1, %s1556_s26  }
  0x1b   : > { %1404 = vmatpush3.bf16.msra.mxu1 %v1403_v18  ;;  %s434_s16 = scalar_lea.vmem %s1978_s0, %s1186_s23  ;;  %v866_v63 = vld [vmem:[%s1965_s7] sm:$0xff]  ;;  %v1430_v12 = vpack.c.bf16 %v873_v10, %v872_v9  ;;  %v949_v14 = vld [vmem:[%s1967_s9 + $0x8] sm:$0xff]  ;;  %v950_v15 = vld [vmem:[%s1967_s9 + $0x10] sm:$0xff]  ;;  %s430_s15 = scalar_lea.vmem [#allocation2], %s429_s24 }
  0x1c   : > { %1392 = vmatpush3.bf16.msra.mxu0 %v1391_v19  ;;  %1405 = vmatprep.subr.bf16.mxu1 %v1566_v3  ;;  %v435_v28 = vld [vmem:[%s434_s16] sm:$0xff]  ;;  %v1421_v1 = vpack.c.bf16 %v867_v0, %v866_v63  ;;  %v951_v17 = vld [vmem:[%s1967_s9 + $0x18] sm:$0xff]  ;;  %v953_v20 = vld [vmem:[%s1967_s9 + $0x28] sm:$0xff]  ;;  %s1127_s16 = sshll.u32 %s430_s15, 4  ;;  %s1115_s21 = scalar_lea.sflag [#allocation3], %s429_s24  ;;  %s1918_s16 = int_to_ptr.vmem [resolvable:$true] %s1127_s16 }
  0x1d   : > { %1393 = vmatprep.subr.bf16.mxu0 %v1566_v3  ;;  %v870_v6 = vld [vmem:[%s1965_s7 + $0x20] sm:$0xff]  ;;  %v1436_v18 = vpack.c.bf16 %v951_v17, %v950_v15  ;;  %v955_v33 = vld [vmem:[%s1967_s9 + $0x38] sm:$0xff]  ;;  %v1031_v36 = vld [vmem:[%s1969_s11 + $0x8] sm:$0xff]  ;;  %s1502_s22 = scalar_lea.vmem %s1918_s16, 16  ;;  %s1506_s23 = sshll.u32 %s1569_s29, 4  ;;  %s1507_s23 = int_to_ptr.vmem [resolvable:$false] %s1506_s23 }
  0x1e   : > { %v1427_v8 = vpack.c.bf16 %v871_v7, %v870_v6  ;;  %v948_v13 = vld [vmem:[%s1967_s9] sm:$0xff]  ;;  %p1503_p11 = scmp.ne.s32.totalorder %s1918_s16, %s1502_s22  ;;  %s1508_s0 = scalar_lea.vmem %s1507_s23, 32 }
  0x1f   : > { %1407 = vmatpush3.bf16.msra.mxu1 %v1406_v24  ;;  %v1433_v16 = vpack.c.bf16 %v949_v14, %v948_v13  ;;  %v952_v19 = vld [vmem:[%s1967_s9 + $0x20] sm:$0xff]  ;;  %p1509_p0 = scmp.lt.s32.totalorder %s1918_s16, %s1507_s23  ;;  %p1510_p1 = scmp.lt.s32.totalorder %s1508_s0, %s1502_s22 }
  0x20   : > { %1395 = vmatpush3.bf16.msra.mxu0 %v1394_v25  ;;  %1322 = vmatprep.subr.mxu1 %v1568_v11  ;;  %v1439_v21 = vpack.c.bf16 %v953_v20, %v952_v19  ;;  %p1504_p12 = pnand %p1503_p11, %p1678_p5 }
  0x21   : > { %1408 = vmatprep.subr.bf16.mxu0 %v1566_v3  ;;  %p1511_p2 = por %p1510_p1, %p1509_p0 }
  0x22   : > { %1296 = vmatmul.mubr.msk.f32.vlgmr.msra.gmra.mrb[0].mxu1 %vm451_vm1, %v435_v28  ;;  %p1505_p13 = pneg %p1504_p12 }
  0x23   : > { %1277 = vmatmul.mubr.msk.f32.vlgmr.msra.gmra.mrb[0].mxu0 %vm451_vm1, %v435_v28  ;;  %1324 = vmatprep.mubr.msk.f32.mxu1 %vm1567_vm0, %v1568_v11 }
  0x24   : > { %1410 = vmatpush3.bf16.msra.mxu0 %v1409_v29  ;;  %1314 = vmatprep.mubr.msk.f32.mxu0 %vm1567_vm0, %v1568_v11  ;;  %p1512_p3 = pnand %p1511_p2, %p1505_p13 }
  0x25   : > { %1411 = vmatprep.subr.bf16.mxu0 %v1566_v3 }
  0x28   : > { %1413 = vmatpush3.bf16.msra.mxu0 %v1412_v32  ;;  %v954_v32 = vld [vmem:[%s1967_s9 + $0x30] sm:$0xff] }
  0x29   : > { %1414 = vmatprep.subr.bf16.mxu0 %v1566_v3  ;;  %v1442_v34 = vpack.c.bf16 %v955_v33, %v954_v32 }
  0x2c   : > { %1416 = vmatpush3.bf16.msra.mxu0 %v1415_v35  ;;  %v1030_v35 = vld [vmem:[%s1969_s11] sm:$0xff] }
  0x2d   : > { %1417 = vmatprep.subr.bf16.mxu0 %v1566_v3  ;;  %v1445_v37 = vpack.c.bf16 %v1031_v36, %v1030_v35 }
  0x30   : > { %1419 = vmatpush3.bf16.msra.mxu0 %v1418_v38  ;;  %v1033_v38 = vld [vmem:[%s1969_s11 + $0x18] sm:$0xff] }
  0x31   : > { %1317 = vmatprep.subr.mxu0 %v1568_v11 }
  0x33   : > { %1315 = vmatmul.mubr.msk.f32.vlgmr.msra.gmra.mrb[2].mxu0 %vm451_vm1, %v435_v28 }
  0x34   : > { %1319 = vmatprep.mubr.msk.f32.mxu0 %vm1567_vm0, %v1568_v11 }
  0xf5   : > { %v606_v41 = vpop.f32.mrb[0].mxu1 }
  0xf6   : > { %v607_v42 = vadd.f32 %v1189_v39, %v606_v41  ;;  %v1297_v43 = vpop.f32.mrb[1].mxu1  ;;  %v521_v44 = vpop.f32.mrb[0].mxu0  ;;  %v1035_v41 = vld [vmem:[%s1969_s11 + $0x28] sm:$0xff] }
  0xf7   : > { %v522_v45 = vadd.f32 %v1187_v40, %v521_v44  ;;  %v1278_v46 = vpop.f32.mrb[1].mxu0  ;;  %v1034_v40 = vld [vmem:[%s1969_s11 + $0x20] sm:$0xff] }
  0xf8   : > { %1318 = vmatpush3.xpose.msk.msra.mxu0 %vm451_vm1, %v607_v42  ;;  %v1451_v42 = vpack.c.bf16 %v1035_v41, %v1034_v40  ;;  %v874_v43 = vld [vmem:[%s1966_s8] sm:$0x1] }
  0xf9   : > { %1432 = vmatprep.subr.bf16.mxu0 %v1566_v3 }
  0xfb   : > { %1320 = vmatmul.mubr.msk.f32.vlgmr.msra.gmra.mrb[4].mxu0 %vm451_vm1, %v522_v45 }
  0xfc   : > { %1362 = vmatprep.mubr.msk.f32.mxu0 %vm1567_vm0, %v1568_v11  ;;  %1434 = vmatpush3.bf16.msra.mxu0 %v1433_v16 }
  0xfd   : > { %1435 = vmatprep.subr.bf16.mxu0 %v1566_v3 }
 0x100   : > { %1437 = vmatpush3.bf16.msra.mxu0 %v1436_v18 }
 0x101   : > { %1438 = vmatprep.subr.bf16.mxu0 %v1566_v3 }
 0x104   : > { %1440 = vmatpush3.bf16.msra.mxu0 %v1439_v21 }
 0x105   : > { %1441 = vmatprep.subr.bf16.mxu0 %v1566_v3 }
 0x106   : > { %v691_v48 = vpop.f32.mrb[2].mxu0 }
 0x107   : > { %v692_v49 = vadd.f32 %v1191_v47, %v691_v48  ;;  %v1316_v50 = vpop.f32.mrb[3].mxu0  ;;  %v1036_v47 = vld [vmem:[%s1969_s11 + $0x30] sm:$0xff]  ;;  %v1037_v48 = vld [vmem:[%s1969_s11 + $0x38] sm:$0xff] }
 0x108   : > { %1443 = vmatpush3.bf16.msra.mxu0 %v1442_v34 }
 0x109   : > { %1323 = vmatpush3.msra.mxu1 %v692_v49  ;;  %v1454_v49 = vpack.c.bf16 %v1037_v48, %v1036_v47 }
 0x10a   : > { %1420 = vmatprep.subr.bf16.mxu1 %v1566_v3 }
 0x1ce   : > { %v767_v51 = vpop.f32.mrb[4].mxu0 }
 0x1cf   : > { %v771_v52 = vmul.f32 0.125, %v767_v51  ;;  %v1321_v53 = vpop.f32.mrb[5].mxu0 }
 0x1d0   : > { %v1038_v53 = vld [vmem:[%s1970_s12] sm:$0x1] }
 0x1d1   : > { %v773_v54 = vsel %vm772_vm2, %v771_v52, -inf }
 0x1d2   : > { %774 = vmax.xlane.f32.xlu0 %v773_v54 }
 0x25f   : > { %v775_v55 = vpop.xlane.xlu0 %774 }
 0x260   : > { %v776_v56 = vsub.f32 %v771_v52, %v775_v55 }
 0x262   : > { %v777_v57 = vmul.f32 1.442695, %v776_v56 }
 0x264   : > { %1498 = vpow2.f32 %v777_v57 }
 0x26e   : > { %v1499_v58 = vpop.eup %1498 }
 0x26f   : > { %v779_v59 = vsel %vm772_vm2, %v1499_v58, 0.0 }
 0x270   : > { %780 = vadd.xlane.f32.xlu0 %v779_v59 }
 0x2fd   : > { %v781_v60 = vpop.xlane.xlu0 %780 }
 0x2fe   : > { %1500 = vrcp.f32 %v781_v60 }
 0x308   : > { %v1501_v61 = vpop.eup %1500 }
 0x309   : > { %v783_v62 = vmul.f32 %v1501_v61, %v1499_v58 }
 0x30b   : > { %1325 = vmatmul.mubr.msk.f32.vlgmr.msra.gmra.mrb[2].mxu1 %vm772_vm2, %v783_v62 }
 0x30c   : > { %1343 = vmatprep.mubr.msk.f32.mxu1 %vm1567_vm0, %v1568_v11  ;;  %1422 = vmatpush3.bf16.msra.mxu1 %v1421_v1 }
 0x30d   : > { %1423 = vmatprep.subr.bf16.mxu1 %v1566_v3 }
 0x310   : > { %1425 = vmatpush3.bf16.msra.mxu1 %v1424_v5 }
 0x311   : > { %1426 = vmatprep.subr.bf16.mxu1 %v1566_v3 }
 0x314   : > { %1428 = vmatpush3.bf16.msra.mxu1 %v1427_v8 }
 0x315   : > { %1429 = vmatprep.subr.bf16.mxu1 %v1566_v3 }
 0x318   : > { %1431 = vmatpush3.bf16.msra.mxu1 %v1430_v12 }
 0x319   : > { %1444 = vmatprep.subr.bf16.mxu1 %v1566_v3 }
 0x3de   : > { %v853_v22 = vpop.f32.mrb[2].mxu1 }
 0x3df   : > { %v857_v23 = vsel %vm451_vm1, %v853_v22, 0.0  ;;  %v1326_v24 = vpop.f32.mrb[3].mxu1 }
 0x3e0   : > { %v858_v25 = vrot.slane %v857_v23, 4 }
 0x3e2   : > { %v859_v26 = vadd.f32 %v858_v25, %v857_v23 }
 0x3e4   : > { %v860_v27 = vrot.slane %v859_v26, 2 }
 0x3e6   : > { %v861_v28 = vadd.f32 %v860_v27, %v859_v26 }
 0x3e8   : > { %v862_v29 = vrot.slane %v861_v28, 1 }
 0x3ea   : > { %v863_v30 = vadd.f32 %v862_v29, %v861_v28 }
 0x3ec   : > { %v865_v31 = vmul.f32 0.125, %v863_v30 }
 0x3ee   : > { %1344 = vmatmul.mubr.msk.f32.vlgmr.msra.gmra.mrb[4].mxu1 %vm451_vm1, %v865_v31 }
 0x3ef   : > { %1381 = vmatprep.mubr.msk.f32.mxu1 %vm1567_vm0, %v1568_v11  ;;  %v1032_v11 = vld [vmem:[%s1969_s11 + $0x10] sm:$0xff]  ;;  %1446 = vmatpush3.bf16.msra.mxu1 %v1445_v37 }
 0x3f0   : > { %v1448_v39 = vpack.c.bf16 %v1033_v38, %v1032_v11  ;;  %1447 = vmatprep.subr.bf16.mxu1 %v1566_v3 }
 0x3f3   : > { %1449 = vmatpush3.bf16.msra.mxu1 %v1448_v39 }
 0x3f4   : > { %1450 = vmatprep.subr.bf16.mxu1 %v1566_v3 }
 0x3f7   : > { %1452 = vmatpush3.bf16.msra.mxu1 %v1451_v42 }
 0x3f8   : > { %1453 = vmatprep.subr.bf16.mxu1 %v1566_v3  ;;  %v956_v3 = vld [vmem:[%s1968_s10] sm:$0x1] }
 0x3fb   : > { %1455 = vmatpush3.bf16.msra.mxu1 %v1454_v49 }
 0x4c1   : > { %v944_v44 = vpop.f32.mrb[4].mxu1 }
 0x4c2   : > { %v945_v45 = vadd.f32 %v944_v44, %v874_v43  ;;  %v1345_v46 = vpop.f32.mrb[5].mxu1 }
 0x4c4   : > { %1363 = vmatmul.mubr.msk.f32.vlgmr.msra.gmra.mrb[6].mxu0 %vm451_vm1, %v945_v45 }
 0x597   : > { %v1026_v50 = vpop.f32.mrb[6].mxu0 }
 0x598   : > { %v1027_v51 = vadd.f32 %v1026_v50, %v956_v3  ;;  %v1364_v52 = vpop.f32.mrb[7].mxu0 }
 0x59a   : > { %1382 = vmatmul.mubr.msk.f32.vlgmr.msra.gmra.mrb[6].mxu1 %vm451_vm1, %v1027_v51 }
 0x66d   : > { %v1108_v54 = vpop.f32.mrb[6].mxu1 }
 0x66e   : > { %v1109_v55 = vadd.f32 %v1108_v54, %v1038_v53  ;;  %v1383_v56 = vpop.f32.mrb[7].mxu1 }
 0x670   : > { %1113 = vst.msk [vmem:[%s430_s15] sm:$0x1] %vm1112_vm3, %v1109_v55 }
 0x671   : > { %1515 = shalt.err (!%p1512_p3)
}
 0x672   : > { %s1516_s24 = scalar_lea.hbm %s1916_s20, 16  ;;  %s1520_s27 = scalar_lea.hbm %s1971_s13, 32 }
 0x673   : > { %p1517_p4 = scmp.ne.s32.totalorder %s1916_s20, %s1516_s24  ;;  %p1521_p9 = scmp.lt.u32.totalorder %s1916_s20, %s1971_s13 }
 0x674   : > { %p1522_p10 = scmp.lt.u32.totalorder %s1520_s27, %s1516_s24  ;;  %p1524_p12 = scmp.lt.u32.totalorder %s1516_s24, %s1916_s20 }
 0x675   : > { %p1518_p7 = pnand %p1517_p4, %p1678_p5 }
 0x676   : > { %p1523_p11 = por %p1522_p10, %p1521_p9 }
 0x677   : > { %p1519_p8 = pneg %p1518_p7 }
 0x678   : > { %p1525_p13 = por %p1524_p12, %p1523_p11 }
 0x67a   : > { %p1526_p0 = pnand %p1525_p13, %p1519_p8 }
 0x67c   : > { %1529 = shalt.err (!%p1526_p0)
}
 0x67d   : > { %1456 = dma.vmem_to_hbm [thread:$0]  (%p1678_p5), %s1918_s16, 16, %s1916_s20, %s1115_s21  }
 0x67e PF: > { %p1462_p1 = scmp.ge.s32.totalorder %s1564_s28, 2  ;;  %s1139_s0 = sand.u32 1, %s1552_s25  }
 0x67f   : > { %s1140_s22 = scalar_lea.sflag [#allocation3], %s1139_s0 }
 0x680   : > { %p1459_p2 = pnand %p1462_p1, %p1682_p6 }
 0x682   : > { %1547 = dma.done.wait (!%p1459_p2), %s1140_s22, 16  }
 0x683   : > { %1549 = vsyncadd (!%p1459_p2), %s1140_s22, 4294967280  ;;  %s1979_s23 = sld [smem:[#allocation5_spill]]  ;;  %s1980_s27 = sld [smem:[#allocation6_spill]] }
 0x684   : > { %p23_p3 = scmp.ge.s32.totalorder %s1665_s14, 4   ;;  %s1981_s25 = smov %s1556_s26 }
 0x685   : > { %s1983_s28 = smov %s1665_s14 }
 0x686   :  { %25 = sbr.rel (!%p23_p3) target bundleno = 5 (0x5), region = 107 }
 0x689   : > { %s1982_s26 = smov %s1979_s23 }
 0x68d   :  { %1144 = vsyncpa [#allocation3], 1 }
 0x68e   :  { %1146 = vsyncpa [#allocation3 + $0x1], 1 }

// kernel: _lambda_.4
= control target key start
LH: loop header
LB: loop body
LE: loop exit
PB: predicated region body
PF: predicated region fallthrough
CT: control target
= control target key end

     0   :  { %v923_v17 = vmov 0.0   ;;  %v925_v18 = vmov 0.0   ;;  %v927_v19 = vmov 0.0   ;;  %v929_v20 = vmov 0.0   ;;  %s931_s23 = smov 0   ;;  %s1136_s0 = inlined_call_operand.vmem [shape: f32[2,8,96], index: 0, kind: input, shape index: {}]   ;;  %s1137_s1 = inlined_call_operand.vmem [shape: f32[2,8,96], index: 1, kind: input, shape index: {}]   ;;  %s1138_s2 = inlined_call_operand.vmem [shape: f32[64,192], index: 2, kind: input, shape index: {}]   ;;  %s1139_s4 = inlined_call_operand.vmem [shape: f32[2,8,64], index: 4, kind: output, shape index: {}]   ;;  %s1140_s3 = inlined_call_operand.vmem [shape: f32[1,192], index: 3, kind: input, shape index: {}]  }
   0x1   :  { %v841_v0 = vld [vmem:[%s1138_s2] sm:$0xff]  ;;  %v846_v1 = vld [vmem:[%s1138_s2 + $0x8] sm:$0xff]  ;;  %v851_v2 = vld [vmem:[%s1138_s2 + $0x10] sm:$0xff] }
   0x2   :  { %v856_v3 = vld [vmem:[%s1138_s2 + $0x18] sm:$0xff]  ;;  %v861_v4 = vld [vmem:[%s1138_s2 + $0x20] sm:$0xff]  ;;  %v866_v5 = vld [vmem:[%s1138_s2 + $0x28] sm:$0xff] }
   0x3   :  { %v871_v6 = vld [vmem:[%s1138_s2 + $0x30] sm:$0xff]  ;;  %v876_v7 = vld [vmem:[%s1138_s2 + $0x38] sm:$0xff]  ;;  %v881_v8 = vld [vmem:[%s1138_s2 + $0x40] sm:$0xff] }
   0x4   :  { %v886_v9 = vld [vmem:[%s1138_s2 + $0x48] sm:$0xff]  ;;  %v891_v10 = vld [vmem:[%s1138_s2 + $0x50] sm:$0xff]  ;;  %v896_v11 = vld [vmem:[%s1138_s2 + $0x58] sm:$0xff] }
   0x5   :  { %v901_v12 = vld [vmem:[%s1138_s2 + $0x60] sm:$0xff]  ;;  %v906_v13 = vld [vmem:[%s1138_s2 + $0x68] sm:$0xff]  ;;  %v911_v14 = vld [vmem:[%s1138_s2 + $0x70] sm:$0xff] }
   0x6   :  { %v916_v15 = vld [vmem:[%s1138_s2 + $0x78] sm:$0xff]  ;;  %v921_v16 = vld [vmem:[%s1140_s3] sm:$0x3] }
   0x7 LB: > { %vm48_vm0 = vcmask 1041409   ;;  %v627_v21 = vpack.c.bf16 %v856_v3, %v846_v1  ;;  %v629_v22 = vpack.c.bf16 %v851_v2, %v841_v0  ;;  %v631_v23 = vpack.c.bf16 %v876_v7, %v866_v5  ;;  %s808_s2 = smov 96   ;;  %s810_s3 = smov 64   ;;  %s806_s23 = sphi %s931_s23, %s39_s23   ;;  %v802_v20 = vphi %v929_v20, %v451_v20   ;;  %v798_v19 = vphi %v927_v19, %v452_v19   ;;  %v794_v18 = vphi %v925_v18, %v529_v18   ;;  %v790_v17 = vphi %v923_v17, %v530_v17  }
   0x8   : > { %v47_v24 = vrot.slane %v798_v19, 7  ;;  %v633_v25 = vpack.c.bf16 %v871_v6, %v861_v4  ;;  %v635_v27 = vpack.c.bf16 %v896_v11, %v886_v9  ;;  %v809_v28 = vmov 0.0   ;;  %s811_s24 = smov 32   ;;  %s992_s25 = sshll.u32 %s806_s23, 1 }
   0x9   : > { %628 = vmatprep.subr.bf16.mxu0 %v627_v21  ;;  %644 = vmatprep.subr.bf16.mxu1 %v627_v21  ;;  %v637_v29 = vpack.c.bf16 %v891_v10, %v881_v8  ;;  %v639_v30 = vpack.c.bf16 %v916_v15, %v906_v13  ;;  %v641_v31 = vpack.c.bf16 %v911_v14, %v901_v12  ;;  %v55_v32 = vrot.slane %v790_v17, 7  ;;  %s998_s28 = scalar_lea.vmem %s1136_s0, %s992_s25  ;;  %s146_s29 = ssub.s32 7, %s992_s25 }
   0xa   : > { %630 = vmatpush1.bf16.msra.mxu0 %v629_v22  ;;  %646 = vmatpush1.bf16.msra.mxu1 %v629_v22  ;;  %v49_v26 = vsel %vm48_vm0, %v47_v24, %v802_v20  ;;  %vm58_vm1 = vcmask 261120   ;;  %vm71_vm2 = vcmask 523264   ;;  %v61_v36 = vlaneseq  ;;  %v149_v48 = vld [vmem:[%s998_s28 + $0x8] sm:$0x1]  ;;  %v148_v50 = vld [vmem:[%s998_s28] sm:$0x1]  ;;  %s150_s6 = scalar_lea.vmem %s1137_s1, %s146_s29 }
   0xb   : > { %632 = vmatprep.subr.bf16.mxu0 %v631_v23  ;;  %648 = vmatprep.subr.bf16.mxu1 %v631_v23  ;;  %v56_v33 = vsel %vm48_vm0, %v55_v32, %v794_v18  ;;  %v1008_v61 = vld [vmem:[%s150_s6 + $0x8] sm:$0x1]  ;;  %v1010_v21 = vld [vmem:[%s150_s6] sm:$0x1]  ;;  %s392_s7 = ssub.s32 6, %s992_s25  ;;  %vm294_vm3 = vcmask 253952  }
   0xc   : > { %50 = vrot.lane.b32.xlu0 %v49_v26, %s808_s2  ;;  %139 = vmatprep.mubr.f32.mxu0 %v809_v28  ;;  %v62_v37 = vshrl.u32 %v61_v36, 7  ;;  %s396_s10 = scalar_lea.vmem %s1137_s1, %s392_s7  ;;  %s305_s11 = scalar_lea.vmem [#allocation3], %s146_s29 }
   0xd   : > { %385 = vmatprep.mubr.f32.mxu1 %v809_v28  ;;  %s293_s12 = scalar_lea.vmem [#allocation2], %s992_s25  ;;  %s550_s13 = scalar_lea.vmem [#allocation3], %s392_s7 }
   0xe   : > { %634 = vmatpush1.bf16.msra.mxu0 %v633_v25  ;;  %650 = vmatpush1.bf16.msra.mxu1 %v633_v25  ;;  %v63_v38 = vsub.s32 0, %v62_v37  ;;  %v67_v40 = vsub.s32 1, %v62_v37  ;;  %s39_s23 = sadd.s32 1, %s806_s23  }
   0xf   : > { %636 = vmatprep.subr.bf16.mxu0 %v635_v27  ;;  %652 = vmatprep.subr.bf16.mxu1 %v635_v27  ;;  %p36_p0 = scmp.ge.s32.totalorder %s39_s23, 4  }
  0x10   : > { %v974_v39 = vrot.slane %v921_v16, %v63_v38  ;;  %v978_v43 = vrot.slane %v921_v16, %v67_v40  ;;  %s812_s14 = smov (%p36_p0), 32  }
  0x12   : > { %638 = vmatpush1.bf16.msra.mxu0 %v637_v29  ;;  %654 = vmatpush1.bf16.msra.mxu1 %v637_v29 }
  0x13   : > { %640 = vmatprep.subr.bf16.mxu0 %v639_v30  ;;  %656 = vmatprep.subr.bf16.mxu1 %v639_v30 }
  0x16   : > { %642 = vmatpush1.bf16.msra.mxu0 %v641_v31  ;;  %658 = vmatpush1.bf16.msra.mxu1 %v641_v31 }
  0x7e   : > { %v51_v34 = vpop.permute.xlu0 %50 }
  0x7f   : > { %v59_v35 = vsel %vm58_vm1, %v51_v34, %v56_v33 }
  0x80   : > { %607 = vmatmul.mubr.msk.f32.vlgmr.msra.gmra.mrb[0].mxu0 %vm71_vm2, %v59_v35 }
 0x153   : > { %v141_v41 = vpop.f32.mrb[0].mxu0 }
 0x154   : > { %v142_v42 = vadd.f32 %v141_v41, %v974_v39  ;;  %v143_v44 = vpop.f32.mrb[1].mxu0 }
 0x155   : > { %v982_v46 = vadd.f32 %v143_v44, %v978_v43 }
 0x156   : > { %171 = vrot.lane.b32.xlu1 %v142_v42, %s810_s3  ;;  %v154_v45 = vrot.slane %v142_v42, 1  ;;  %v157_v51 = vadd.f32 %v148_v50, %v142_v42 }
 0x157   : > { %v228_v47 = vrot.slane %v982_v46, 1 }
 0x158   : > { %173 = vrot.lane.b32.xlu0 %v154_v45, %s810_s3  ;;  %v158_v49 = vadd.f32 %v154_v45, %v149_v48  ;;  %v608_v53 = vmul.f32 -1.442695, %v157_v51 }
 0x15a   : > { %209 = vrot.lane.b32.xlu1 %v154_v45, %s811_s24  ;;  %v609_v52 = vmul.f32 -1.442695, %v158_v49 }
 0x15c   : > { %207 = vrot.lane.b32.xlu0 %v142_v42, %s811_s24  ;;  %704 = vpow2.f32 %v609_v52 }
 0x15d   : > { %706 = vpow2.f32 %v608_v53 }
 0x15e   : > { %251 = vrot.lane.b32.xlu1 %v228_v47, %s808_s2 }
 0x162   : > { %249 = vrot.lane.b32.xlu1 %v982_v46, %s808_s2 }
 0x166   : > { %v705_v54 = vpop.eup %704 }
 0x167   : > { %v166_v55 = vadd.f32 1.0, %v705_v54  ;;  %v707_v56 = vpop.eup %706 }
 0x168   : > { %v165_v57 = vadd.f32 1.0, %v707_v56 }
 0x169   : > { %708 = vrcp.f32 %v166_v55 }
 0x16a   : > { %710 = vrcp.f32 %v165_v57 }
 0x173   : > { %v709_v59 = vpop.eup %708 }
 0x174   : > { %v711_v23 = vpop.eup %710  ;;  %v204_v56 = vmul.f32 %v798_v19, %v709_v59 }
 0x1c8   : > { %v172_v58 = vpop.permute.xlu1 %171 }
 0x1c9   : > { %v177_v25 = vmul.f32 %v711_v23, %v172_v58  ;;  %v191_v58 = vsub.f32 1.0, %v711_v23 }
 0x1ca   : > { %v174_v60 = vpop.permute.xlu0 %173 }
 0x1cb   : > { %v178_v62 = vmul.f32 %v709_v59, %v174_v60 }
 0x1cc   : > { %v210_v63 = vpop.permute.xlu1 %209 }
 0x1cd   : > { %v214_v22 = vadd.f32 %v210_v63, %v1008_v61  ;;  %183 = vrot.lane.b32.xlu0 %v178_v62, %s810_s3  ;;  %v203_v62 = vmul.f32 %v802_v20, %v711_v23 }
 0x1ce   : > { %v208_v24 = vpop.permute.xlu0 %207 }
 0x1cf   : > { %v611_v26 = vmul.f32 -1.442695, %v214_v22  ;;  %v213_v27 = vadd.f32 %v208_v24, %v1010_v21 }
 0x1d0   : > { %v252_v33 = vpop.permute.xlu1 %251 }
 0x1d1   : > { %712 = vpow2.f32 %v611_v26  ;;  %v610_v28 = vmul.f32 -1.442695, %v213_v27  ;;  %181 = vrot.lane.b32.xlu0 %v177_v25, %s810_s3 }
 0x1d3   : > { %714 = vpow2.f32 %v610_v28 }
 0x1d4   : > { %v250_v37 = vpop.permute.xlu1 %249 }
 0x1db   : > { %v713_v29 = vpop.eup %712 }
 0x1dc   : > { %v222_v30 = vadd.f32 1.0, %v713_v29 }
 0x1dd   : > { %v715_v31 = vpop.eup %714 }
 0x1de   : > { %716 = vrcp.f32 %v222_v30  ;;  %v221_v32 = vadd.f32 1.0, %v715_v31 }
 0x1e0   : > { %718 = vrcp.f32 %v221_v32 }
 0x1e8   : > { %v717_v34 = vpop.eup %716 }
 0x1e9   : > { %v256_v35 = vmul.f32 %v717_v34, %v252_v33 }
 0x1ea   : > { %v719_v36 = vpop.eup %718 }
 0x1eb   : > { %v255_v38 = vmul.f32 %v719_v36, %v250_v37  ;;  %261 = vrot.lane.b32.xlu1 %v256_v35, %s810_s3 }
 0x1ed   : > { %259 = vrot.lane.b32.xlu0 %v255_v38, %s810_s3 }
 0x23f   : > { %v184_v40 = vpop.permute.xlu0 %183 }
 0x240   : > { %v188_v41 = vadd.f32 %v184_v40, %v149_v48 }
 0x242   : > { %720 = vtanh.f32 %v188_v41 }
 0x243   : > { %v182_v42 = vpop.permute.xlu0 %181 }
 0x244   : > { %v187_v44 = vadd.f32 %v182_v42, %v148_v50 }
 0x246   : > { %722 = vtanh.f32 %v187_v44 }
 0x24c   : > { %v721_v45 = vpop.eup %720 }
 0x24d   : > { %197 = vrot.lane.b32.xlu1 %v721_v45, %s808_s2 }
 0x250   : > { %v723_v49 = vpop.eup %722 }
 0x251   : > { %231 = vrot.lane.b32.xlu1 %v228_v47, %s811_s24  ;;  %195 = vrot.lane.b32.xlu0 %v723_v49, %s808_s2  ;;  %v192_v47 = vsub.f32 1.0, %v709_v59 }
 0x255   : > { %229 = vrot.lane.b32.xlu0 %v982_v46, %s811_s24 }
 0x25d   : > { %v262_v51 = vpop.permute.xlu1 %261 }
 0x25e   : > { %v266_v52 = vadd.f32 %v262_v51, %v1008_v61 }
 0x25f   : > { %v260_v53 = vpop.permute.xlu0 %259 }
 0x260   : > { %724 = vtanh.f32 %v266_v52  ;;  %v265_v48 = vadd.f32 %v260_v53, %v1010_v21 }
 0x262   : > { %726 = vtanh.f32 %v265_v48 }
 0x26a   : > { %v725_v50 = vpop.eup %724 }
 0x26b   : > { %275 = vrot.lane.b32.xlu1 %v725_v50, %s808_s2 }
 0x26c   : > { %v727_v54 = vpop.eup %726 }
 0x26d   : > { %273 = vrot.lane.b32.xlu0 %v727_v54, %s808_s2  ;;  %v617_v54 = vld [vmem:[%s998_s28 + $0x9] sm:$0x1] }
 0x2bf   : > { %v198_v55 = vpop.permute.xlu1 %197 }
 0x2c0   : > { %v202_v57 = vmul.f32 %v198_v55, %v192_v47 }
 0x2c2   : > { %v1028_v46 = vadd.f32 %v204_v56, %v202_v57 }
 0x2c3   : > { %v196_v60 = vpop.permute.xlu0 %195  ;;  %v232_v26 = vpop.permute.xlu1 %231 }
 0x2c4   : > { %v201_v63 = vmul.f32 %v196_v60, %v191_v58  ;;  %v309_v24 = vrot.slane %v1028_v46, 7  ;;  %v236_v19 = vadd.f32 %v232_v26, %v1008_v61 }
 0x2c6   : > { %v1031_v22 = vadd.f32 %v203_v62, %v201_v63  ;;  %v613_v28 = vmul.f32 -1.442695, %v236_v19  ;;  %v397_v63 = vld [vmem:[%s396_s10] sm:$0x1] }
 0x2c7   : > { %v230_v27 = vpop.permute.xlu0 %229 }
 0x2c8   : > { %v310_v25 = vsel %vm48_vm0, %v309_v24, %v1031_v22  ;;  %v235_v59 = vadd.f32 %v230_v27, %v1010_v21  ;;  %728 = vpow2.f32 %v613_v28 }
 0x2c9   : > { %311 = vrot.lane.b32.xlu1 %v310_v25, %s808_s2  ;;  %v398_v25 = vld [vmem:[%s396_s10 + $0x8] sm:$0x1] }
 0x2ca   : > { %v612_v29 = vmul.f32 -1.442695, %v235_v59 }
 0x2cc   : > { %730 = vpow2.f32 %v612_v29 }
 0x2d2   : > { %v729_v20 = vpop.eup %728 }
 0x2d3   : > { %v244_v30 = vadd.f32 1.0, %v729_v20 }
 0x2d5   : > { %732 = vrcp.f32 %v244_v30 }
 0x2d6   : > { %v731_v23 = vpop.eup %730 }
 0x2d7   : > { %v243_v31 = vadd.f32 1.0, %v731_v23 }
 0x2d9   : > { %734 = vrcp.f32 %v243_v31 }
 0x2dd   : > { %v276_v36 = vpop.permute.xlu1 %275 }
 0x2df   : > { %v733_v32 = vpop.eup %732  ;;  %v274_v38 = vpop.permute.xlu0 %273 }
 0x2e0   : > { %v270_v34 = vsub.f32 1.0, %v733_v32  ;;  %v282_v61 = vmul.f32 %v790_v17, %v733_v32 }
 0x2e2   : > { %v280_v37 = vmul.f32 %v276_v36, %v270_v34 }
 0x2e3   : > { %v735_v33 = vpop.eup %734 }
 0x2e4   : > { %v269_v35 = vsub.f32 1.0, %v735_v33  ;;  %v1040_v40 = vadd.f32 %v282_v61, %v280_v37  ;;  %v281_v41 = vmul.f32 %v794_v18, %v735_v33 }
 0x2e6   : > { %v279_v21 = vmul.f32 %v274_v38, %v269_v35  ;;  %v314_v44 = vrot.slane %v1040_v40, 7 }
 0x2e8   : > { %v1043_v42 = vadd.f32 %v281_v41, %v279_v21 }
 0x2ea   : > { %v315_v49 = vsel %vm48_vm0, %v314_v44, %v1043_v42 }
 0x33b   : > { %v312_v45 = vpop.permute.xlu1 %311 }
 0x33c   : > { %v317_v51 = vsel %vm58_vm1, %v312_v45, %v315_v49 }
 0x33d   : > { %614 = vmatmul.mubr.msk.f32.vlgmr.msra.gmra.mrb[0].mxu1 %vm71_vm2, %v317_v51 }
 0x410   : > { %v387_v17 = vpop.f32.mrb[0].mxu1 }
 0x411   : > { %v388_v52 = vadd.f32 %v387_v17, %v974_v39  ;;  %v389_v53 = vpop.f32.mrb[1].mxu1  ;;  %v616_v39 = vld [vmem:[%s998_s28 + $0x1] sm:$0x1] }
 0x412   : > { %v390_v48 = vadd.f32 %v389_v53, %v978_v43 }
 0x413   : > { %453 = vrot.lane.b32.xlu0 %v388_v52, %s811_s24  ;;  %v400_v18 = vrot.slane %v388_v52, 1  ;;  %v403_v47 = vadd.f32 %v616_v39, %v388_v52 }
 0x414   : > { %v474_v50 = vrot.slane %v390_v48, 1 }
 0x415   : > { %455 = vrot.lane.b32.xlu1 %v400_v18, %s811_s24  ;;  %v404_v55 = vadd.f32 %v617_v54, %v400_v18  ;;  %v618_v56 = vmul.f32 -1.442695, %v403_v47 }
 0x417   : > { %417 = vrot.lane.b32.xlu0 %v388_v52, %s810_s3  ;;  %v619_v57 = vmul.f32 -1.442695, %v404_v55  ;;  %736 = vpow2.f32 %v618_v56 }
 0x419   : > { %419 = vrot.lane.b32.xlu1 %v400_v18, %s810_s3  ;;  %738 = vpow2.f32 %v619_v57 }
 0x41b   : > { %495 = vrot.lane.b32.xlu0 %v390_v48, %s808_s2 }
 0x41d   : > { %497 = vrot.lane.b32.xlu1 %v474_v50, %s808_s2 }
 0x421   : > { %v737_v43 = vpop.eup %736 }
 0x422   : > { %v411_v60 = vadd.f32 1.0, %v737_v43 }
 0x423   : > { %v739_v58 = vpop.eup %738 }
 0x424   : > { %v412_v62 = vadd.f32 1.0, %v739_v58  ;;  %740 = vrcp.f32 %v411_v60 }
 0x426   : > { %742 = vrcp.f32 %v412_v62 }
 0x42e   : > { %v1066_v28 = vpop.eup %740 }
 0x42f   : > { %v437_v62 = vsub.f32 1.0, %v1066_v28 }
 0x430   : > { %v1069_v30 = vpop.eup %742 }
 0x485   : > { %v454_v24 = vpop.permute.xlu0 %453 }
 0x486   : > { %v459_v26 = vadd.f32 %v454_v24, %v397_v63 }
 0x487   : > { %v456_v27 = vpop.permute.xlu1 %455 }
 0x488   : > { %v620_v19 = vmul.f32 -1.442695, %v459_v26  ;;  %v460_v59 = vadd.f32 %v456_v27, %v398_v25  ;;  %v449_v26 = vmul.f32 %v1066_v28, %v1031_v22 }
 0x489   : > { %v418_v29 = vpop.permute.xlu0 %417 }
 0x48a   : > { %744 = vpow2.f32 %v620_v19  ;;  %v621_v20 = vmul.f32 -1.442695, %v460_v59  ;;  %v423_v23 = vmul.f32 %v1066_v28, %v418_v29  ;;  %v438_v19 = vsub.f32 1.0, %v1069_v30 }
 0x48b   : > { %v420_v31 = vpop.permute.xlu1 %419 }
 0x48c   : > { %746 = vpow2.f32 %v621_v20  ;;  %v424_v32 = vmul.f32 %v1069_v30, %v420_v31  ;;  %427 = vrot.lane.b32.xlu0 %v423_v23, %s810_s3 }
 0x48d   : > { %v496_v38 = vpop.permute.xlu0 %495 }
 0x48e   : > { %429 = vrot.lane.b32.xlu1 %v424_v32, %s810_s3 }
 0x48f   : > { %v498_v41 = vpop.permute.xlu1 %497 }
 0x494   : > { %v745_v33 = vpop.eup %744 }
 0x495   : > { %v467_v34 = vadd.f32 1.0, %v745_v33 }
 0x496   : > { %v747_v35 = vpop.eup %746 }
 0x497   : > { %748 = vrcp.f32 %v467_v34  ;;  %v468_v36 = vadd.f32 1.0, %v747_v35 }
 0x499   : > { %750 = vrcp.f32 %v468_v36 }
 0x4a1   : > { %v749_v37 = vpop.eup %748 }
 0x4a2   : > { %v501_v61 = vmul.f32 %v749_v37, %v496_v38 }
 0x4a3   : > { %v751_v21 = vpop.eup %750 }
 0x4a4   : > { %v502_v44 = vmul.f32 %v751_v21, %v498_v41  ;;  %505 = vrot.lane.b32.xlu0 %v501_v61, %s810_s3 }
 0x4a6   : > { %507 = vrot.lane.b32.xlu1 %v502_v44, %s810_s3 }
 0x4a8   : > { %475 = vrot.lane.b32.xlu0 %v390_v48, %s811_s24 }
 0x4aa   : > { %477 = vrot.lane.b32.xlu1 %v474_v50, %s811_s24 }
 0x4fe   : > { %v428_v45 = vpop.permute.xlu0 %427 }
 0x4ff   : > { %v433_v49 = vadd.f32 %v616_v39, %v428_v45 }
 0x500   : > { %v430_v51 = vpop.permute.xlu1 %429 }
 0x501   : > { %752 = vtanh.f32 %v433_v49  ;;  %v434_v17 = vadd.f32 %v617_v54, %v430_v51 }
 0x503   : > { %754 = vtanh.f32 %v434_v17 }
 0x50b   : > { %v753_v52 = vpop.eup %752 }
 0x50c   : > { %441 = vrot.lane.b32.xlu0 %v753_v52, %s808_s2 }
 0x50d   : > { %v755_v53 = vpop.eup %754 }
 0x50e   : > { %443 = vrot.lane.b32.xlu1 %v755_v53, %s808_s2 }
 0x516   : > { %v506_v18 = vpop.permute.xlu0 %505 }
 0x517   : > { %v511_v47 = vadd.f32 %v506_v18, %v397_v63 }
 0x518   : > { %v508_v55 = vpop.permute.xlu1 %507 }
 0x519   : > { %756 = vtanh.f32 %v511_v47  ;;  %v512_v56 = vadd.f32 %v508_v55, %v398_v25 }
 0x51a   : > { %v476_v39 = vpop.permute.xlu0 %475 }
 0x51b   : > { %758 = vtanh.f32 %v512_v56  ;;  %v481_v57 = vadd.f32 %v476_v39, %v397_v63  ;;  %v450_v63 = vmul.f32 %v1069_v30, %v1028_v46 }
 0x51c   : > { %v478_v54 = vpop.permute.xlu1 %477 }
 0x51d   : > { %v482_v43 = vadd.f32 %v478_v54, %v398_v25  ;;  %v622_v58 = vmul.f32 -1.442695, %v481_v57 }
 0x51f   : > { %v623_v60 = vmul.f32 -1.442695, %v482_v43  ;;  %760 = vpow2.f32 %v622_v58 }
 0x521   : > { %762 = vpow2.f32 %v623_v60 }
 0x523   : > { %v757_v48 = vpop.eup %756 }
 0x524   : > { %519 = vrot.lane.b32.xlu0 %v757_v48, %s808_s2 }
 0x525   : > { %v759_v50 = vpop.eup %758 }
 0x526   : > { %521 = vrot.lane.b32.xlu1 %v759_v50, %s808_s2 }
 0x528   : > { %299 = vrot.lane.b32.xlu0 %v1043_v42, %s808_s2 }
 0x529   : > { %v761_v29 = vpop.eup %760 }
 0x52a   : > { %301 = vrot.lane.b32.xlu1 %v1040_v40, %s808_s2  ;;  %v489_v31 = vadd.f32 1.0, %v761_v29 }
 0x52b   : > { %v763_v23 = vpop.eup %762 }
 0x52c   : > { %287 = vrot.lane.b32.xlu0 %v1031_v22, %s808_s2  ;;  %v490_v32 = vadd.f32 1.0, %v763_v23  ;;  %764 = vrcp.f32 %v489_v31 }
 0x52e   : > { %289 = vrot.lane.b32.xlu1 %v1028_v46, %s808_s2  ;;  %766 = vrcp.f32 %v490_v32 }
 0x536   : > { %v765_v22 = vpop.eup %764 }
 0x537   : > { %v515_v33 = vsub.f32 1.0, %v765_v22  ;;  %v527_v35 = vmul.f32 %v765_v22, %v1043_v42 }
 0x538   : > { %v767_v28 = vpop.eup %766 }
 0x539   : > { %v516_v46 = vsub.f32 1.0, %v767_v28  ;;  %v528_v37 = vmul.f32 %v767_v28, %v1040_v40 }
 0x57e   : > { %v442_v24 = vpop.permute.xlu0 %441 }
 0x57f   : > { %v447_v27 = vmul.f32 %v442_v24, %v437_v62 }
 0x580   : > { %v444_v59 = vpop.permute.xlu1 %443 }
 0x581   : > { %v451_v20 = vadd.f32 %v449_v26, %v447_v27   ;;  %v448_v25 = vmul.f32 %v444_v59, %v438_v19 }
 0x583   : > { %v452_v19 = vadd.f32 %v450_v63, %v448_v25   ;;  %533 = vrot.lane.b32.xlu0 %v451_v20, %s808_s2 }
 0x585   : > { %535 = vrot.lane.b32.xlu1 %v452_v19, %s808_s2 }
 0x596   : > { %v520_v34 = vpop.permute.xlu0 %519 }
 0x597   : > { %v525_v36 = vmul.f32 %v520_v34, %v515_v33 }
 0x598   : > { %v522_v30 = vpop.permute.xlu1 %521 }
 0x599   : > { %v529_v18 = vadd.f32 %v527_v35, %v525_v36   ;;  %v526_v38 = vmul.f32 %v522_v30, %v516_v46 }
 0x59a   : > { %v300_v61 = vpop.permute.xlu0 %299 }
 0x59b   : > { %v530_v17 = vadd.f32 %v528_v37, %v526_v38   ;;  %306 = vst.msk [vmem:[%s305_s11] sm:$0x1] %vm294_vm3, %v300_v61  ;;  %544 = vrot.lane.b32.xlu0 %v529_v18, %s808_s2 }
 0x59c   : > { %v302_v21 = vpop.permute.xlu1 %301 }
 0x59d   : > { %307 = vst.msk [vmem:[%s305_s11 + $0x8] sm:$0x1] %vm294_vm3, %v302_v21  ;;  %546 = vrot.lane.b32.xlu1 %v530_v17, %s808_s2 }
 0x59e   : > { %v288_v42 = vpop.permute.xlu0 %287 }
 0x59f   : > { %295 = vst.msk [vmem:[%s293_s12] sm:$0x1] %vm294_vm3, %v288_v42 }
 0x5a0   : > { %v290_v40 = vpop.permute.xlu1 %289 }
 0x5a1   : > { %296 = vst.msk [vmem:[%s293_s12 + $0x8] sm:$0x1] %vm294_vm3, %v290_v40 }
 0x5f5   : > { %v534_v41 = vpop.permute.xlu0 %533 }
 0x5f6   : > { %625 = vst.msk [vmem:[%s293_s12 + $0x1] sm:$0x1] %vm294_vm3, %v534_v41 }
 0x5f7   : > { %v536_v44 = vpop.permute.xlu1 %535 }
 0x5f8   : > { %626 = vst.msk [vmem:[%s293_s12 + $0x9] sm:$0x1] %vm294_vm3, %v536_v44 }
 0x5ff   :  { %v553_v53 = vld [vmem:[#allocation2] sm:$0xff] (%p36_p0)  ;;  %v554_v56 = vld [vmem:[#allocation2 + $0x8] sm:$0xff] (%p36_p0) }
 0x60a   :  { %38 = sbr.rel (!%p36_p0) target bundleno = 7 (0x7), region = 51 }
 0x60d   : > { %v545_v45 = vpop.permute.xlu0 %544 }
 0x60e   : > { %551 = vst.msk [vmem:[%s550_s13] sm:$0x1] %vm294_vm3, %v545_v45 }
 0x60f   : > { %v547_v49 = vpop.permute.xlu1 %546 }
 0x610   : > { %552 = vst.msk [vmem:[%s550_s13 + $0x8] sm:$0x1] %vm294_vm3, %v547_v49 }
 0x617   :  { %v555_v51 = vld [vmem:[#allocation3] sm:$0xff]  ;;  %v556_v52 = vld [vmem:[#allocation3 + $0x8] sm:$0xff] }
 0x618   :  { %559 = vrot.lane.b32.xlu0 %v555_v51, %s812_s14 }
 0x61c   :  { %561 = vrot.lane.b32.xlu0 %v556_v52, %s812_s14 }
 0x68a   :  { %v560_v47 = vpop.permute.xlu0 %559 }
 0x68b   :  { %v566_v55 = vsel %vm58_vm1, %v553_v53, %v560_v47 }
 0x68c   :  { %569 = vst.msk [vmem:[%s1139_s4] sm:$0xff] %vm71_vm2, %v566_v55 }
 0x68e   :  { %v562_v48 = vpop.permute.xlu0 %561 }
 0x68f   :  { %v567_v20 = vsel %vm58_vm1, %v554_v56, %v562_v48 }
 0x690   :  { %570 = vst.msk [vmem:[%s1139_s4 + $0x8] sm:$0xff] %vm71_vm2, %v567_v20 }

</bundles_post_ra>
